<compile_context>
chip_gen: v6e
topology: v6e:2x2x1
jax: 0.10.0
libtpu: 0.0.40
codegen_flags: <defaults>
</compile_context>

<pallas_src>
import math

import jax
import jax.numpy as jnp
from jax import lax
from jax.experimental import pallas as pl
from jax.experimental.pallas import tpu as pltpu

# ---------------- model config (small, consistent with the module's forward) ----
B = 2           # batch
S = 8           # sequence length
H = 32          # hidden size      (stand-in for 768)
N_HEADS = 4
HEAD_DIM = H // N_HEADS
FFN = 64        # intermediate size
N_LAYERS = 2
VOCAB = 50
N_CLASSES = 3
PAD_CLS = 128   # lane-dense classifier output width (sliced to N_CLASSES in the wrapper)
LN_EPS = 1e-12


def _layernorm(x, g, b, eps=LN_EPS):
    mu = jnp.mean(x, axis=-1, keepdims=True)
    var = jnp.mean((x - mu) ** 2, axis=-1, keepdims=True)
    return (x - mu) * lax.rsqrt(var + eps) * g + b


# ---------------- the single fused Pallas kernel ---------------------------------
def _bert_fused_kernel(emb_ref, mask_ref,
                       embg_ref, embb_ref,
                       wqkv_ref, bqkv_ref, wo_ref, bo_ref,
                       ln1g_ref, ln1b_ref, w1_ref, b1_ref, w2_ref, b2_ref,
                       ln2g_ref, ln2b_ref,
                       wp_ref, bp_ref, wc_ref, bc_ref,
                       o_ref):
    # Activations flattened to (B*S, H) and kept resident for the whole network.
    x = emb_ref[...].reshape(B * S, H)
    neg = (mask_ref[...] - 1.0) * 1e9                      # (B, S): 0 attend, -1e9 pad

    x = _layernorm(x, embg_ref[...], embb_ref[...])        # embedding LayerNorm

    # TODO(synk): BERT-internal hidden/attention dropouts are eval-mode identity.
    for l in range(N_LAYERS):                              # static unroll (N_LAYERS=2)
        # Fused QKV projection: one bf16 MXU push, f32 accumulation.
        qkv = jnp.dot(x.astype(jnp.bfloat16), wqkv_ref[l],
                      preferred_element_type=jnp.float32) + bqkv_ref[l]
        q, k, v = qkv[:, 0:H], qkv[:, H:2 * H], qkv[:, 2 * H:3 * H]

        # TODO(synk): at BERT-base scale replace the static (batch, head) unroll with a
        # heads-as-batch dot_general / fori_loop to stay inside the 64-vreg budget.
        ctx_rows = []
        for b in range(B):
            row = slice(b * S, (b + 1) * S)
            neg_b = neg[b:b + 1, :]                        # (1, S) additive key bias
            heads = []
            for h in range(N_HEADS):
                col = slice(h * HEAD_DIM, (h + 1) * HEAD_DIM)
                qh, kh, vh = q[row, col], k[row, col], v[row, col]
                # 1/sqrt(HEAD_DIM) is folded into Wq at init time.
                s = jnp.dot(qh, kh.T, preferred_element_type=jnp.float32) + neg_b
                s = s - jnp.max(s, axis=-1, keepdims=True)
                p = jnp.exp(s)
                p = p * (1.0 / jnp.sum(p, axis=-1, keepdims=True))
                heads.append(jnp.dot(p, vh, preferred_element_type=jnp.float32))
            ctx_rows.append(jnp.concatenate(heads, axis=-1))
        ctx = jnp.concatenate(ctx_rows, axis=0)            # (B*S, H)

        attn = jnp.dot(ctx.astype(jnp.bfloat16), wo_ref[l],
                       preferred_element_type=jnp.float32) + bo_ref[l]
        x1 = _layernorm(x + attn, ln1g_ref[l], ln1b_ref[l])

        hmid = jax.nn.gelu(jnp.dot(x1.astype(jnp.bfloat16), w1_ref[l],
                                   preferred_element_type=jnp.float32) + b1_ref[l])
        ff = jnp.dot(hmid.astype(jnp.bfloat16), w2_ref[l],
                     preferred_element_type=jnp.float32) + b2_ref[l]
        x = _layernorm(x1 + ff, ln2g_ref[l], ln2b_ref[l])

    # Pooler over the [CLS] token (row 0 of every sequence) -- done inside the kernel.
    cls = x.reshape(B, S, H)[:, 0, :]                      # (B, H)
    pooled = jnp.tanh(jnp.dot(cls.astype(jnp.bfloat16), wp_ref[...],
                              preferred_element_type=jnp.float32) + bp_ref[...])
    # TODO(synk): head dropout (p=0.5) is eval-mode identity (PyTorch .eval() parity);
    # train-mode would need pltpu.prng_random_bits, which has no CPU/interpret lowering.
    logits = jnp.dot(pooled.astype(jnp.bfloat16), wc_ref[...],
                     preferred_element_type=jnp.float32) + bc_ref[...]
    o_ref[...] = jnp.maximum(logits, 0.0)                  # final ReLU, lane-dense store


# ---------------- parameter construction (deterministic, synthetic) --------------
def init_params(key):
    # TODO(synk): pretrained 'bert-base-cased' weights cannot be loaded here; a
    # miniature BERT with the same computation graph uses synthetic weights.
    def nrm(k, shape, scale=0.02):
        return (scale * jax.random.normal(k, shape)).astype(jnp.float32)

    keys = iter(jax.random.split(key, 64))
    scale = 1.0 / math.sqrt(HEAD_DIM)

    wqkv, bqkv, wo, bo = [], [], [], []
    ln1g, ln1b, w1, b1, w2, b2, ln2g, ln2b = [], [], [], [], [], [], [], []
    for _ in range(N_LAYERS):
        wq = nrm(next(keys), (H, H)) * scale               # fold 1/sqrt(d) into Wq
        wk = nrm(next(keys), (H, H))
        wv = nrm(next(keys), (H, H))
        wqkv.append(jnp.concatenate([wq, wk, wv], axis=1))  # (H, 3H)
        bqkv.append(jnp.zeros((1, 3 * H), jnp.float32))
        wo.append(nrm(next(keys), (H, H)))
        bo.append(jnp.zeros((1, H), jnp.float32))
        ln1g.append(jnp.ones((1, H), jnp.float32))
        ln1b.append(jnp.zeros((1, H), jnp.float32))
        w1.append(nrm(next(keys), (H, FFN)))
        b1.append(jnp.zeros((1, FFN), jnp.float32))
        w2.append(nrm(next(keys), (FFN, H)))
        b2.append(jnp.zeros((1, H), jnp.float32))
        ln2g.append(jnp.ones((1, H), jnp.float32))
        ln2b.append(jnp.zeros((1, H), jnp.float32))

    cls_w = nrm(next(keys), (H, N_CLASSES))
    cls_b = jnp.zeros((1, N_CLASSES), jnp.float32)

    return {
        "word_emb": nrm(next(keys), (VOCAB, H)),
        "pos_emb": nrm(next(keys), (S, H)),
        "type_emb": nrm(next(keys), (2, H)),
        "emb_ln_g": jnp.ones((1, H), jnp.float32),
        "emb_ln_b": jnp.zeros((1, H), jnp.float32),
        # matmul weights in bf16 (MXU-native); biases / LayerNorm params stay f32
        "wqkv": jnp.stack(wqkv).astype(jnp.bfloat16),       # (L, H, 3H)
        "bqkv": jnp.stack(bqkv),                            # (L, 1, 3H)
        "wo": jnp.stack(wo).astype(jnp.bfloat16),
        "bo": jnp.stack(bo),
        "ln1_g": jnp.stack(ln1g), "ln1_b": jnp.stack(ln1b),
        "w1": jnp.stack(w1).astype(jnp.bfloat16), "b1": jnp.stack(b1),
        "w2": jnp.stack(w2).astype(jnp.bfloat16), "b2": jnp.stack(b2),
        "ln2_g": jnp.stack(ln2g), "ln2_b": jnp.stack(ln2b),
        "pooler_w": nrm(next(keys), (H, H)).astype(jnp.bfloat16),
        "pooler_b": jnp.zeros((1, H), jnp.float32),
        # classifier padded to 128 output lanes -> unmasked lane-dense store
        "cls_w": jnp.pad(cls_w, ((0, 0), (0, PAD_CLS - N_CLASSES))).astype(jnp.bfloat16),
        "cls_b": jnp.pad(cls_b, ((0, 0), (0, PAD_CLS - N_CLASSES))),
    }


# ---------------- full forward (mirrors BertClassifier.forward) ------------------
def bert_classifier_forward(input_ids, attention_mask, params):
    Bx, Sx = input_ids.shape
    # embeddings: token + position + segment(0); gather stays in plain JAX
    emb = (params["word_emb"][input_ids]
           + params["pos_emb"][None, :Sx, :]
           + params["type_emb"][0][None, None, :]).astype(jnp.float32)
    mask = attention_mask.astype(jnp.float32)               # (B, S)

    operands = (
        emb, mask,
        params["emb_ln_g"], params["emb_ln_b"],
        params["wqkv"], params["bqkv"], params["wo"], params["bo"],
        params["ln1_g"], params["ln1_b"], params["w1"], params["b1"],
        params["w2"], params["b2"], params["ln2_g"], params["ln2_b"],
        params["pooler_w"], params["pooler_b"], params["cls_w"], params["cls_b"],
    )
    vmem = pl.BlockSpec(memory_space=pltpu.MemorySpace.VMEM)
    # Single fused, grid-less kernel: everything (weights + activations) is VMEM resident.
    # (At real BERT-base scale a 'parallel' batch/sequence grid axis + streamed bf16
    #  weights with an explicit vmem_limit_bytes would be reintroduced, esp. for v7x.)
    logits_padded = pl.pallas_call(
        _bert_fused_kernel,
        out_shape=jax.ShapeDtypeStruct((Bx, PAD_CLS), jnp.float32),
        in_specs=[vmem] * len(operands),
        out_specs=vmem,
    )(*operands)
    return logits_padded[:, :N_CLASSES]


if __name__ == "__main__":
    root = jax.random.PRNGKey(0)
    k_param, k_ids = jax.random.split(root)

    params = init_params(k_param)
    input_id = jax.random.randint(k_ids, (B, S), 0, VOCAB, dtype=jnp.int32)
    mask = jnp.array([[1, 1, 1, 1, 1, 1, 1, 1],
                      [1, 1, 1, 1, 1, 1, 0, 0]], dtype=jnp.int32)   # last 2 padded

    out = bert_classifier_forward(input_id, mask, params)
    out = jax.block_until_ready(out)
    assert out.shape == (B, N_CLASSES)
    assert bool(jnp.all(out >= 0.0))          # ReLU output is non-negative
    assert bool(jnp.all(jnp.isfinite(out)))
    print("KERNEL_OK")
</pallas_src>

<mosaic_0001>
module attributes {stable_mosaic.version = 11 : i64} {
  func.func @_bert_fused_kernel(%arg0: memref<2x8x32xf32, #tpu.memory_space<vmem>>, %arg1: memref<2x8xf32, #tpu.memory_space<vmem>>, %arg2: memref<1x32xf32, #tpu.memory_space<vmem>>, %arg3: memref<1x32xf32, #tpu.memory_space<vmem>>, %arg4: memref<2x32x96xbf16, #tpu.memory_space<vmem>>, %arg5: memref<2x1x96xf32, #tpu.memory_space<vmem>>, %arg6: memref<2x32x32xbf16, #tpu.memory_space<vmem>>, %arg7: memref<2x1x32xf32, #tpu.memory_space<vmem>>, %arg8: memref<2x1x32xf32, #tpu.memory_space<vmem>>, %arg9: memref<2x1x32xf32, #tpu.memory_space<vmem>>, %arg10: memref<2x32x64xbf16, #tpu.memory_space<vmem>>, %arg11: memref<2x1x64xf32, #tpu.memory_space<vmem>>, %arg12: memref<2x64x32xbf16, #tpu.memory_space<vmem>>, %arg13: memref<2x1x32xf32, #tpu.memory_space<vmem>>, %arg14: memref<2x1x32xf32, #tpu.memory_space<vmem>>, %arg15: memref<2x1x32xf32, #tpu.memory_space<vmem>>, %arg16: memref<32x32xbf16, #tpu.memory_space<vmem>>, %arg17: memref<1x32xf32, #tpu.memory_space<vmem>>, %arg18: memref<32x128xbf16, #tpu.memory_space<vmem>>, %arg19: memref<1x128xf32, #tpu.memory_space<vmem>>, %arg20: memref<2x128xf32, #tpu.memory_space<vmem>>) attributes {dimension_semantics = [], scalar_prefetch = 0 : i64, scratch_operands = 0 : i64, tpu.core_type = #tpu.core_type<tc>} {
    %c0 = arith.constant 0 : index
    %c0_0 = arith.constant 0 : index
    %c0_1 = arith.constant 0 : index
    %0 = vector.load %arg0[%c0, %c0_0, %c0_1] : memref<2x8x32xf32, #tpu.memory_space<vmem>>, vector<2x8x32xf32>
    %1 = vector.shape_cast %0 : vector<2x8x32xf32> to vector<16x32xf32>
    %c0_2 = arith.constant 0 : index
    %c0_3 = arith.constant 0 : index
    %2 = vector.load %arg1[%c0_2, %c0_3] : memref<2x8xf32, #tpu.memory_space<vmem>>, vector<2x8xf32>
    %cst = arith.constant 1.000000e+00 : f32
    %3 = vector.broadcast %cst : f32 to vector<2x8xf32>
    %4 = arith.subf %2, %3 : vector<2x8xf32>
    %cst_4 = arith.constant 1.000000e+09 : f32
    %5 = vector.broadcast %cst_4 : f32 to vector<2x8xf32>
    %6 = arith.mulf %4, %5 : vector<2x8xf32>
    %c0_5 = arith.constant 0 : index
    %c0_6 = arith.constant 0 : index
    %7 = vector.load %arg2[%c0_5, %c0_6] : memref<1x32xf32, #tpu.memory_space<vmem>>, vector<1x32xf32>
    %c0_7 = arith.constant 0 : index
    %c0_8 = arith.constant 0 : index
    %8 = vector.load %arg3[%c0_7, %c0_8] : memref<1x32xf32, #tpu.memory_space<vmem>>, vector<1x32xf32>
    %cst_9 = arith.constant dense<0.000000e+00> : vector<16xf32>
    %9 = vector.multi_reduction <add>, %1, %cst_9 [1] : vector<16x32xf32> to vector<16xf32>
    %10 = vector.shape_cast %9 : vector<16xf32> to vector<16x1xf32>
    %cst_10 = arith.constant 3.200000e+01 : f32
    %11 = vector.broadcast %cst_10 : f32 to vector<16x1xf32>
    %12 = arith.divf %10, %11 : vector<16x1xf32>
    %13 = vector.broadcast %12 : vector<16x1xf32> to vector<16x32xf32>
    %14 = arith.subf %1, %13 : vector<16x32xf32>
    %15 = arith.mulf %14, %14 : vector<16x32xf32>
    %cst_11 = arith.constant dense<0.000000e+00> : vector<16xf32>
    %16 = vector.multi_reduction <add>, %15, %cst_11 [1] : vector<16x32xf32> to vector<16xf32>
    %17 = vector.shape_cast %16 : vector<16xf32> to vector<16x1xf32>
    %cst_12 = arith.constant 3.200000e+01 : f32
    %18 = vector.broadcast %cst_12 : f32 to vector<16x1xf32>
    %19 = arith.divf %17, %18 : vector<16x1xf32>
    %20 = vector.broadcast %12 : vector<16x1xf32> to vector<16x32xf32>
    %21 = arith.subf %1, %20 : vector<16x32xf32>
    %cst_13 = arith.constant 9.99999996E-13 : f32
    %22 = vector.broadcast %cst_13 : f32 to vector<16x1xf32>
    %23 = arith.addf %19, %22 : vector<16x1xf32>
    %24 = math.rsqrt %23 : vector<16x1xf32>
    %25 = vector.broadcast %24 : vector<16x1xf32> to vector<16x32xf32>
    %26 = arith.mulf %21, %25 : vector<16x32xf32>
    %27 = vector.broadcast %7 : vector<1x32xf32> to vector<16x32xf32>
    %28 = arith.mulf %26, %27 : vector<16x32xf32>
    %29 = vector.broadcast %8 : vector<1x32xf32> to vector<16x32xf32>
    %30 = arith.addf %28, %29 : vector<16x32xf32>
    %31 = arith.truncf %30 : vector<16x32xf32> to vector<16x32xbf16>
    %c0_14 = arith.constant 0 : index
    %c0_15 = arith.constant 0 : index
    %c0_16 = arith.constant 0 : index
    %32 = vector.load %arg4[%c0_14, %c0_15, %c0_16] : memref<2x32x96xbf16, #tpu.memory_space<vmem>>, vector<1x32x96xbf16>
    %33 = vector.shape_cast %32 : vector<1x32x96xbf16> to vector<32x96xbf16>
    %cst_17 = arith.constant dense<0.000000e+00> : vector<16x96xf32>
    %34 = tpu.matmul %31, %33, %cst_17 {dimension_numbers = #tpu.dot_dimension_numbers<[1], [0], [0], [1], [0, 0, 1, 1], [], []>} : vector<16x32xbf16>, vector<32x96xbf16>, vector<16x96xf32> -> vector<16x96xf32>
    %c0_18 = arith.constant 0 : index
    %c0_19 = arith.constant 0 : index
    %c0_20 = arith.constant 0 : index
    %35 = vector.load %arg5[%c0_18, %c0_19, %c0_20] : memref<2x1x96xf32, #tpu.memory_space<vmem>>, vector<1x1x96xf32>
    %36 = vector.shape_cast %35 : vector<1x1x96xf32> to vector<1x96xf32>
    %37 = vector.broadcast %36 : vector<1x96xf32> to vector<16x96xf32>
    %38 = arith.addf %34, %37 : vector<16x96xf32>
    %39 = vector.extract_strided_slice %38 {offsets = [0, 0], sizes = [16, 32], strides = [1, 1]} : vector<16x96xf32> to vector<16x32xf32>
    %40 = vector.extract_strided_slice %38 {offsets = [0, 32], sizes = [16, 32], strides = [1, 1]} : vector<16x96xf32> to vector<16x32xf32>
    %41 = vector.extract_strided_slice %38 {offsets = [0, 64], sizes = [16, 32], strides = [1, 1]} : vector<16x96xf32> to vector<16x32xf32>
    %42 = vector.extract_strided_slice %6 {offsets = [0, 0], sizes = [1, 8], strides = [1, 1]} : vector<2x8xf32> to vector<1x8xf32>
    %43 = vector.extract_strided_slice %39 {offsets = [0, 0], sizes = [8, 8], strides = [1, 1]} : vector<16x32xf32> to vector<8x8xf32>
    %44 = vector.extract_strided_slice %40 {offsets = [0, 0], sizes = [8, 8], strides = [1, 1]} : vector<16x32xf32> to vector<8x8xf32>
    %45 = vector.extract_strided_slice %41 {offsets = [0, 0], sizes = [8, 8], strides = [1, 1]} : vector<16x32xf32> to vector<8x8xf32>
    %46 = tpu.transpose %44, [1, 0] : vector<8x8xf32> -> vector<8x8xf32>
    %cst_21 = arith.constant dense<0.000000e+00> : vector<8x8xf32>
    %47 = tpu.matmul %43, %46, %cst_21 {dimension_numbers = #tpu.dot_dimension_numbers<[1], [0], [0], [1], [0, 0, 1, 1], [], []>} : vector<8x8xf32>, vector<8x8xf32>, vector<8x8xf32> -> vector<8x8xf32>
    %48 = vector.broadcast %42 : vector<1x8xf32> to vector<8x8xf32>
    %49 = arith.addf %47, %48 : vector<8x8xf32>
    %cst_22 = arith.constant dense<0xFF800000> : vector<8xf32>
    %50 = vector.multi_reduction <maximumf>, %49, %cst_22 [1] : vector<8x8xf32> to vector<8xf32>
    %51 = vector.shape_cast %50 : vector<8xf32> to vector<8x1xf32>
    %52 = vector.broadcast %51 : vector<8x1xf32> to vector<8x8xf32>
    %53 = arith.subf %49, %52 : vector<8x8xf32>
    %54 = math.exp %53 : vector<8x8xf32>
    %cst_23 = arith.constant dense<0.000000e+00> : vector<8xf32>
    %55 = vector.multi_reduction <add>, %54, %cst_23 [1] : vector<8x8xf32> to vector<8xf32>
    %56 = vector.shape_cast %55 : vector<8xf32> to vector<8x1xf32>
    %cst_24 = arith.constant 1.000000e+00 : f32
    %57 = vector.broadcast %cst_24 : f32 to vector<8x1xf32>
    %58 = arith.divf %57, %56 : vector<8x1xf32>
    %59 = vector.broadcast %58 : vector<8x1xf32> to vector<8x8xf32>
    %60 = arith.mulf %54, %59 : vector<8x8xf32>
    %cst_25 = arith.constant dense<0.000000e+00> : vector<8x8xf32>
    %61 = tpu.matmul %60, %45, %cst_25 {dimension_numbers = #tpu.dot_dimension_numbers<[1], [0], [0], [1], [0, 0, 1, 1], [], []>} : vector<8x8xf32>, vector<8x8xf32>, vector<8x8xf32> -> vector<8x8xf32>
    %62 = vector.extract_strided_slice %39 {offsets = [0, 8], sizes = [8, 8], strides = [1, 1]} : vector<16x32xf32> to vector<8x8xf32>
    %63 = vector.extract_strided_slice %40 {offsets = [0, 8], sizes = [8, 8], strides = [1, 1]} : vector<16x32xf32> to vector<8x8xf32>
    %64 = vector.extract_strided_slice %41 {offsets = [0, 8], sizes = [8, 8], strides = [1, 1]} : vector<16x32xf32> to vector<8x8xf32>
    %65 = tpu.transpose %63, [1, 0] : vector<8x8xf32> -> vector<8x8xf32>
    %cst_26 = arith.constant dense<0.000000e+00> : vector<8x8xf32>
    %66 = tpu.matmul %62, %65, %cst_26 {dimension_numbers = #tpu.dot_dimension_numbers<[1], [0], [0], [1], [0, 0, 1, 1], [], []>} : vector<8x8xf32>, vector<8x8xf32>, vector<8x8xf32> -> vector<8x8xf32>
    %67 = vector.broadcast %42 : vector<1x8xf32> to vector<8x8xf32>
    %68 = arith.addf %66, %67 : vector<8x8xf32>
    %cst_27 = arith.constant dense<0xFF800000> : vector<8xf32>
    %69 = vector.multi_reduction <maximumf>, %68, %cst_27 [1] : vector<8x8xf32> to vector<8xf32>
    %70 = vector.shape_cast %69 : vector<8xf32> to vector<8x1xf32>
    %71 = vector.broadcast %70 : vector<8x1xf32> to vector<8x8xf32>
    %72 = arith.subf %68, %71 : vector<8x8xf32>
    %73 = math.exp %72 : vector<8x8xf32>
    %cst_28 = arith.constant dense<0.000000e+00> : vector<8xf32>
    %74 = vector.multi_reduction <add>, %73, %cst_28 [1] : vector<8x8xf32> to vector<8xf32>
    %75 = vector.shape_cast %74 : vector<8xf32> to vector<8x1xf32>
    %cst_29 = arith.constant 1.000000e+00 : f32
    %76 = vector.broadcast %cst_29 : f32 to vector<8x1xf32>
    %77 = arith.divf %76, %75 : vector<8x1xf32>
    %78 = vector.broadcast %77 : vector<8x1xf32> to vector<8x8xf32>
    %79 = arith.mulf %73, %78 : vector<8x8xf32>
    %cst_30 = arith.constant dense<0.000000e+00> : vector<8x8xf32>
    %80 = tpu.matmul %79, %64, %cst_30 {dimension_numbers = #tpu.dot_dimension_numbers<[1], [0], [0], [1], [0, 0, 1, 1], [], []>} : vector<8x8xf32>, vector<8x8xf32>, vector<8x8xf32> -> vector<8x8xf32>
    %81 = vector.extract_strided_slice %39 {offsets = [0, 16], sizes = [8, 8], strides = [1, 1]} : vector<16x32xf32> to vector<8x8xf32>
    %82 = vector.extract_strided_slice %40 {offsets = [0, 16], sizes = [8, 8], strides = [1, 1]} : vector<16x32xf32> to vector<8x8xf32>
    %83 = vector.extract_strided_slice %41 {offsets = [0, 16], sizes = [8, 8], strides = [1, 1]} : vector<16x32xf32> to vector<8x8xf32>
    %84 = tpu.transpose %82, [1, 0] : vector<8x8xf32> -> vector<8x8xf32>
    %cst_31 = arith.constant dense<0.000000e+00> : vector<8x8xf32>
    %85 = tpu.matmul %81, %84, %cst_31 {dimension_numbers = #tpu.dot_dimension_numbers<[1], [0], [0], [1], [0, 0, 1, 1], [], []>} : vector<8x8xf32>, vector<8x8xf32>, vector<8x8xf32> -> vector<8x8xf32>
    %86 = vector.broadcast %42 : vector<1x8xf32> to vector<8x8xf32>
    %87 = arith.addf %85, %86 : vector<8x8xf32>
    %cst_32 = arith.constant dense<0xFF800000> : vector<8xf32>
    %88 = vector.multi_reduction <maximumf>, %87, %cst_32 [1] : vector<8x8xf32> to vector<8xf32>
    %89 = vector.shape_cast %88 : vector<8xf32> to vector<8x1xf32>
    %90 = vector.broadcast %89 : vector<8x1xf32> to vector<8x8xf32>
    %91 = arith.subf %87, %90 : vector<8x8xf32>
    %92 = math.exp %91 : vector<8x8xf32>
    %cst_33 = arith.constant dense<0.000000e+00> : vector<8xf32>
    %93 = vector.multi_reduction <add>, %92, %cst_33 [1] : vector<8x8xf32> to vector<8xf32>
    %94 = vector.shape_cast %93 : vector<8xf32> to vector<8x1xf32>
    %cst_34 = arith.constant 1.000000e+00 : f32
    %95 = vector.broadcast %cst_34 : f32 to vector<8x1xf32>
    %96 = arith.divf %95, %94 : vector<8x1xf32>
    %97 = vector.broadcast %96 : vector<8x1xf32> to vector<8x8xf32>
    %98 = arith.mulf %92, %97 : vector<8x8xf32>
    %cst_35 = arith.constant dense<0.000000e+00> : vector<8x8xf32>
    %99 = tpu.matmul %98, %83, %cst_35 {dimension_numbers = #tpu.dot_dimension_numbers<[1], [0], [0], [1], [0, 0, 1, 1], [], []>} : vector<8x8xf32>, vector<8x8xf32>, vector<8x8xf32> -> vector<8x8xf32>
    %100 = vector.extract_strided_slice %39 {offsets = [0, 24], sizes = [8, 8], strides = [1, 1]} : vector<16x32xf32> to vector<8x8xf32>
    %101 = vector.extract_strided_slice %40 {offsets = [0, 24], sizes = [8, 8], strides = [1, 1]} : vector<16x32xf32> to vector<8x8xf32>
    %102 = vector.extract_strided_slice %41 {offsets = [0, 24], sizes = [8, 8], strides = [1, 1]} : vector<16x32xf32> to vector<8x8xf32>
    %103 = tpu.transpose %101, [1, 0] : vector<8x8xf32> -> vector<8x8xf32>
    %cst_36 = arith.constant dense<0.000000e+00> : vector<8x8xf32>
    %104 = tpu.matmul %100, %103, %cst_36 {dimension_numbers = #tpu.dot_dimension_numbers<[1], [0], [0], [1], [0, 0, 1, 1], [], []>} : vector<8x8xf32>, vector<8x8xf32>, vector<8x8xf32> -> vector<8x8xf32>
    %105 = vector.broadcast %42 : vector<1x8xf32> to vector<8x8xf32>
    %106 = arith.addf %104, %105 : vector<8x8xf32>
    %cst_37 = arith.constant dense<0xFF800000> : vector<8xf32>
    %107 = vector.multi_reduction <maximumf>, %106, %cst_37 [1] : vector<8x8xf32> to vector<8xf32>
    %108 = vector.shape_cast %107 : vector<8xf32> to vector<8x1xf32>
    %109 = vector.broadcast %108 : vector<8x1xf32> to vector<8x8xf32>
    %110 = arith.subf %106, %109 : vector<8x8xf32>
    %111 = math.exp %110 : vector<8x8xf32>
    %cst_38 = arith.constant dense<0.000000e+00> : vector<8xf32>
    %112 = vector.multi_reduction <add>, %111, %cst_38 [1] : vector<8x8xf32> to vector<8xf32>
    %113 = vector.shape_cast %112 : vector<8xf32> to vector<8x1xf32>
    %cst_39 = arith.constant 1.000000e+00 : f32
    %114 = vector.broadcast %cst_39 : f32 to vector<8x1xf32>
    %115 = arith.divf %114, %113 : vector<8x1xf32>
    %116 = vector.broadcast %115 : vector<8x1xf32> to vector<8x8xf32>
    %117 = arith.mulf %111, %116 : vector<8x8xf32>
    %cst_40 = arith.constant dense<0.000000e+00> : vector<8x8xf32>
    %118 = tpu.matmul %117, %102, %cst_40 {dimension_numbers = #tpu.dot_dimension_numbers<[1], [0], [0], [1], [0, 0, 1, 1], [], []>} : vector<8x8xf32>, vector<8x8xf32>, vector<8x8xf32> -> vector<8x8xf32>
    %119 = tpu.concatenate %61, %80, %99, %118 in 1 : vector<8x8xf32>, vector<8x8xf32>, vector<8x8xf32>, vector<8x8xf32> -> vector<8x32xf32>
    %120 = vector.extract_strided_slice %6 {offsets = [1, 0], sizes = [1, 8], strides = [1, 1]} : vector<2x8xf32> to vector<1x8xf32>
    %121 = vector.extract_strided_slice %39 {offsets = [8, 0], sizes = [8, 8], strides = [1, 1]} : vector<16x32xf32> to vector<8x8xf32>
    %122 = vector.extract_strided_slice %40 {offsets = [8, 0], sizes = [8, 8], strides = [1, 1]} : vector<16x32xf32> to vector<8x8xf32>
    %123 = vector.extract_strided_slice %41 {offsets = [8, 0], sizes = [8, 8], strides = [1, 1]} : vector<16x32xf32> to vector<8x8xf32>
    %124 = tpu.transpose %122, [1, 0] : vector<8x8xf32> -> vector<8x8xf32>
    %cst_41 = arith.constant dense<0.000000e+00> : vector<8x8xf32>
    %125 = tpu.matmul %121, %124, %cst_41 {dimension_numbers = #tpu.dot_dimension_numbers<[1], [0], [0], [1], [0, 0, 1, 1], [], []>} : vector<8x8xf32>, vector<8x8xf32>, vector<8x8xf32> -> vector<8x8xf32>
    %126 = vector.broadcast %120 : vector<1x8xf32> to vector<8x8xf32>
    %127 = arith.addf %125, %126 : vector<8x8xf32>
    %cst_42 = arith.constant dense<0xFF800000> : vector<8xf32>
    %128 = vector.multi_reduction <maximumf>, %127, %cst_42 [1] : vector<8x8xf32> to vector<8xf32>
    %129 = vector.shape_cast %128 : vector<8xf32> to vector<8x1xf32>
    %130 = vector.broadcast %129 : vector<8x1xf32> to vector<8x8xf32>
    %131 = arith.subf %127, %130 : vector<8x8xf32>
    %132 = math.exp %131 : vector<8x8xf32>
    %cst_43 = arith.constant dense<0.000000e+00> : vector<8xf32>
    %133 = vector.multi_reduction <add>, %132, %cst_43 [1] : vector<8x8xf32> to vector<8xf32>
    %134 = vector.shape_cast %133 : vector<8xf32> to vector<8x1xf32>
    %cst_44 = arith.constant 1.000000e+00 : f32
    %135 = vector.broadcast %cst_44 : f32 to vector<8x1xf32>
    %136 = arith.divf %135, %134 : vector<8x1xf32>
    %137 = vector.broadcast %136 : vector<8x1xf32> to vector<8x8xf32>
    %138 = arith.mulf %132, %137 : vector<8x8xf32>
    %cst_45 = arith.constant dense<0.000000e+00> : vector<8x8xf32>
    %139 = tpu.matmul %138, %123, %cst_45 {dimension_numbers = #tpu.dot_dimension_numbers<[1], [0], [0], [1], [0, 0, 1, 1], [], []>} : vector<8x8xf32>, vector<8x8xf32>, vector<8x8xf32> -> vector<8x8xf32>
    %140 = vector.extract_strided_slice %39 {offsets = [8, 8], sizes = [8, 8], strides = [1, 1]} : vector<16x32xf32> to vector<8x8xf32>
    %141 = vector.extract_strided_slice %40 {offsets = [8, 8], sizes = [8, 8], strides = [1, 1]} : vector<16x32xf32> to vector<8x8xf32>
    %142 = vector.extract_strided_slice %41 {offsets = [8, 8], sizes = [8, 8], strides = [1, 1]} : vector<16x32xf32> to vector<8x8xf32>
    %143 = tpu.transpose %141, [1, 0] : vector<8x8xf32> -> vector<8x8xf32>
    %cst_46 = arith.constant dense<0.000000e+00> : vector<8x8xf32>
    %144 = tpu.matmul %140, %143, %cst_46 {dimension_numbers = #tpu.dot_dimension_numbers<[1], [0], [0], [1], [0, 0, 1, 1], [], []>} : vector<8x8xf32>, vector<8x8xf32>, vector<8x8xf32> -> vector<8x8xf32>
    %145 = vector.broadcast %120 : vector<1x8xf32> to vector<8x8xf32>
    %146 = arith.addf %144, %145 : vector<8x8xf32>
    %cst_47 = arith.constant dense<0xFF800000> : vector<8xf32>
    %147 = vector.multi_reduction <maximumf>, %146, %cst_47 [1] : vector<8x8xf32> to vector<8xf32>
    %148 = vector.shape_cast %147 : vector<8xf32> to vector<8x1xf32>
    %149 = vector.broadcast %148 : vector<8x1xf32> to vector<8x8xf32>
    %150 = arith.subf %146, %149 : vector<8x8xf32>
    %151 = math.exp %150 : vector<8x8xf32>
    %cst_48 = arith.constant dense<0.000000e+00> : vector<8xf32>
    %152 = vector.multi_reduction <add>, %151, %cst_48 [1] : vector<8x8xf32> to vector<8xf32>
    %153 = vector.shape_cast %152 : vector<8xf32> to vector<8x1xf32>
    %cst_49 = arith.constant 1.000000e+00 : f32
    %154 = vector.broadcast %cst_49 : f32 to vector<8x1xf32>
    %155 = arith.divf %154, %153 : vector<8x1xf32>
    %156 = vector.broadcast %155 : vector<8x1xf32> to vector<8x8xf32>
    %157 = arith.mulf %151, %156 : vector<8x8xf32>
    %cst_50 = arith.constant dense<0.000000e+00> : vector<8x8xf32>
    %158 = tpu.matmul %157, %142, %cst_50 {dimension_numbers = #tpu.dot_dimension_numbers<[1], [0], [0], [1], [0, 0, 1, 1], [], []>} : vector<8x8xf32>, vector<8x8xf32>, vector<8x8xf32> -> vector<8x8xf32>
    %159 = vector.extract_strided_slice %39 {offsets = [8, 16], sizes = [8, 8], strides = [1, 1]} : vector<16x32xf32> to vector<8x8xf32>
    %160 = vector.extract_strided_slice %40 {offsets = [8, 16], sizes = [8, 8], strides = [1, 1]} : vector<16x32xf32> to vector<8x8xf32>
    %161 = vector.extract_strided_slice %41 {offsets = [8, 16], sizes = [8, 8], strides = [1, 1]} : vector<16x32xf32> to vector<8x8xf32>
    %162 = tpu.transpose %160, [1, 0] : vector<8x8xf32> -> vector<8x8xf32>
    %cst_51 = arith.constant dense<0.000000e+00> : vector<8x8xf32>
    %163 = tpu.matmul %159, %162, %cst_51 {dimension_numbers = #tpu.dot_dimension_numbers<[1], [0], [0], [1], [0, 0, 1, 1], [], []>} : vector<8x8xf32>, vector<8x8xf32>, vector<8x8xf32> -> vector<8x8xf32>
    %164 = vector.broadcast %120 : vector<1x8xf32> to vector<8x8xf32>
    %165 = arith.addf %163, %164 : vector<8x8xf32>
    %cst_52 = arith.constant dense<0xFF800000> : vector<8xf32>
    %166 = vector.multi_reduction <maximumf>, %165, %cst_52 [1] : vector<8x8xf32> to vector<8xf32>
    %167 = vector.shape_cast %166 : vector<8xf32> to vector<8x1xf32>
    %168 = vector.broadcast %167 : vector<8x1xf32> to vector<8x8xf32>
    %169 = arith.subf %165, %168 : vector<8x8xf32>
    %170 = math.exp %169 : vector<8x8xf32>
    %cst_53 = arith.constant dense<0.000000e+00> : vector<8xf32>
    %171 = vector.multi_reduction <add>, %170, %cst_53 [1] : vector<8x8xf32> to vector<8xf32>
    %172 = vector.shape_cast %171 : vector<8xf32> to vector<8x1xf32>
    %cst_54 = arith.constant 1.000000e+00 : f32
    %173 = vector.broadcast %cst_54 : f32 to vector<8x1xf32>
    %174 = arith.divf %173, %172 : vector<8x1xf32>
    %175 = vector.broadcast %174 : vector<8x1xf32> to vector<8x8xf32>
    %176 = arith.mulf %170, %175 : vector<8x8xf32>
    %cst_55 = arith.constant dense<0.000000e+00> : vector<8x8xf32>
    %177 = tpu.matmul %176, %161, %cst_55 {dimension_numbers = #tpu.dot_dimension_numbers<[1], [0], [0], [1], [0, 0, 1, 1], [], []>} : vector<8x8xf32>, vector<8x8xf32>, vector<8x8xf32> -> vector<8x8xf32>
    %178 = vector.extract_strided_slice %39 {offsets = [8, 24], sizes = [8, 8], strides = [1, 1]} : vector<16x32xf32> to vector<8x8xf32>
    %179 = vector.extract_strided_slice %40 {offsets = [8, 24], sizes = [8, 8], strides = [1, 1]} : vector<16x32xf32> to vector<8x8xf32>
    %180 = vector.extract_strided_slice %41 {offsets = [8, 24], sizes = [8, 8], strides = [1, 1]} : vector<16x32xf32> to vector<8x8xf32>
    %181 = tpu.transpose %179, [1, 0] : vector<8x8xf32> -> vector<8x8xf32>
    %cst_56 = arith.constant dense<0.000000e+00> : vector<8x8xf32>
    %182 = tpu.matmul %178, %181, %cst_56 {dimension_numbers = #tpu.dot_dimension_numbers<[1], [0], [0], [1], [0, 0, 1, 1], [], []>} : vector<8x8xf32>, vector<8x8xf32>, vector<8x8xf32> -> vector<8x8xf32>
    %183 = vector.broadcast %120 : vector<1x8xf32> to vector<8x8xf32>
    %184 = arith.addf %182, %183 : vector<8x8xf32>
    %cst_57 = arith.constant dense<0xFF800000> : vector<8xf32>
    %185 = vector.multi_reduction <maximumf>, %184, %cst_57 [1] : vector<8x8xf32> to vector<8xf32>
    %186 = vector.shape_cast %185 : vector<8xf32> to vector<8x1xf32>
    %187 = vector.broadcast %186 : vector<8x1xf32> to vector<8x8xf32>
    %188 = arith.subf %184, %187 : vector<8x8xf32>
    %189 = math.exp %188 : vector<8x8xf32>
    %cst_58 = arith.constant dense<0.000000e+00> : vector<8xf32>
    %190 = vector.multi_reduction <add>, %189, %cst_58 [1] : vector<8x8xf32> to vector<8xf32>
    %191 = vector.shape_cast %190 : vector<8xf32> to vector<8x1xf32>
    %cst_59 = arith.constant 1.000000e+00 : f32
    %192 = vector.broadcast %cst_59 : f32 to vector<8x1xf32>
    %193 = arith.divf %192, %191 : vector<8x1xf32>
    %194 = vector.broadcast %193 : vector<8x1xf32> to vector<8x8xf32>
    %195 = arith.mulf %189, %194 : vector<8x8xf32>
    %cst_60 = arith.constant dense<0.000000e+00> : vector<8x8xf32>
    %196 = tpu.matmul %195, %180, %cst_60 {dimension_numbers = #tpu.dot_dimension_numbers<[1], [0], [0], [1], [0, 0, 1, 1], [], []>} : vector<8x8xf32>, vector<8x8xf32>, vector<8x8xf32> -> vector<8x8xf32>
    %197 = tpu.concatenate %139, %158, %177, %196 in 1 : vector<8x8xf32>, vector<8x8xf32>, vector<8x8xf32>, vector<8x8xf32> -> vector<8x32xf32>
    %198 = tpu.concatenate %119, %197 in 0 : vector<8x32xf32>, vector<8x32xf32> -> vector<16x32xf32>
    %199 = arith.truncf %198 : vector<16x32xf32> to vector<16x32xbf16>
    %c0_61 = arith.constant 0 : index
    %c0_62 = arith.constant 0 : index
    %c0_63 = arith.constant 0 : index
    %200 = vector.load %arg6[%c0_61, %c0_62, %c0_63] : memref<2x32x32xbf16, #tpu.memory_space<vmem>>, vector<1x32x32xbf16>
    %201 = vector.shape_cast %200 : vector<1x32x32xbf16> to vector<32x32xbf16>
    %cst_64 = arith.constant dense<0.000000e+00> : vector<16x32xf32>
    %202 = tpu.matmul %199, %201, %cst_64 {dimension_numbers = #tpu.dot_dimension_numbers<[1], [0], [0], [1], [0, 0, 1, 1], [], []>} : vector<16x32xbf16>, vector<32x32xbf16>, vector<16x32xf32> -> vector<16x32xf32>
    %c0_65 = arith.constant 0 : index
    %c0_66 = arith.constant 0 : index
    %c0_67 = arith.constant 0 : index
    %203 = vector.load %arg7[%c0_65, %c0_66, %c0_67] : memref<2x1x32xf32, #tpu.memory_space<vmem>>, vector<1x1x32xf32>
    %204 = vector.shape_cast %203 : vector<1x1x32xf32> to vector<1x32xf32>
    %205 = vector.broadcast %204 : vector<1x32xf32> to vector<16x32xf32>
    %206 = arith.addf %202, %205 : vector<16x32xf32>
    %207 = arith.addf %30, %206 : vector<16x32xf32>
    %c0_68 = arith.constant 0 : index
    %c0_69 = arith.constant 0 : index
    %c0_70 = arith.constant 0 : index
    %208 = vector.load %arg8[%c0_68, %c0_69, %c0_70] : memref<2x1x32xf32, #tpu.memory_space<vmem>>, vector<1x1x32xf32>
    %209 = vector.shape_cast %208 : vector<1x1x32xf32> to vector<1x32xf32>
    %c0_71 = arith.constant 0 : index
    %c0_72 = arith.constant 0 : index
    %c0_73 = arith.constant 0 : index
    %210 = vector.load %arg9[%c0_71, %c0_72, %c0_73] : memref<2x1x32xf32, #tpu.memory_space<vmem>>, vector<1x1x32xf32>
    %211 = vector.shape_cast %210 : vector<1x1x32xf32> to vector<1x32xf32>
    %cst_74 = arith.constant dense<0.000000e+00> : vector<16xf32>
    %212 = vector.multi_reduction <add>, %207, %cst_74 [1] : vector<16x32xf32> to vector<16xf32>
    %213 = vector.shape_cast %212 : vector<16xf32> to vector<16x1xf32>
    %cst_75 = arith.constant 3.200000e+01 : f32
    %214 = vector.broadcast %cst_75 : f32 to vector<16x1xf32>
    %215 = arith.divf %213, %214 : vector<16x1xf32>
    %216 = vector.broadcast %215 : vector<16x1xf32> to vector<16x32xf32>
    %217 = arith.subf %207, %216 : vector<16x32xf32>
    %218 = arith.mulf %217, %217 : vector<16x32xf32>
    %cst_76 = arith.constant dense<0.000000e+00> : vector<16xf32>
    %219 = vector.multi_reduction <add>, %218, %cst_76 [1] : vector<16x32xf32> to vector<16xf32>
    %220 = vector.shape_cast %219 : vector<16xf32> to vector<16x1xf32>
    %cst_77 = arith.constant 3.200000e+01 : f32
    %221 = vector.broadcast %cst_77 : f32 to vector<16x1xf32>
    %222 = arith.divf %220, %221 : vector<16x1xf32>
    %223 = vector.broadcast %215 : vector<16x1xf32> to vector<16x32xf32>
    %224 = arith.subf %207, %223 : vector<16x32xf32>
    %cst_78 = arith.constant 9.99999996E-13 : f32
    %225 = vector.broadcast %cst_78 : f32 to vector<16x1xf32>
    %226 = arith.addf %222, %225 : vector<16x1xf32>
    %227 = math.rsqrt %226 : vector<16x1xf32>
    %228 = vector.broadcast %227 : vector<16x1xf32> to vector<16x32xf32>
    %229 = arith.mulf %224, %228 : vector<16x32xf32>
    %230 = vector.broadcast %209 : vector<1x32xf32> to vector<16x32xf32>
    %231 = arith.mulf %229, %230 : vector<16x32xf32>
    %232 = vector.broadcast %211 : vector<1x32xf32> to vector<16x32xf32>
    %233 = arith.addf %231, %232 : vector<16x32xf32>
    %234 = arith.truncf %233 : vector<16x32xf32> to vector<16x32xbf16>
    %c0_79 = arith.constant 0 : index
    %c0_80 = arith.constant 0 : index
    %c0_81 = arith.constant 0 : index
    %235 = vector.load %arg10[%c0_79, %c0_80, %c0_81] : memref<2x32x64xbf16, #tpu.memory_space<vmem>>, vector<1x32x64xbf16>
    %236 = vector.shape_cast %235 : vector<1x32x64xbf16> to vector<32x64xbf16>
    %cst_82 = arith.constant dense<0.000000e+00> : vector<16x64xf32>
    %237 = tpu.matmul %234, %236, %cst_82 {dimension_numbers = #tpu.dot_dimension_numbers<[1], [0], [0], [1], [0, 0, 1, 1], [], []>} : vector<16x32xbf16>, vector<32x64xbf16>, vector<16x64xf32> -> vector<16x64xf32>
    %c0_83 = arith.constant 0 : index
    %c0_84 = arith.constant 0 : index
    %c0_85 = arith.constant 0 : index
    %238 = vector.load %arg11[%c0_83, %c0_84, %c0_85] : memref<2x1x64xf32, #tpu.memory_space<vmem>>, vector<1x1x64xf32>
    %239 = vector.shape_cast %238 : vector<1x1x64xf32> to vector<1x64xf32>
    %240 = vector.broadcast %239 : vector<1x64xf32> to vector<16x64xf32>
    %241 = arith.addf %237, %240 : vector<16x64xf32>
    %242 = arith.mulf %241, %241 : vector<16x64xf32>
    %243 = arith.mulf %241, %242 : vector<16x64xf32>
    %cst_86 = arith.constant 4.471500e-02 : f32
    %244 = vector.broadcast %cst_86 : f32 to vector<16x64xf32>
    %245 = arith.mulf %244, %243 : vector<16x64xf32>
    %246 = arith.addf %241, %245 : vector<16x64xf32>
    %cst_87 = arith.constant 0.797884583 : f32
    %247 = vector.broadcast %cst_87 : f32 to vector<16x64xf32>
    %248 = arith.mulf %247, %246 : vector<16x64xf32>
    %249 = math.tanh %248 : vector<16x64xf32>
    %cst_88 = arith.constant 1.000000e+00 : f32
    %250 = vector.broadcast %cst_88 : f32 to vector<16x64xf32>
    %251 = arith.addf %250, %249 : vector<16x64xf32>
    %cst_89 = arith.constant 5.000000e-01 : f32
    %252 = vector.broadcast %cst_89 : f32 to vector<16x64xf32>
    %253 = arith.mulf %252, %251 : vector<16x64xf32>
    %254 = arith.mulf %241, %253 : vector<16x64xf32>
    %255 = arith.truncf %254 : vector<16x64xf32> to vector<16x64xbf16>
    %c0_90 = arith.constant 0 : index
    %c0_91 = arith.constant 0 : index
    %c0_92 = arith.constant 0 : index
    %256 = vector.load %arg12[%c0_90, %c0_91, %c0_92] : memref<2x64x32xbf16, #tpu.memory_space<vmem>>, vector<1x64x32xbf16>
    %257 = vector.shape_cast %256 : vector<1x64x32xbf16> to vector<64x32xbf16>
    %cst_93 = arith.constant dense<0.000000e+00> : vector<16x32xf32>
    %258 = tpu.matmul %255, %257, %cst_93 {dimension_numbers = #tpu.dot_dimension_numbers<[1], [0], [0], [1], [0, 0, 1, 1], [], []>} : vector<16x64xbf16>, vector<64x32xbf16>, vector<16x32xf32> -> vector<16x32xf32>
    %c0_94 = arith.constant 0 : index
    %c0_95 = arith.constant 0 : index
    %c0_96 = arith.constant 0 : index
    %259 = vector.load %arg13[%c0_94, %c0_95, %c0_96] : memref<2x1x32xf32, #tpu.memory_space<vmem>>, vector<1x1x32xf32>
    %260 = vector.shape_cast %259 : vector<1x1x32xf32> to vector<1x32xf32>
    %261 = vector.broadcast %260 : vector<1x32xf32> to vector<16x32xf32>
    %262 = arith.addf %258, %261 : vector<16x32xf32>
    %263 = arith.addf %233, %262 : vector<16x32xf32>
    %c0_97 = arith.constant 0 : index
    %c0_98 = arith.constant 0 : index
    %c0_99 = arith.constant 0 : index
    %264 = vector.load %arg14[%c0_97, %c0_98, %c0_99] : memref<2x1x32xf32, #tpu.memory_space<vmem>>, vector<1x1x32xf32>
    %265 = vector.shape_cast %264 : vector<1x1x32xf32> to vector<1x32xf32>
    %c0_100 = arith.constant 0 : index
    %c0_101 = arith.constant 0 : index
    %c0_102 = arith.constant 0 : index
    %266 = vector.load %arg15[%c0_100, %c0_101, %c0_102] : memref<2x1x32xf32, #tpu.memory_space<vmem>>, vector<1x1x32xf32>
    %267 = vector.shape_cast %266 : vector<1x1x32xf32> to vector<1x32xf32>
    %cst_103 = arith.constant dense<0.000000e+00> : vector<16xf32>
    %268 = vector.multi_reduction <add>, %263, %cst_103 [1] : vector<16x32xf32> to vector<16xf32>
    %269 = vector.shape_cast %268 : vector<16xf32> to vector<16x1xf32>
    %cst_104 = arith.constant 3.200000e+01 : f32
    %270 = vector.broadcast %cst_104 : f32 to vector<16x1xf32>
    %271 = arith.divf %269, %270 : vector<16x1xf32>
    %272 = vector.broadcast %271 : vector<16x1xf32> to vector<16x32xf32>
    %273 = arith.subf %263, %272 : vector<16x32xf32>
    %274 = arith.mulf %273, %273 : vector<16x32xf32>
    %cst_105 = arith.constant dense<0.000000e+00> : vector<16xf32>
    %275 = vector.multi_reduction <add>, %274, %cst_105 [1] : vector<16x32xf32> to vector<16xf32>
    %276 = vector.shape_cast %275 : vector<16xf32> to vector<16x1xf32>
    %cst_106 = arith.constant 3.200000e+01 : f32
    %277 = vector.broadcast %cst_106 : f32 to vector<16x1xf32>
    %278 = arith.divf %276, %277 : vector<16x1xf32>
    %279 = vector.broadcast %271 : vector<16x1xf32> to vector<16x32xf32>
    %280 = arith.subf %263, %279 : vector<16x32xf32>
    %cst_107 = arith.constant 9.99999996E-13 : f32
    %281 = vector.broadcast %cst_107 : f32 to vector<16x1xf32>
    %282 = arith.addf %278, %281 : vector<16x1xf32>
    %283 = math.rsqrt %282 : vector<16x1xf32>
    %284 = vector.broadcast %283 : vector<16x1xf32> to vector<16x32xf32>
    %285 = arith.mulf %280, %284 : vector<16x32xf32>
    %286 = vector.broadcast %265 : vector<1x32xf32> to vector<16x32xf32>
    %287 = arith.mulf %285, %286 : vector<16x32xf32>
    %288 = vector.broadcast %267 : vector<1x32xf32> to vector<16x32xf32>
    %289 = arith.addf %287, %288 : vector<16x32xf32>
    %290 = arith.truncf %289 : vector<16x32xf32> to vector<16x32xbf16>
    %c1 = arith.constant 1 : index
    %c0_108 = arith.constant 0 : index
    %c0_109 = arith.constant 0 : index
    %291 = vector.load %arg4[%c1, %c0_108, %c0_109] : memref<2x32x96xbf16, #tpu.memory_space<vmem>>, vector<1x32x96xbf16>
    %292 = vector.shape_cast %291 : vector<1x32x96xbf16> to vector<32x96xbf16>
    %cst_110 = arith.constant dense<0.000000e+00> : vector<16x96xf32>
    %293 = tpu.matmul %290, %292, %cst_110 {dimension_numbers = #tpu.dot_dimension_numbers<[1], [0], [0], [1], [0, 0, 1, 1], [], []>} : vector<16x32xbf16>, vector<32x96xbf16>, vector<16x96xf32> -> vector<16x96xf32>
    %c1_111 = arith.constant 1 : index
    %c0_112 = arith.constant 0 : index
    %c0_113 = arith.constant 0 : index
    %294 = vector.load %arg5[%c1_111, %c0_112, %c0_113] : memref<2x1x96xf32, #tpu.memory_space<vmem>>, vector<1x1x96xf32>
    %295 = vector.shape_cast %294 : vector<1x1x96xf32> to vector<1x96xf32>
    %296 = vector.broadcast %295 : vector<1x96xf32> to vector<16x96xf32>
    %297 = arith.addf %293, %296 : vector<16x96xf32>
    %298 = vector.extract_strided_slice %297 {offsets = [0, 0], sizes = [16, 32], strides = [1, 1]} : vector<16x96xf32> to vector<16x32xf32>
    %299 = vector.extract_strided_slice %297 {offsets = [0, 32], sizes = [16, 32], strides = [1, 1]} : vector<16x96xf32> to vector<16x32xf32>
    %300 = vector.extract_strided_slice %297 {offsets = [0, 64], sizes = [16, 32], strides = [1, 1]} : vector<16x96xf32> to vector<16x32xf32>
    %301 = vector.extract_strided_slice %6 {offsets = [0, 0], sizes = [1, 8], strides = [1, 1]} : vector<2x8xf32> to vector<1x8xf32>
    %302 = vector.extract_strided_slice %298 {offsets = [0, 0], sizes = [8, 8], strides = [1, 1]} : vector<16x32xf32> to vector<8x8xf32>
    %303 = vector.extract_strided_slice %299 {offsets = [0, 0], sizes = [8, 8], strides = [1, 1]} : vector<16x32xf32> to vector<8x8xf32>
    %304 = vector.extract_strided_slice %300 {offsets = [0, 0], sizes = [8, 8], strides = [1, 1]} : vector<16x32xf32> to vector<8x8xf32>
    %305 = tpu.transpose %303, [1, 0] : vector<8x8xf32> -> vector<8x8xf32>
    %cst_114 = arith.constant dense<0.000000e+00> : vector<8x8xf32>
    %306 = tpu.matmul %302, %305, %cst_114 {dimension_numbers = #tpu.dot_dimension_numbers<[1], [0], [0], [1], [0, 0, 1, 1], [], []>} : vector<8x8xf32>, vector<8x8xf32>, vector<8x8xf32> -> vector<8x8xf32>
    %307 = vector.broadcast %301 : vector<1x8xf32> to vector<8x8xf32>
    %308 = arith.addf %306, %307 : vector<8x8xf32>
    %cst_115 = arith.constant dense<0xFF800000> : vector<8xf32>
    %309 = vector.multi_reduction <maximumf>, %308, %cst_115 [1] : vector<8x8xf32> to vector<8xf32>
    %310 = vector.shape_cast %309 : vector<8xf32> to vector<8x1xf32>
    %311 = vector.broadcast %310 : vector<8x1xf32> to vector<8x8xf32>
    %312 = arith.subf %308, %311 : vector<8x8xf32>
    %313 = math.exp %312 : vector<8x8xf32>
    %cst_116 = arith.constant dense<0.000000e+00> : vector<8xf32>
    %314 = vector.multi_reduction <add>, %313, %cst_116 [1] : vector<8x8xf32> to vector<8xf32>
    %315 = vector.shape_cast %314 : vector<8xf32> to vector<8x1xf32>
    %cst_117 = arith.constant 1.000000e+00 : f32
    %316 = vector.broadcast %cst_117 : f32 to vector<8x1xf32>
    %317 = arith.divf %316, %315 : vector<8x1xf32>
    %318 = vector.broadcast %317 : vector<8x1xf32> to vector<8x8xf32>
    %319 = arith.mulf %313, %318 : vector<8x8xf32>
    %cst_118 = arith.constant dense<0.000000e+00> : vector<8x8xf32>
    %320 = tpu.matmul %319, %304, %cst_118 {dimension_numbers = #tpu.dot_dimension_numbers<[1], [0], [0], [1], [0, 0, 1, 1], [], []>} : vector<8x8xf32>, vector<8x8xf32>, vector<8x8xf32> -> vector<8x8xf32>
    %321 = vector.extract_strided_slice %298 {offsets = [0, 8], sizes = [8, 8], strides = [1, 1]} : vector<16x32xf32> to vector<8x8xf32>
    %322 = vector.extract_strided_slice %299 {offsets = [0, 8], sizes = [8, 8], strides = [1, 1]} : vector<16x32xf32> to vector<8x8xf32>
    %323 = vector.extract_strided_slice %300 {offsets = [0, 8], sizes = [8, 8], strides = [1, 1]} : vector<16x32xf32> to vector<8x8xf32>
    %324 = tpu.transpose %322, [1, 0] : vector<8x8xf32> -> vector<8x8xf32>
    %cst_119 = arith.constant dense<0.000000e+00> : vector<8x8xf32>
    %325 = tpu.matmul %321, %324, %cst_119 {dimension_numbers = #tpu.dot_dimension_numbers<[1], [0], [0], [1], [0, 0, 1, 1], [], []>} : vector<8x8xf32>, vector<8x8xf32>, vector<8x8xf32> -> vector<8x8xf32>
    %326 = vector.broadcast %301 : vector<1x8xf32> to vector<8x8xf32>
    %327 = arith.addf %325, %326 : vector<8x8xf32>
    %cst_120 = arith.constant dense<0xFF800000> : vector<8xf32>
    %328 = vector.multi_reduction <maximumf>, %327, %cst_120 [1] : vector<8x8xf32> to vector<8xf32>
    %329 = vector.shape_cast %328 : vector<8xf32> to vector<8x1xf32>
    %330 = vector.broadcast %329 : vector<8x1xf32> to vector<8x8xf32>
    %331 = arith.subf %327, %330 : vector<8x8xf32>
    %332 = math.exp %331 : vector<8x8xf32>
    %cst_121 = arith.constant dense<0.000000e+00> : vector<8xf32>
    %333 = vector.multi_reduction <add>, %332, %cst_121 [1] : vector<8x8xf32> to vector<8xf32>
    %334 = vector.shape_cast %333 : vector<8xf32> to vector<8x1xf32>
    %cst_122 = arith.constant 1.000000e+00 : f32
    %335 = vector.broadcast %cst_122 : f32 to vector<8x1xf32>
    %336 = arith.divf %335, %334 : vector<8x1xf32>
    %337 = vector.broadcast %336 : vector<8x1xf32> to vector<8x8xf32>
    %338 = arith.mulf %332, %337 : vector<8x8xf32>
    %cst_123 = arith.constant dense<0.000000e+00> : vector<8x8xf32>
    %339 = tpu.matmul %338, %323, %cst_123 {dimension_numbers = #tpu.dot_dimension_numbers<[1], [0], [0], [1], [0, 0, 1, 1], [], []>} : vector<8x8xf32>, vector<8x8xf32>, vector<8x8xf32> -> vector<8x8xf32>
    %340 = vector.extract_strided_slice %298 {offsets = [0, 16], sizes = [8, 8], strides = [1, 1]} : vector<16x32xf32> to vector<8x8xf32>
    %341 = vector.extract_strided_slice %299 {offsets = [0, 16], sizes = [8, 8], strides = [1, 1]} : vector<16x32xf32> to vector<8x8xf32>
    %342 = vector.extract_strided_slice %300 {offsets = [0, 16], sizes = [8, 8], strides = [1, 1]} : vector<16x32xf32> to vector<8x8xf32>
    %343 = tpu.transpose %341, [1, 0] : vector<8x8xf32> -> vector<8x8xf32>
    %cst_124 = arith.constant dense<0.000000e+00> : vector<8x8xf32>
    %344 = tpu.matmul %340, %343, %cst_124 {dimension_numbers = #tpu.dot_dimension_numbers<[1], [0], [0], [1], [0, 0, 1, 1], [], []>} : vector<8x8xf32>, vector<8x8xf32>, vector<8x8xf32> -> vector<8x8xf32>
    %345 = vector.broadcast %301 : vector<1x8xf32> to vector<8x8xf32>
    %346 = arith.addf %344, %345 : vector<8x8xf32>
    %cst_125 = arith.constant dense<0xFF800000> : vector<8xf32>
    %347 = vector.multi_reduction <maximumf>, %346, %cst_125 [1] : vector<8x8xf32> to vector<8xf32>
    %348 = vector.shape_cast %347 : vector<8xf32> to vector<8x1xf32>
    %349 = vector.broadcast %348 : vector<8x1xf32> to vector<8x8xf32>
    %350 = arith.subf %346, %349 : vector<8x8xf32>
    %351 = math.exp %350 : vector<8x8xf32>
    %cst_126 = arith.constant dense<0.000000e+00> : vector<8xf32>
    %352 = vector.multi_reduction <add>, %351, %cst_126 [1] : vector<8x8xf32> to vector<8xf32>
    %353 = vector.shape_cast %352 : vector<8xf32> to vector<8x1xf32>
    %cst_127 = arith.constant 1.000000e+00 : f32
    %354 = vector.broadcast %cst_127 : f32 to vector<8x1xf32>
    %355 = arith.divf %354, %353 : vector<8x1xf32>
    %356 = vector.broadcast %355 : vector<8x1xf32> to vector<8x8xf32>
    %357 = arith.mulf %351, %356 : vector<8x8xf32>
    %cst_128 = arith.constant dense<0.000000e+00> : vector<8x8xf32>
    %358 = tpu.matmul %357, %342, %cst_128 {dimension_numbers = #tpu.dot_dimension_numbers<[1], [0], [0], [1], [0, 0, 1, 1], [], []>} : vector<8x8xf32>, vector<8x8xf32>, vector<8x8xf32> -> vector<8x8xf32>
    %359 = vector.extract_strided_slice %298 {offsets = [0, 24], sizes = [8, 8], strides = [1, 1]} : vector<16x32xf32> to vector<8x8xf32>
    %360 = vector.extract_strided_slice %299 {offsets = [0, 24], sizes = [8, 8], strides = [1, 1]} : vector<16x32xf32> to vector<8x8xf32>
    %361 = vector.extract_strided_slice %300 {offsets = [0, 24], sizes = [8, 8], strides = [1, 1]} : vector<16x32xf32> to vector<8x8xf32>
    %362 = tpu.transpose %360, [1, 0] : vector<8x8xf32> -> vector<8x8xf32>
    %cst_129 = arith.constant dense<0.000000e+00> : vector<8x8xf32>
    %363 = tpu.matmul %359, %362, %cst_129 {dimension_numbers = #tpu.dot_dimension_numbers<[1], [0], [0], [1], [0, 0, 1, 1], [], []>} : vector<8x8xf32>, vector<8x8xf32>, vector<8x8xf32> -> vector<8x8xf32>
    %364 = vector.broadcast %301 : vector<1x8xf32> to vector<8x8xf32>
    %365 = arith.addf %363, %364 : vector<8x8xf32>
    %cst_130 = arith.constant dense<0xFF800000> : vector<8xf32>
    %366 = vector.multi_reduction <maximumf>, %365, %cst_130 [1] : vector<8x8xf32> to vector<8xf32>
    %367 = vector.shape_cast %366 : vector<8xf32> to vector<8x1xf32>
    %368 = vector.broadcast %367 : vector<8x1xf32> to vector<8x8xf32>
    %369 = arith.subf %365, %368 : vector<8x8xf32>
    %370 = math.exp %369 : vector<8x8xf32>
    %cst_131 = arith.constant dense<0.000000e+00> : vector<8xf32>
    %371 = vector.multi_reduction <add>, %370, %cst_131 [1] : vector<8x8xf32> to vector<8xf32>
    %372 = vector.shape_cast %371 : vector<8xf32> to vector<8x1xf32>
    %cst_132 = arith.constant 1.000000e+00 : f32
    %373 = vector.broadcast %cst_132 : f32 to vector<8x1xf32>
    %374 = arith.divf %373, %372 : vector<8x1xf32>
    %375 = vector.broadcast %374 : vector<8x1xf32> to vector<8x8xf32>
    %376 = arith.mulf %370, %375 : vector<8x8xf32>
    %cst_133 = arith.constant dense<0.000000e+00> : vector<8x8xf32>
    %377 = tpu.matmul %376, %361, %cst_133 {dimension_numbers = #tpu.dot_dimension_numbers<[1], [0], [0], [1], [0, 0, 1, 1], [], []>} : vector<8x8xf32>, vector<8x8xf32>, vector<8x8xf32> -> vector<8x8xf32>
    %378 = tpu.concatenate %320, %339, %358, %377 in 1 : vector<8x8xf32>, vector<8x8xf32>, vector<8x8xf32>, vector<8x8xf32> -> vector<8x32xf32>
    %379 = vector.extract_strided_slice %6 {offsets = [1, 0], sizes = [1, 8], strides = [1, 1]} : vector<2x8xf32> to vector<1x8xf32>
    %380 = vector.extract_strided_slice %298 {offsets = [8, 0], sizes = [8, 8], strides = [1, 1]} : vector<16x32xf32> to vector<8x8xf32>
    %381 = vector.extract_strided_slice %299 {offsets = [8, 0], sizes = [8, 8], strides = [1, 1]} : vector<16x32xf32> to vector<8x8xf32>
    %382 = vector.extract_strided_slice %300 {offsets = [8, 0], sizes = [8, 8], strides = [1, 1]} : vector<16x32xf32> to vector<8x8xf32>
    %383 = tpu.transpose %381, [1, 0] : vector<8x8xf32> -> vector<8x8xf32>
    %cst_134 = arith.constant dense<0.000000e+00> : vector<8x8xf32>
    %384 = tpu.matmul %380, %383, %cst_134 {dimension_numbers = #tpu.dot_dimension_numbers<[1], [0], [0], [1], [0, 0, 1, 1], [], []>} : vector<8x8xf32>, vector<8x8xf32>, vector<8x8xf32> -> vector<8x8xf32>
    %385 = vector.broadcast %379 : vector<1x8xf32> to vector<8x8xf32>
    %386 = arith.addf %384, %385 : vector<8x8xf32>
    %cst_135 = arith.constant dense<0xFF800000> : vector<8xf32>
    %387 = vector.multi_reduction <maximumf>, %386, %cst_135 [1] : vector<8x8xf32> to vector<8xf32>
    %388 = vector.shape_cast %387 : vector<8xf32> to vector<8x1xf32>
    %389 = vector.broadcast %388 : vector<8x1xf32> to vector<8x8xf32>
    %390 = arith.subf %386, %389 : vector<8x8xf32>
    %391 = math.exp %390 : vector<8x8xf32>
    %cst_136 = arith.constant dense<0.000000e+00> : vector<8xf32>
    %392 = vector.multi_reduction <add>, %391, %cst_136 [1] : vector<8x8xf32> to vector<8xf32>
    %393 = vector.shape_cast %392 : vector<8xf32> to vector<8x1xf32>
    %cst_137 = arith.constant 1.000000e+00 : f32
    %394 = vector.broadcast %cst_137 : f32 to vector<8x1xf32>
    %395 = arith.divf %394, %393 : vector<8x1xf32>
    %396 = vector.broadcast %395 : vector<8x1xf32> to vector<8x8xf32>
    %397 = arith.mulf %391, %396 : vector<8x8xf32>
    %cst_138 = arith.constant dense<0.000000e+00> : vector<8x8xf32>
    %398 = tpu.matmul %397, %382, %cst_138 {dimension_numbers = #tpu.dot_dimension_numbers<[1], [0], [0], [1], [0, 0, 1, 1], [], []>} : vector<8x8xf32>, vector<8x8xf32>, vector<8x8xf32> -> vector<8x8xf32>
    %399 = vector.extract_strided_slice %298 {offsets = [8, 8], sizes = [8, 8], strides = [1, 1]} : vector<16x32xf32> to vector<8x8xf32>
    %400 = vector.extract_strided_slice %299 {offsets = [8, 8], sizes = [8, 8], strides = [1, 1]} : vector<16x32xf32> to vector<8x8xf32>
    %401 = vector.extract_strided_slice %300 {offsets = [8, 8], sizes = [8, 8], strides = [1, 1]} : vector<16x32xf32> to vector<8x8xf32>
    %402 = tpu.transpose %400, [1, 0] : vector<8x8xf32> -> vector<8x8xf32>
    %cst_139 = arith.constant dense<0.000000e+00> : vector<8x8xf32>
    %403 = tpu.matmul %399, %402, %cst_139 {dimension_numbers = #tpu.dot_dimension_numbers<[1], [0], [0], [1], [0, 0, 1, 1], [], []>} : vector<8x8xf32>, vector<8x8xf32>, vector<8x8xf32> -> vector<8x8xf32>
    %404 = vector.broadcast %379 : vector<1x8xf32> to vector<8x8xf32>
    %405 = arith.addf %403, %404 : vector<8x8xf32>
    %cst_140 = arith.constant dense<0xFF800000> : vector<8xf32>
    %406 = vector.multi_reduction <maximumf>, %405, %cst_140 [1] : vector<8x8xf32> to vector<8xf32>
    %407 = vector.shape_cast %406 : vector<8xf32> to vector<8x1xf32>
    %408 = vector.broadcast %407 : vector<8x1xf32> to vector<8x8xf32>
    %409 = arith.subf %405, %408 : vector<8x8xf32>
    %410 = math.exp %409 : vector<8x8xf32>
    %cst_141 = arith.constant dense<0.000000e+00> : vector<8xf32>
    %411 = vector.multi_reduction <add>, %410, %cst_141 [1] : vector<8x8xf32> to vector<8xf32>
    %412 = vector.shape_cast %411 : vector<8xf32> to vector<8x1xf32>
    %cst_142 = arith.constant 1.000000e+00 : f32
    %413 = vector.broadcast %cst_142 : f32 to vector<8x1xf32>
    %414 = arith.divf %413, %412 : vector<8x1xf32>
    %415 = vector.broadcast %414 : vector<8x1xf32> to vector<8x8xf32>
    %416 = arith.mulf %410, %415 : vector<8x8xf32>
    %cst_143 = arith.constant dense<0.000000e+00> : vector<8x8xf32>
    %417 = tpu.matmul %416, %401, %cst_143 {dimension_numbers = #tpu.dot_dimension_numbers<[1], [0], [0], [1], [0, 0, 1, 1], [], []>} : vector<8x8xf32>, vector<8x8xf32>, vector<8x8xf32> -> vector<8x8xf32>
    %418 = vector.extract_strided_slice %298 {offsets = [8, 16], sizes = [8, 8], strides = [1, 1]} : vector<16x32xf32> to vector<8x8xf32>
    %419 = vector.extract_strided_slice %299 {offsets = [8, 16], sizes = [8, 8], strides = [1, 1]} : vector<16x32xf32> to vector<8x8xf32>
    %420 = vector.extract_strided_slice %300 {offsets = [8, 16], sizes = [8, 8], strides = [1, 1]} : vector<16x32xf32> to vector<8x8xf32>
    %421 = tpu.transpose %419, [1, 0] : vector<8x8xf32> -> vector<8x8xf32>
    %cst_144 = arith.constant dense<0.000000e+00> : vector<8x8xf32>
    %422 = tpu.matmul %418, %421, %cst_144 {dimension_numbers = #tpu.dot_dimension_numbers<[1], [0], [0], [1], [0, 0, 1, 1], [], []>} : vector<8x8xf32>, vector<8x8xf32>, vector<8x8xf32> -> vector<8x8xf32>
    %423 = vector.broadcast %379 : vector<1x8xf32> to vector<8x8xf32>
    %424 = arith.addf %422, %423 : vector<8x8xf32>
    %cst_145 = arith.constant dense<0xFF800000> : vector<8xf32>
    %425 = vector.multi_reduction <maximumf>, %424, %cst_145 [1] : vector<8x8xf32> to vector<8xf32>
    %426 = vector.shape_cast %425 : vector<8xf32> to vector<8x1xf32>
    %427 = vector.broadcast %426 : vector<8x1xf32> to vector<8x8xf32>
    %428 = arith.subf %424, %427 : vector<8x8xf32>
    %429 = math.exp %428 : vector<8x8xf32>
    %cst_146 = arith.constant dense<0.000000e+00> : vector<8xf32>
    %430 = vector.multi_reduction <add>, %429, %cst_146 [1] : vector<8x8xf32> to vector<8xf32>
    %431 = vector.shape_cast %430 : vector<8xf32> to vector<8x1xf32>
    %cst_147 = arith.constant 1.000000e+00 : f32
    %432 = vector.broadcast %cst_147 : f32 to vector<8x1xf32>
    %433 = arith.divf %432, %431 : vector<8x1xf32>
    %434 = vector.broadcast %433 : vector<8x1xf32> to vector<8x8xf32>
    %435 = arith.mulf %429, %434 : vector<8x8xf32>
    %cst_148 = arith.constant dense<0.000000e+00> : vector<8x8xf32>
    %436 = tpu.matmul %435, %420, %cst_148 {dimension_numbers = #tpu.dot_dimension_numbers<[1], [0], [0], [1], [0, 0, 1, 1], [], []>} : vector<8x8xf32>, vector<8x8xf32>, vector<8x8xf32> -> vector<8x8xf32>
    %437 = vector.extract_strided_slice %298 {offsets = [8, 24], sizes = [8, 8], strides = [1, 1]} : vector<16x32xf32> to vector<8x8xf32>
    %438 = vector.extract_strided_slice %299 {offsets = [8, 24], sizes = [8, 8], strides = [1, 1]} : vector<16x32xf32> to vector<8x8xf32>
    %439 = vector.extract_strided_slice %300 {offsets = [8, 24], sizes = [8, 8], strides = [1, 1]} : vector<16x32xf32> to vector<8x8xf32>
    %440 = tpu.transpose %438, [1, 0] : vector<8x8xf32> -> vector<8x8xf32>
    %cst_149 = arith.constant dense<0.000000e+00> : vector<8x8xf32>
    %441 = tpu.matmul %437, %440, %cst_149 {dimension_numbers = #tpu.dot_dimension_numbers<[1], [0], [0], [1], [0, 0, 1, 1], [], []>} : vector<8x8xf32>, vector<8x8xf32>, vector<8x8xf32> -> vector<8x8xf32>
    %442 = vector.broadcast %379 : vector<1x8xf32> to vector<8x8xf32>
    %443 = arith.addf %441, %442 : vector<8x8xf32>
    %cst_150 = arith.constant dense<0xFF800000> : vector<8xf32>
    %444 = vector.multi_reduction <maximumf>, %443, %cst_150 [1] : vector<8x8xf32> to vector<8xf32>
    %445 = vector.shape_cast %444 : vector<8xf32> to vector<8x1xf32>
    %446 = vector.broadcast %445 : vector<8x1xf32> to vector<8x8xf32>
    %447 = arith.subf %443, %446 : vector<8x8xf32>
    %448 = math.exp %447 : vector<8x8xf32>
    %cst_151 = arith.constant dense<0.000000e+00> : vector<8xf32>
    %449 = vector.multi_reduction <add>, %448, %cst_151 [1] : vector<8x8xf32> to vector<8xf32>
    %450 = vector.shape_cast %449 : vector<8xf32> to vector<8x1xf32>
    %cst_152 = arith.constant 1.000000e+00 : f32
    %451 = vector.broadcast %cst_152 : f32 to vector<8x1xf32>
    %452 = arith.divf %451, %450 : vector<8x1xf32>
    %453 = vector.broadcast %452 : vector<8x1xf32> to vector<8x8xf32>
    %454 = arith.mulf %448, %453 : vector<8x8xf32>
    %cst_153 = arith.constant dense<0.000000e+00> : vector<8x8xf32>
    %455 = tpu.matmul %454, %439, %cst_153 {dimension_numbers = #tpu.dot_dimension_numbers<[1], [0], [0], [1], [0, 0, 1, 1], [], []>} : vector<8x8xf32>, vector<8x8xf32>, vector<8x8xf32> -> vector<8x8xf32>
    %456 = tpu.concatenate %398, %417, %436, %455 in 1 : vector<8x8xf32>, vector<8x8xf32>, vector<8x8xf32>, vector<8x8xf32> -> vector<8x32xf32>
    %457 = tpu.concatenate %378, %456 in 0 : vector<8x32xf32>, vector<8x32xf32> -> vector<16x32xf32>
    %458 = arith.truncf %457 : vector<16x32xf32> to vector<16x32xbf16>
    %c1_154 = arith.constant 1 : index
    %c0_155 = arith.constant 0 : index
    %c0_156 = arith.constant 0 : index
    %459 = vector.load %arg6[%c1_154, %c0_155, %c0_156] : memref<2x32x32xbf16, #tpu.memory_space<vmem>>, vector<1x32x32xbf16>
    %460 = vector.shape_cast %459 : vector<1x32x32xbf16> to vector<32x32xbf16>
    %cst_157 = arith.constant dense<0.000000e+00> : vector<16x32xf32>
    %461 = tpu.matmul %458, %460, %cst_157 {dimension_numbers = #tpu.dot_dimension_numbers<[1], [0], [0], [1], [0, 0, 1, 1], [], []>} : vector<16x32xbf16>, vector<32x32xbf16>, vector<16x32xf32> -> vector<16x32xf32>
    %c1_158 = arith.constant 1 : index
    %c0_159 = arith.constant 0 : index
    %c0_160 = arith.constant 0 : index
    %462 = vector.load %arg7[%c1_158, %c0_159, %c0_160] : memref<2x1x32xf32, #tpu.memory_space<vmem>>, vector<1x1x32xf32>
    %463 = vector.shape_cast %462 : vector<1x1x32xf32> to vector<1x32xf32>
    %464 = vector.broadcast %463 : vector<1x32xf32> to vector<16x32xf32>
    %465 = arith.addf %461, %464 : vector<16x32xf32>
    %466 = arith.addf %289, %465 : vector<16x32xf32>
    %c1_161 = arith.constant 1 : index
    %c0_162 = arith.constant 0 : index
    %c0_163 = arith.constant 0 : index
    %467 = vector.load %arg8[%c1_161, %c0_162, %c0_163] : memref<2x1x32xf32, #tpu.memory_space<vmem>>, vector<1x1x32xf32>
    %468 = vector.shape_cast %467 : vector<1x1x32xf32> to vector<1x32xf32>
    %c1_164 = arith.constant 1 : index
    %c0_165 = arith.constant 0 : index
    %c0_166 = arith.constant 0 : index
    %469 = vector.load %arg9[%c1_164, %c0_165, %c0_166] : memref<2x1x32xf32, #tpu.memory_space<vmem>>, vector<1x1x32xf32>
    %470 = vector.shape_cast %469 : vector<1x1x32xf32> to vector<1x32xf32>
    %cst_167 = arith.constant dense<0.000000e+00> : vector<16xf32>
    %471 = vector.multi_reduction <add>, %466, %cst_167 [1] : vector<16x32xf32> to vector<16xf32>
    %472 = vector.shape_cast %471 : vector<16xf32> to vector<16x1xf32>
    %cst_168 = arith.constant 3.200000e+01 : f32
    %473 = vector.broadcast %cst_168 : f32 to vector<16x1xf32>
    %474 = arith.divf %472, %473 : vector<16x1xf32>
    %475 = vector.broadcast %474 : vector<16x1xf32> to vector<16x32xf32>
    %476 = arith.subf %466, %475 : vector<16x32xf32>
    %477 = arith.mulf %476, %476 : vector<16x32xf32>
    %cst_169 = arith.constant dense<0.000000e+00> : vector<16xf32>
    %478 = vector.multi_reduction <add>, %477, %cst_169 [1] : vector<16x32xf32> to vector<16xf32>
    %479 = vector.shape_cast %478 : vector<16xf32> to vector<16x1xf32>
    %cst_170 = arith.constant 3.200000e+01 : f32
    %480 = vector.broadcast %cst_170 : f32 to vector<16x1xf32>
    %481 = arith.divf %479, %480 : vector<16x1xf32>
    %482 = vector.broadcast %474 : vector<16x1xf32> to vector<16x32xf32>
    %483 = arith.subf %466, %482 : vector<16x32xf32>
    %cst_171 = arith.constant 9.99999996E-13 : f32
    %484 = vector.broadcast %cst_171 : f32 to vector<16x1xf32>
    %485 = arith.addf %481, %484 : vector<16x1xf32>
    %486 = math.rsqrt %485 : vector<16x1xf32>
    %487 = vector.broadcast %486 : vector<16x1xf32> to vector<16x32xf32>
    %488 = arith.mulf %483, %487 : vector<16x32xf32>
    %489 = vector.broadcast %468 : vector<1x32xf32> to vector<16x32xf32>
    %490 = arith.mulf %488, %489 : vector<16x32xf32>
    %491 = vector.broadcast %470 : vector<1x32xf32> to vector<16x32xf32>
    %492 = arith.addf %490, %491 : vector<16x32xf32>
    %493 = arith.truncf %492 : vector<16x32xf32> to vector<16x32xbf16>
    %c1_172 = arith.constant 1 : index
    %c0_173 = arith.constant 0 : index
    %c0_174 = arith.constant 0 : index
    %494 = vector.load %arg10[%c1_172, %c0_173, %c0_174] : memref<2x32x64xbf16, #tpu.memory_space<vmem>>, vector<1x32x64xbf16>
    %495 = vector.shape_cast %494 : vector<1x32x64xbf16> to vector<32x64xbf16>
    %cst_175 = arith.constant dense<0.000000e+00> : vector<16x64xf32>
    %496 = tpu.matmul %493, %495, %cst_175 {dimension_numbers = #tpu.dot_dimension_numbers<[1], [0], [0], [1], [0, 0, 1, 1], [], []>} : vector<16x32xbf16>, vector<32x64xbf16>, vector<16x64xf32> -> vector<16x64xf32>
    %c1_176 = arith.constant 1 : index
    %c0_177 = arith.constant 0 : index
    %c0_178 = arith.constant 0 : index
    %497 = vector.load %arg11[%c1_176, %c0_177, %c0_178] : memref<2x1x64xf32, #tpu.memory_space<vmem>>, vector<1x1x64xf32>
    %498 = vector.shape_cast %497 : vector<1x1x64xf32> to vector<1x64xf32>
    %499 = vector.broadcast %498 : vector<1x64xf32> to vector<16x64xf32>
    %500 = arith.addf %496, %499 : vector<16x64xf32>
    %501 = arith.mulf %500, %500 : vector<16x64xf32>
    %502 = arith.mulf %500, %501 : vector<16x64xf32>
    %cst_179 = arith.constant 4.471500e-02 : f32
    %503 = vector.broadcast %cst_179 : f32 to vector<16x64xf32>
    %504 = arith.mulf %503, %502 : vector<16x64xf32>
    %505 = arith.addf %500, %504 : vector<16x64xf32>
    %cst_180 = arith.constant 0.797884583 : f32
    %506 = vector.broadcast %cst_180 : f32 to vector<16x64xf32>
    %507 = arith.mulf %506, %505 : vector<16x64xf32>
    %508 = math.tanh %507 : vector<16x64xf32>
    %cst_181 = arith.constant 1.000000e+00 : f32
    %509 = vector.broadcast %cst_181 : f32 to vector<16x64xf32>
    %510 = arith.addf %509, %508 : vector<16x64xf32>
    %cst_182 = arith.constant 5.000000e-01 : f32
    %511 = vector.broadcast %cst_182 : f32 to vector<16x64xf32>
    %512 = arith.mulf %511, %510 : vector<16x64xf32>
    %513 = arith.mulf %500, %512 : vector<16x64xf32>
    %514 = arith.truncf %513 : vector<16x64xf32> to vector<16x64xbf16>
    %c1_183 = arith.constant 1 : index
    %c0_184 = arith.constant 0 : index
    %c0_185 = arith.constant 0 : index
    %515 = vector.load %arg12[%c1_183, %c0_184, %c0_185] : memref<2x64x32xbf16, #tpu.memory_space<vmem>>, vector<1x64x32xbf16>
    %516 = vector.shape_cast %515 : vector<1x64x32xbf16> to vector<64x32xbf16>
    %cst_186 = arith.constant dense<0.000000e+00> : vector<16x32xf32>
    %517 = tpu.matmul %514, %516, %cst_186 {dimension_numbers = #tpu.dot_dimension_numbers<[1], [0], [0], [1], [0, 0, 1, 1], [], []>} : vector<16x64xbf16>, vector<64x32xbf16>, vector<16x32xf32> -> vector<16x32xf32>
    %c1_187 = arith.constant 1 : index
    %c0_188 = arith.constant 0 : index
    %c0_189 = arith.constant 0 : index
    %518 = vector.load %arg13[%c1_187, %c0_188, %c0_189] : memref<2x1x32xf32, #tpu.memory_space<vmem>>, vector<1x1x32xf32>
    %519 = vector.shape_cast %518 : vector<1x1x32xf32> to vector<1x32xf32>
    %520 = vector.broadcast %519 : vector<1x32xf32> to vector<16x32xf32>
    %521 = arith.addf %517, %520 : vector<16x32xf32>
    %522 = arith.addf %492, %521 : vector<16x32xf32>
    %c1_190 = arith.constant 1 : index
    %c0_191 = arith.constant 0 : index
    %c0_192 = arith.constant 0 : index
    %523 = vector.load %arg14[%c1_190, %c0_191, %c0_192] : memref<2x1x32xf32, #tpu.memory_space<vmem>>, vector<1x1x32xf32>
    %524 = vector.shape_cast %523 : vector<1x1x32xf32> to vector<1x32xf32>
    %c1_193 = arith.constant 1 : index
    %c0_194 = arith.constant 0 : index
    %c0_195 = arith.constant 0 : index
    %525 = vector.load %arg15[%c1_193, %c0_194, %c0_195] : memref<2x1x32xf32, #tpu.memory_space<vmem>>, vector<1x1x32xf32>
    %526 = vector.shape_cast %525 : vector<1x1x32xf32> to vector<1x32xf32>
    %cst_196 = arith.constant dense<0.000000e+00> : vector<16xf32>
    %527 = vector.multi_reduction <add>, %522, %cst_196 [1] : vector<16x32xf32> to vector<16xf32>
    %528 = vector.shape_cast %527 : vector<16xf32> to vector<16x1xf32>
    %cst_197 = arith.constant 3.200000e+01 : f32
    %529 = vector.broadcast %cst_197 : f32 to vector<16x1xf32>
    %530 = arith.divf %528, %529 : vector<16x1xf32>
    %531 = vector.broadcast %530 : vector<16x1xf32> to vector<16x32xf32>
    %532 = arith.subf %522, %531 : vector<16x32xf32>
    %533 = arith.mulf %532, %532 : vector<16x32xf32>
    %cst_198 = arith.constant dense<0.000000e+00> : vector<16xf32>
    %534 = vector.multi_reduction <add>, %533, %cst_198 [1] : vector<16x32xf32> to vector<16xf32>
    %535 = vector.shape_cast %534 : vector<16xf32> to vector<16x1xf32>
    %cst_199 = arith.constant 3.200000e+01 : f32
    %536 = vector.broadcast %cst_199 : f32 to vector<16x1xf32>
    %537 = arith.divf %535, %536 : vector<16x1xf32>
    %538 = vector.broadcast %530 : vector<16x1xf32> to vector<16x32xf32>
    %539 = arith.subf %522, %538 : vector<16x32xf32>
    %cst_200 = arith.constant 9.99999996E-13 : f32
    %540 = vector.broadcast %cst_200 : f32 to vector<16x1xf32>
    %541 = arith.addf %537, %540 : vector<16x1xf32>
    %542 = math.rsqrt %541 : vector<16x1xf32>
    %543 = vector.broadcast %542 : vector<16x1xf32> to vector<16x32xf32>
    %544 = arith.mulf %539, %543 : vector<16x32xf32>
    %545 = vector.broadcast %524 : vector<1x32xf32> to vector<16x32xf32>
    %546 = arith.mulf %544, %545 : vector<16x32xf32>
    %547 = vector.broadcast %526 : vector<1x32xf32> to vector<16x32xf32>
    %548 = arith.addf %546, %547 : vector<16x32xf32>
    %549 = vector.shape_cast %548 : vector<16x32xf32> to vector<2x8x32xf32>
    %550 = vector.extract_strided_slice %549 {offsets = [0, 0, 0], sizes = [2, 1, 32], strides = [1, 1, 1]} : vector<2x8x32xf32> to vector<2x1x32xf32>
    %551 = vector.shape_cast %550 : vector<2x1x32xf32> to vector<2x32xf32>
    %552 = arith.truncf %551 : vector<2x32xf32> to vector<2x32xbf16>
    %c0_201 = arith.constant 0 : index
    %c0_202 = arith.constant 0 : index
    %553 = vector.load %arg16[%c0_201, %c0_202] : memref<32x32xbf16, #tpu.memory_space<vmem>>, vector<32x32xbf16>
    %cst_203 = arith.constant dense<0.000000e+00> : vector<2x32xf32>
    %554 = tpu.matmul %552, %553, %cst_203 {dimension_numbers = #tpu.dot_dimension_numbers<[1], [0], [0], [1], [0, 0, 1, 1], [], []>} : vector<2x32xbf16>, vector<32x32xbf16>, vector<2x32xf32> -> vector<2x32xf32>
    %c0_204 = arith.constant 0 : index
    %c0_205 = arith.constant 0 : index
    %555 = vector.load %arg17[%c0_204, %c0_205] : memref<1x32xf32, #tpu.memory_space<vmem>>, vector<1x32xf32>
    %556 = vector.broadcast %555 : vector<1x32xf32> to vector<2x32xf32>
    %557 = arith.addf %554, %556 : vector<2x32xf32>
    %558 = math.tanh %557 : vector<2x32xf32>
    %559 = arith.truncf %558 : vector<2x32xf32> to vector<2x32xbf16>
    %c0_206 = arith.constant 0 : index
    %c0_207 = arith.constant 0 : index
    %560 = vector.load %arg18[%c0_206, %c0_207] : memref<32x128xbf16, #tpu.memory_space<vmem>>, vector<32x128xbf16>
    %cst_208 = arith.constant dense<0.000000e+00> : vector<2x128xf32>
    %561 = tpu.matmul %559, %560, %cst_208 {dimension_numbers = #tpu.dot_dimension_numbers<[1], [0], [0], [1], [0, 0, 1, 1], [], []>} : vector<2x32xbf16>, vector<32x128xbf16>, vector<2x128xf32> -> vector<2x128xf32>
    %c0_209 = arith.constant 0 : index
    %c0_210 = arith.constant 0 : index
    %562 = vector.load %arg19[%c0_209, %c0_210] : memref<1x128xf32, #tpu.memory_space<vmem>>, vector<1x128xf32>
    %563 = vector.broadcast %562 : vector<1x128xf32> to vector<2x128xf32>
    %564 = arith.addf %561, %563 : vector<2x128xf32>
    %cst_211 = arith.constant 0.000000e+00 : f32
    %565 = vector.broadcast %cst_211 : f32 to vector<2x128xf32>
    %566 = arith.maximumf %564, %565 : vector<2x128xf32>
    %c0_212 = arith.constant 0 : index
    %c0_213 = arith.constant 0 : index
    %567 = vector.load %arg20[%c0_212, %c0_213] : memref<2x128xf32, #tpu.memory_space<vmem>>, vector<2x128xf32>
    tpu.vector_store %arg20[%c0_212, %c0_213], %566 {strides = array<i32>} : memref<2x128xf32, #tpu.memory_space<vmem>>, vector<2x128xf32>,
    return
  }
}

</mosaic_0001>

<bundles_post_ra>
// kernel: tpu_custom_call.1
= control target key start
LH: loop header
LB: loop body
LE: loop exit
PB: predicated region body
PF: predicated region fallthrough
CT: control target
= control target key end

     0   :  { %s5644_s0 = inlined_call_operand.hbm [shape: f32[2,8,32], index: 0, kind: input, shape index: {}]   ;;  %s5645_s1 = inlined_call_operand.hbm [shape: f32[2,8], index: 1, kind: input, shape index: {}]   ;;  %s5646_s2 = inlined_call_operand.hbm [shape: f32[1,32], index: 2, kind: input, shape index: {}]   ;;  %s5647_s3 = inlined_call_operand.hbm [shape: f32[1,32], index: 3, kind: input, shape index: {}]   ;;  %s5648_s4 = inlined_call_operand.vmem [shape: bf16[2,32,96], index: 4, kind: input, shape index: {}]   ;;  %s5649_s5 = inlined_call_operand.hbm [shape: f32[2,1,96], index: 5, kind: input, shape index: {}]   ;;  %s5650_s6 = inlined_call_operand.vmem [shape: bf16[2,32,32], index: 6, kind: input, shape index: {}]   ;;  %s5651_s7 = inlined_call_operand.hbm [shape: f32[2,1,32], index: 7, kind: input, shape index: {}]   ;;  %s5652_s8 = inlined_call_operand.hbm [shape: f32[2,1,32], index: 8, kind: input, shape index: {}]   ;;  %s5653_s9 = inlined_call_operand.hbm [shape: f32[2,1,32], index: 9, kind: input, shape index: {}]   ;;  %s5654_s10 = inlined_call_operand.vmem [shape: bf16[2,32,64], index: 10, kind: input, shape index: {}]   ;;  %s5655_s11 = inlined_call_operand.hbm [shape: f32[2,1,64], index: 11, kind: input, shape index: {}]   ;;  %s5656_s12 = inlined_call_operand.vmem [shape: bf16[2,64,32], index: 12, kind: input, shape index: {}]   ;;  %s5657_s13 = inlined_call_operand.hbm [shape: f32[2,1,32], index: 13, kind: input, shape index: {}]   ;;  %s5658_s14 = inlined_call_operand.hbm [shape: f32[2,1,32], index: 14, kind: input, shape index: {}]   ;;  %s5659_s15 = inlined_call_operand.hbm [shape: f32[2,1,32], index: 15, kind: input, shape index: {}]   ;;  %s5660_s16 = inlined_call_operand.vmem [shape: bf16[32,32], index: 16, kind: input, shape index: {}]   ;;  %s5661_s17 = inlined_call_operand.hbm [shape: f32[1,32], index: 17, kind: input, shape index: {}]   ;;  %s5662_s18 = inlined_call_operand.vmem [shape: bf16[32,128], index: 18, kind: input, shape index: {}]   ;;  %s5663_s19 = inlined_call_operand.vmem [shape: f32[1,128], index: 19, kind: input, shape index: {}]   ;;  %s5664_s20 = inlined_call_operand.hbm [shape: f32[2,128], index: 20, kind: output, shape index: {}]  }
   0x1   :  { %5666 = sst [smem:[#allocation32_spill]] %s5644_s0 }
   0x2   :  { %5667 = sst [smem:[#allocation33_spill]] %s5645_s1 }
   0x3   :  { %5668 = sst [smem:[#allocation34_spill]] %s5646_s2 }
   0x4   :  { %5669 = sst [smem:[#allocation35_spill]] %s5647_s3 }
   0x5   :  { %5670 = sst [smem:[#allocation36_spill]] %s5648_s4 }
   0x6   :  { %25 = vsyncpa [#allocation3], 0 }
   0x7   :  { %26 = vsyncpa [#allocation6], 0 }
   0x8   :  { %27 = vsyncpa [#allocation9], 0 }
   0x9   :  { %28 = vsyncpa [#allocation12], 0 }
   0xa   :  { %29 = vsyncpa [#allocation15], 0 }
   0xb   :  { %30 = vsyncpa [#allocation18], 0 }
   0xc   :  { %31 = vsyncpa [#allocation21], 0 }
   0xd   :  { %32 = vsyncpa [#allocation4], 0  ;;  %s4930_s1 = smov [#allocation5]   ;;  %s4931_s23 = smov [#allocation8]  }
   0xe   :  { %s51_s22 = sshll.u32 %s4930_s1, 4  ;;  %s71_s24 = sshll.u32 %s4931_s23, 4  ;;  %s52_s22 = int_to_ptr.vmem [resolvable:$true] %s51_s22  ;;  %s72_s24 = int_to_ptr.vmem [resolvable:$true] %s71_s24 }
   0xf   :  { %s4642_s2 = scalar_lea.vmem %s52_s22, 32  ;;  %p4647_p1 = scmp.lt.s32.totalorder %s52_s22, %s52_s22 }
  0x10   :  { %p4643_p0 = scmp.ne.s32.totalorder %s52_s22, %s4642_s2  ;;  %p4648_p2 = scmp.lt.s32.totalorder %s4642_s2, %s4642_s2 }
  0x12   :  { %p4649_p3 = por %p4648_p2, %p4647_p1 }
  0x14   :  { %p4650_p4 = pnand %p4649_p3, %p4643_p0 }
  0x16   :  { %4653 = shalt.err (!%p4650_p4)
}
  0x17   :  { %s5671_s26 = sld [smem:[#allocation33_spill]]  ;;  %s4662_s27 = scalar_lea.vmem %s72_s24, 16 }
  0x18   :  { %p4663_p5 = scmp.ne.s32.totalorder %s72_s24, %s4662_s27  ;;  %s4666_s28 = scalar_lea.vmem %s72_s24, 32 }
  0x19   :  { %p4667_p6 = scmp.lt.s32.totalorder %s72_s24, %s72_s24  ;;  %p4668_p7 = scmp.lt.s32.totalorder %s4666_s28, %s4662_s27 }
  0x1b   :  { %p4669_p8 = por %p4668_p7, %p4667_p6 }
  0x1d   :  { %54 = dma.hbm_to_vmem [thread:$0]  %s5671_s26, 32, %s52_s22, [#allocation6]  }
  0x1e   :  { %p4670_p9 = pnand %p4669_p8, %p4663_p5 }
  0x20   :  { %4673 = shalt.err (!%p4670_p9)
}
  0x21   :  { %s5672_s30 = sld [smem:[#allocation35_spill]]  ;;  %s4932_s0 = smov [#allocation11]  }
  0x22   :  { %s96_s21 = sshll.u32 %s4932_s0, 4  ;;  %s4933_s1 = smov [#allocation14]   ;;  %s97_s21 = int_to_ptr.vmem [resolvable:$true] %s96_s21 }
  0x23   :  { %s120_s23 = sshll.u32 %s4933_s1, 4  ;;  %s4682_s2 = scalar_lea.vmem %s97_s21, 32  ;;  %s121_s23 = int_to_ptr.vmem [resolvable:$true] %s120_s23 }
  0x24   :  { %p4683_p10 = scmp.ne.s32.totalorder %s97_s21, %s4682_s2  ;;  %p4687_p11 = scmp.lt.s32.totalorder %s97_s21, %s97_s21 }
  0x25   :  { %p4688_p12 = scmp.lt.s32.totalorder %s4682_s2, %s4682_s2 }
  0x27   :  { %74 = dma.hbm_to_vmem [thread:$0]  %s5672_s30, 16, %s72_s24, [#allocation9]  }
  0x28   :  { %p4689_p13 = por %p4688_p12, %p4687_p11 }
  0x2a   :  { %p4690_p0 = pnand %p4689_p13, %p4683_p10 }
  0x2c   :  { %4693 = shalt.err (!%p4690_p0)
}
  0x2d   :  { %s4934_s22 = smov 16   ;;  %s4935_s25 = smov 1  }
  0x2e   :  { %102 = dma.hbm_to_vmem [thread:$0]  %s5651_s7, 32, %s97_s21, [#allocation12], %s4934_s22, %s4934_s22, %s4935_s25  }
  0x2f   :  { %s4702_s26 = scalar_lea.vmem %s121_s23, 32  ;;  %p4707_p2 = scmp.lt.s32.totalorder %s121_s23, %s121_s23 }
  0x30   :  { %p4703_p1 = scmp.ne.s32.totalorder %s121_s23, %s4702_s26  ;;  %p4708_p3 = scmp.lt.s32.totalorder %s4702_s26, %s4702_s26 }
  0x32   :  { %p4709_p4 = por %p4708_p3, %p4707_p2 }
  0x34   :  { %p4710_p5 = pnand %p4709_p4, %p4703_p1 }
  0x36   :  { %4713 = shalt.err (!%p4710_p5)
}
  0x37   :  { %126 = dma.hbm_to_vmem [thread:$0]  %s5653_s9, 32, %s121_s23, [#allocation15], %s4934_s22, %s4934_s22, %s4935_s25  }
  0x38   :  { %s4936_s4 = smov [#allocation17]   ;;  %s4937_s30 = smov [#allocation20]  }
  0x39   :  { %s148_s29 = sshll.u32 %s4936_s4, 4  ;;  %s172_s0 = sshll.u32 %s4937_s30, 4  ;;  %s149_s29 = int_to_ptr.vmem [resolvable:$true] %s148_s29  ;;  %s173_s0 = int_to_ptr.vmem [resolvable:$true] %s172_s0 }
  0x3a   :  { %s4722_s7 = scalar_lea.vmem %s149_s29, 32  ;;  %p4727_p7 = scmp.lt.s32.totalorder %s149_s29, %s149_s29 }
  0x3b   :  { %p4723_p6 = scmp.ne.s32.totalorder %s149_s29, %s4722_s7  ;;  %p4728_p8 = scmp.lt.s32.totalorder %s4722_s7, %s4722_s7 }
  0x3d   :  { %p4729_p9 = por %p4728_p8, %p4727_p7 }
  0x3f   :  { %p4730_p10 = pnand %p4729_p9, %p4723_p6 }
  0x41   :  { %4733 = shalt.err (!%p4730_p10)
}
  0x42   :  { %154 = dma.hbm_to_vmem [thread:$0]  %s5657_s13, 32, %s149_s29, [#allocation18], %s4934_s22, %s4934_s22, %s4935_s25  }
  0x43   :  { %s4742_s9 = scalar_lea.vmem %s173_s0, 32  ;;  %p4747_p12 = scmp.lt.s32.totalorder %s173_s0, %s173_s0 }
  0x44   :  { %p4743_p11 = scmp.ne.s32.totalorder %s173_s0, %s4742_s9  ;;  %p4748_p13 = scmp.lt.s32.totalorder %s4742_s9, %s4742_s9 }
  0x46   :  { %p4749_p0 = por %p4748_p13, %p4747_p12 }
  0x48   :  { %p4750_p1 = pnand %p4749_p0, %p4743_p11 }
  0x4a   :  { %4753 = shalt.err (!%p4750_p1)
}
  0x4b   :  { %178 = dma.hbm_to_vmem [thread:$0]  %s5659_s15, 32, %s173_s0, [#allocation21], %s4934_s22, %s4934_s22, %s4935_s25  }
  0x4c   :  { %s4938_s3 = smov [#allocation2]  }
  0x4d   :  { %s38_s24 = sshll.u32 %s4938_s3, 4  ;;  %s39_s24 = int_to_ptr.vmem [resolvable:$true] %s38_s24 }
  0x4e   :  { %s4762_s26 = scalar_lea.vmem %s39_s24, 256  ;;  %p4767_p3 = scmp.lt.s32.totalorder %s39_s24, %s39_s24 }
  0x4f   :  { %p4763_p2 = scmp.ne.s32.totalorder %s39_s24, %s4762_s26  ;;  %p4768_p4 = scmp.lt.s32.totalorder %s4762_s26, %s4762_s26 }
  0x51   :  { %p4769_p5 = por %p4768_p4, %p4767_p3 }
  0x53   :  { %p4770_p6 = pnand %p4769_p5, %p4763_p2 }
  0x55   :  { %4773 = shalt.err (!%p4770_p6)
}
  0x56   :  { %s4939_s13 = smov 128   ;;  %s4940_s27 = smov 8  }
  0x57   :  { %s5673_s29 = sld [smem:[#allocation32_spill]]  ;;  %s4941_s30 = smov [#allocation7]  }
  0x58   :  { %s61_s7 = sshll.u32 %s4941_s30, 4  ;;  %s4942_s15 = smov [#allocation10]   ;;  %s62_s7 = int_to_ptr.vmem [resolvable:$true] %s61_s7 }
  0x59   :  { %s82_s0 = sshll.u32 %s4942_s15, 4  ;;  %s4782_s21 = scalar_lea.vmem %s62_s7, 16  ;;  %s83_s0 = int_to_ptr.vmem [resolvable:$true] %s82_s0 }
  0x5a   :  { %p4783_p7 = scmp.ne.s32.totalorder %s62_s7, %s4782_s21  ;;  %s4786_s1 = scalar_lea.vmem %s62_s7, 32 }
  0x5b   :  { %p4787_p8 = scmp.lt.s32.totalorder %s62_s7, %s62_s7  ;;  %p4788_p9 = scmp.lt.s32.totalorder %s4786_s1, %s4782_s21 }
  0x5d   :  { %44 = dma.hbm_to_vmem [thread:$0]  %s5673_s29, 256, %s39_s24, [#allocation3], %s4939_s13, %s4939_s13, %s4940_s27  }
  0x5e   :  { %p4789_p10 = por %p4788_p9, %p4787_p8 }
  0x60   :  { %p4790_p11 = pnand %p4789_p10, %p4783_p7 }
  0x62   :  { %4793 = shalt.err (!%p4790_p11)
}
  0x63   :  { %s5674_s2 = sld [smem:[#allocation34_spill]]  ;;  %s4802_s3 = scalar_lea.vmem %s83_s0, 32 }
  0x64   :  { %p4803_p12 = scmp.ne.s32.totalorder %s83_s0, %s4802_s3  ;;  %p4807_p13 = scmp.lt.s32.totalorder %s83_s0, %s83_s0 }
  0x65   :  { %p4808_p0 = scmp.lt.s32.totalorder %s4802_s3, %s4802_s3 }
  0x67   :  { %p4809_p1 = por %p4808_p0, %p4807_p13 }
  0x69   :  { %64 = dma.hbm_to_vmem [thread:$0]  %s5674_s2, 16, %s62_s7, [#allocation6]  }
  0x6a   :  { %p4810_p2 = pnand %p4809_p1, %p4803_p12 }
  0x6c   :  { %4813 = shalt.err (!%p4810_p2)
}
  0x6d   :  { %88 = dma.hbm_to_vmem [thread:$0]  %s5649_s5, 32, %s83_s0, [#allocation9], %s4934_s22, %s4934_s22, %s4935_s25  }
  0x6e   :  { %s4943_s13 = smov [#allocation13]   ;;  %s4944_s4 = smov [#allocation16]  }
  0x6f   :  { %s108_s28 = sshll.u32 %s4943_s13, 4  ;;  %s134_s29 = sshll.u32 %s4944_s4, 4  ;;  %s109_s28 = int_to_ptr.vmem [resolvable:$true] %s108_s28  ;;  %s135_s29 = int_to_ptr.vmem [resolvable:$true] %s134_s29 }
  0x70   :  { %s4822_s30 = scalar_lea.vmem %s109_s28, 32  ;;  %p4827_p4 = scmp.lt.s32.totalorder %s109_s28, %s109_s28 }
  0x71   :  { %p4823_p3 = scmp.ne.s32.totalorder %s109_s28, %s4822_s30  ;;  %p4828_p5 = scmp.lt.s32.totalorder %s4822_s30, %s4822_s30 }
  0x73   :  { %p4829_p6 = por %p4828_p5, %p4827_p4 }
  0x75   :  { %p4830_p7 = pnand %p4829_p6, %p4823_p3 }
  0x77   :  { %4833 = shalt.err (!%p4830_p7)
}
  0x78   :  { %114 = dma.hbm_to_vmem [thread:$0]  %s5652_s8, 32, %s109_s28, [#allocation12], %s4934_s22, %s4934_s22, %s4935_s25  }
  0x79   :  { %s4842_s5 = scalar_lea.vmem %s135_s29, 32  ;;  %p4847_p9 = scmp.lt.s32.totalorder %s135_s29, %s135_s29 }
  0x7a   :  { %p4843_p8 = scmp.ne.s32.totalorder %s135_s29, %s4842_s5  ;;  %p4848_p10 = scmp.lt.s32.totalorder %s4842_s5, %s4842_s5 }
  0x7c   :  { %p4849_p11 = por %p4848_p10, %p4847_p9 }
  0x7e   :  { %p4850_p12 = pnand %p4849_p11, %p4843_p8 }
  0x80   :  { %4853 = shalt.err (!%p4850_p12)
}
  0x81   :  { %140 = dma.hbm_to_vmem [thread:$0]  %s5655_s11, 32, %s135_s29, [#allocation15], %s4934_s22, %s4934_s22, %s4935_s25  }
  0x82   :  { %s4945_s1 = smov [#allocation19]   ;;  %s4946_s23 = smov [#allocation22]  }
  0x83   :  { %s160_s9 = sshll.u32 %s4945_s1, 4  ;;  %s187_s8 = sshll.u32 %s4946_s23, 4  ;;  %s161_s9 = int_to_ptr.vmem [resolvable:$true] %s160_s9  ;;  %s188_s8 = int_to_ptr.vmem [resolvable:$true] %s187_s8 }
  0x84   :  { %s4862_s2 = scalar_lea.vmem %s161_s9, 32  ;;  %p4867_p0 = scmp.lt.s32.totalorder %s161_s9, %s161_s9 }
  0x85   :  { %p4863_p13 = scmp.ne.s32.totalorder %s161_s9, %s4862_s2  ;;  %p4868_p1 = scmp.lt.s32.totalorder %s4862_s2, %s4862_s2 }
  0x87   :  { %p4869_p2 = por %p4868_p1, %p4867_p0 }
  0x89   :  { %p4870_p3 = pnand %p4869_p2, %p4863_p13 }
  0x8b   :  { %4873 = shalt.err (!%p4870_p3)
}
  0x8c   :  { %166 = dma.hbm_to_vmem [thread:$0]  %s5658_s14, 32, %s161_s9, [#allocation18], %s4934_s22, %s4934_s22, %s4935_s25  }
  0x8d   :  { %s4882_s11 = scalar_lea.vmem %s188_s8, 16  ;;  %s4886_s26 = scalar_lea.vmem %s188_s8, 32 }
  0x8e   :  { %p4883_p4 = scmp.ne.s32.totalorder %s188_s8, %s4882_s11  ;;  %p4887_p5 = scmp.lt.s32.totalorder %s188_s8, %s188_s8 }
  0x8f   :  { %p4888_p6 = scmp.lt.s32.totalorder %s4886_s26, %s4882_s11 }
  0x91   :  { %p4889_p7 = por %p4888_p6, %p4887_p5 }
  0x93   :  { %p4890_p8 = pnand %p4889_p7, %p4883_p4 }
  0x95   :  { %4893 = shalt.err (!%p4890_p8)
}
  0x96   :  { %190 = dma.hbm_to_vmem [thread:$0]  %s5661_s17, 16, %s188_s8, [#allocation21]  }
  0x97   :  { %4914 = dma.done.wait [#allocation3], 256  }
  0x98   :  { %4915 = vsyncadd [#allocation3], 4294967040 }
  0x99   :  { %4916 = dma.done.wait [#allocation6], 48  }
  0x9a   :  { %4917 = vsyncadd [#allocation6], 4294967248 }
  0x9b   :  { %4918 = dma.done.wait [#allocation9], 48  }
  0x9c   :  { %4919 = vsyncadd [#allocation9], 4294967248 }
  0x9d   :  { %4920 = dma.done.wait [#allocation12], 64  }
  0x9e   :  { %4921 = vsyncadd [#allocation12], 4294967232 }
  0x9f   :  { %4922 = dma.done.wait [#allocation15], 64  }
  0xa0   :  { %4923 = vsyncadd [#allocation15], 4294967232 }
  0xa1   :  { %4924 = dma.done.wait [#allocation18], 64  }
  0xa2   :  { %4925 = vsyncadd [#allocation18], 4294967232 }
  0xa3   :  { %4926 = dma.done.wait [#allocation21], 48  }
  0xa4   :  { %4927 = vsyncadd [#allocation21], 4294967248  ;;  %vm242_vm0 = vcmask 261120   ;;  %v235_v0 = vld [vmem:[#allocation2] sm:$0xff]  ;;  %v236_v1 = vld [vmem:[#allocation2 + $0x8] sm:$0xff]  ;;  %s5675_s25 = sld [smem:[#allocation36_spill]]  ;;  %v354_v42 = vlaneseq }
  0xa5   :  { %v243_v2 = vsel %vm242_vm0, %v235_v0, 0.0  ;;  %v246_v3 = vsel %vm242_vm0, %v236_v1, 0.0  ;;  %v4947_v15 = vmov 0.0   ;;  %vm4948_vm1 = vmmov 0   ;;  %v3986_v25 = vld [vmem:[#allocation7] ss:$0 sm:$0xff] }
  0xa6   :  { %244 = vadd.xlane.f32.xlu0 %v243_v2  ;;  %4206 = vmatprep.subr.bf16.mxu0 %v4947_v15  ;;  %v3987_v29 = vld [vmem:[#allocation8] ss:$0 sm:$0xff]  ;;  %v3988_v34 = vld [vmem:[#allocation10] ss:$0 sm:$0xff]  ;;  %s4949_s30 = smov 96   ;;  %s4950_s7 = smov 88  }
  0xa7   :  { %4210 = vmatprep.mubr.msk.bf16.mxu0 %vm4948_vm1, %v4947_v15  ;;  %4214 = vmatprep.subr.mxu1 %v4947_v15  ;;  %s4951_s15 = smov 80   ;;  %s4952_s5 = smov 72   ;;  %vm361_vm2 = vcmask 64512   ;;  %v237_v43 = vld [vmem:[#allocation5] sm:$0x3]  ;;  %v5184_v45 = vshrl.u32 %v354_v42, 7 }
  0xa8   :  { %4216 = vmatprep.mubr.msk.f32.mxu1 %vm4948_vm1, %v4947_v15  ;;  %s4953_s0 = smov 120   ;;  %s4954_s21 = smov 112   ;;  %v3985_v44 = vadd.f32 -1.0, %v237_v43  ;;  %vm1035_vm3 = vcmask 130048   ;;  %vm1037_vm4 = vcmask 195584   ;;  %vm1961_vm5 = vcmask 523264  }
  0xa9   :  { %s4955_s1 = smov 104   ;;  %v356_v47 = vsub.s32 0, %v5184_v45  ;;  %s4956_s9 = smov 64   ;;  %vm3836_vm6 = vcmask 1041409  }
  0xaa   :  { %247 = vadd.xlane.f32.xlu0 %v246_v3  ;;  %v4516_v14 = vld [vmem:[%s5675_s25 + $0x8] sm:$0xff]   ;;  %v4517_v16 = vld [vmem:[%s5675_s25] sm:$0xff]   ;;  %v5186_v46 = vmul.f32 1e+09, %v3985_v44  ;;  %s4957_s23 = smov 56   ;;  %s4958_s8 = smov 40  }
  0xab   :  { %4207 = vmatpush3.bf16.msra.mxu0 %v4516_v14  ;;  %s4959_s2 = smov 48   ;;  %s4960_s13 = smov 24  }
  0xac   :  { %4208 = vmatprep.subr.bf16.mxu0 %v4947_v15  ;;  %v5190_v48 = vrot.slane %v5186_v46, %v356_v47  ;;  %s4961_s3 = smov [#allocation23]  }
  0xad   :  { %s3970_s24 = sshll.u32 %s4961_s3, 4  ;;  %s3971_s24 = int_to_ptr.vmem [resolvable:$true] %s3970_s24 }
  0xae   :  { %p4899_p10 = scmp.lt.s32.totalorder %s3971_s24, %s3971_s24 }
  0xaf   :  { %4209 = vmatpush3.bf16.msra.mxu0 %v4517_v16 }
  0xb0   :  { %4229 = vmatprep.subr.mxu0 %v4947_v15 }
 0x12f   :  { %v245_v4 = vpop.xlane.xlu0 %244 }
 0x130   :  { %v250_v5 = vmul.f32 0.03125, %v245_v4 }
 0x132   :  { %v252_v6 = vsub.f32 %v235_v0, %v250_v5 }
 0x133   :  { %v248_v7 = vpop.xlane.xlu0 %247 }
 0x134   :  { %v251_v8 = vmul.f32 0.03125, %v248_v7  ;;  %v254_v9 = vmul.f32 %v252_v6, %v252_v6 }
 0x136   :  { %v253_v10 = vsub.f32 %v236_v1, %v251_v8  ;;  %v256_v11 = vsel %vm242_vm0, %v254_v9, 0.0 }
 0x137   :  { %257 = vadd.xlane.f32.xlu1 %v256_v11 }
 0x138   :  { %v255_v12 = vmul.f32 %v253_v10, %v253_v10 }
 0x13a   :  { %v259_v13 = vsel %vm242_vm0, %v255_v12, 0.0 }
 0x13b   :  { %260 = vadd.xlane.f32.xlu1 %v259_v13 }
 0x1c0   :  { %v258_v17 = vpop.xlane.xlu1 %257 }
 0x1c1   :  { %v262_v18 = vmul.f32 0.03125, %v258_v17 }
 0x1c3   :  { %v264_v19 = vadd.f32 1e-12, %v262_v18 }
 0x1c4   :  { %v261_v20 = vpop.xlane.xlu1 %260 }
 0x1c5   :  { %4540 = vrsqrt.f32 %v264_v19  ;;  %v263_v21 = vmul.f32 0.03125, %v261_v20  ;;  %v1041_v20 = vsub.s32 1, %v5184_v45 }
 0x1c7   :  { %v265_v22 = vadd.f32 1e-12, %v263_v21 }
 0x1c9   :  { %4542 = vrsqrt.f32 %v265_v22 }
 0x1d2   :  { %v4541_v23 = vpop.eup %4540 }
 0x1d3   :  { %v268_v24 = vmul.f32 %v4541_v23, %v252_v6 }
 0x1d5   :  { %v276_v28 = vmul.f32 %v3986_v25, %v268_v24 }
 0x1d6   :  { %v4543_v26 = vpop.eup %4542 }
 0x1d7   :  { %v269_v27 = vmul.f32 %v4543_v26, %v253_v10  ;;  %v5149_v31 = vadd.f32 %v3987_v29, %v276_v28 }
 0x1d9   :  { %v277_v30 = vmul.f32 %v3986_v25, %v269_v27  ;;  %v5258_v25 = vrot.slane %v5186_v46, %v1041_v20 }
 0x1db   :  { %v5151_v32 = vadd.f32 %v3987_v29, %v277_v30 }
 0x1dd   :  { %v286_v33 = vpack.c.bf16 %v5151_v32, %v5149_v31 }
 0x1df   :  { %4211 = vmatmul.mubr.msk.bf16.vlgmr.msra.gmra.mxu0 %vm242_vm0, %v286_v33 }
 0x1e0   :  { %4231 = vmatprep.mubr.msk.f32.mxu0 %vm4948_vm1, %v4947_v15 }
 0x29f   :  { %v347_v35 = vpop.f32.mrf.mxu0 }
 0x2a0   :  { %v5158_v36 = vadd.f32 %v3988_v34, %v347_v35 }
 0x2a1   :  { %v4212_v37 = vpop.f32.mrf.mxu0 }
 0x2a2   :  { %359 = vrot.lane.b32.xlu0 %v5158_v36, %s4949_s30 }
 0x2a3   :  { %v350_v38 = vpop.f32.mrf.mxu0 }
 0x2a4   :  { %v5168_v40 = vadd.f32 %v3988_v34, %v350_v38 }
 0x2a5   :  { %v4213_v39 = vpop.f32.mrf.mxu0 }
 0x2a6   :  { %526 = vrot.lane.b32.xlu0 %v5158_v36, %s4950_s7 }
 0x2aa   :  { %692 = vrot.lane.b32.xlu0 %v5158_v36, %s4951_s15 }
 0x2ae   :  { %858 = vrot.lane.b32.xlu0 %v5158_v36, %s4952_s5 }
 0x2b2   :  { %1044 = vrot.lane.b32.xlu0 %v5168_v40, %s4949_s30 }
 0x2b6   :  { %1208 = vrot.lane.b32.xlu0 %v5168_v40, %s4953_s0 }
 0x2ba   :  { %1374 = vrot.lane.b32.xlu0 %v5168_v40, %s4954_s21 }
 0x2be   :  { %1540 = vrot.lane.b32.xlu0 %v5168_v40, %s4955_s1 }
 0x314   :  { %v360_v41 = vpop.permute.xlu0 %359 }
 0x315   :  { %4215 = vmatpush3.xpose.msk.msra.mxu1 %vm361_vm2, %v360_v41 }
 0x316   :  { %4219 = vmatprep.subr.mxu1 %v4947_v15 }
 0x318   :  { %4217 = vmatmul.mubr.msk.f32.vlgmr.msra.gmra.mxu1 %vm361_vm2, %v5158_v36  ;;  %v527_v61 = vpop.permute.xlu0 %526 }
 0x319   :  { %4221 = vmatprep.mubr.msk.f32.mxu1 %vm4948_vm1, %v4947_v15 }
 0x31c   :  { %v693_v63 = vpop.permute.xlu0 %692 }
 0x320   :  { %v859_v2 = vpop.permute.xlu0 %858 }
 0x324   :  { %v1045_v4 = vpop.permute.xlu0 %1044 }
 0x328   :  { %v1209_v6 = vpop.permute.xlu0 %1208 }
 0x32c   :  { %v1375_v8 = vpop.permute.xlu0 %1374 }
 0x330   :  { %v1541_v10 = vpop.permute.xlu0 %1540 }
 0x3d8   :  { %v432_v49 = vpop.f32.mrf.mxu1 }
 0x3d9   :  { %v433_v50 = vadd.f32 %v432_v49, %v5190_v48 }
 0x3da   :  { %v4218_v51 = vpop.f32.mrf.mxu1 }
 0x3db   :  { %v436_v52 = vsel %vm361_vm2, %v433_v50, -inf }
 0x3dc   :  { %437 = vmax.xlane.f32.xlu1 %v436_v52 }
 0x3ed   :  { %448 = vrot.lane.b32.xlu1 %v5158_v36, %s4956_s9 }
 0x3f1   :  { %524 = vrot.lane.b32.xlu1 %v5158_v36, %s4953_s0 }
 0x465   :  { %v438_v53 = vpop.xlane.xlu1 %437 }
 0x466   :  { %v439_v54 = vsub.f32 %v433_v50, %v438_v53 }
 0x468   :  { %v440_v55 = vmul.f32 1.442695, %v439_v54 }
 0x469   :  { %v449_v56 = vpop.permute.xlu1 %448 }
 0x46a   :  { %4544 = vpow2.f32 %v440_v55  ;;  %4220 = vmatpush3.msra.mxu1 %v449_v56 }
 0x46b   :  { %4224 = vmatprep.subr.mxu1 %v4947_v15 }
 0x46d   :  { %v525_v59 = vpop.permute.xlu1 %524 }
 0x477   :  { %v4545_v57 = vpop.eup %4544 }
 0x478   :  { %v442_v58 = vsel %vm361_vm2, %v4545_v57, 0.0 }
 0x479   :  { %443 = vadd.xlane.f32.xlu1 %v442_v58 }
 0x48a   :  { %690 = vrot.lane.b32.xlu1 %v5158_v36, %s4954_s21 }
 0x48e   :  { %856 = vrot.lane.b32.xlu1 %v5158_v36, %s4955_s1 }
 0x492   :  { %1210 = vrot.lane.b32.xlu1 %v5168_v40, %s4950_s7 }
 0x496   :  { %1376 = vrot.lane.b32.xlu1 %v5168_v40, %s4951_s15 }
 0x49a   :  { %1542 = vrot.lane.b32.xlu1 %v5168_v40, %s4952_s5 }
 0x502   :  { %v444_v60 = vpop.xlane.xlu1 %443 }
 0x503   :  { %4546 = vrcp.f32 %v444_v60 }
 0x506   :  { %v691_v1 = vpop.permute.xlu1 %690 }
 0x50a   :  { %v857_v3 = vpop.permute.xlu1 %856 }
 0x50e   :  { %v1211_v5 = vpop.permute.xlu1 %1210 }
 0x510   :  { %v4547_v62 = vpop.eup %4546 }
 0x511   :  { %v447_v0 = vmul.f32 %v4547_v62, %v4545_v57 }
 0x512   :  { %v1377_v7 = vpop.permute.xlu1 %1376 }
 0x513   :  { %4222 = vmatmul.mubr.msk.f32.vlgmr.msra.gmra.mxu1 %vm361_vm2, %v447_v0 }
 0x514   :  { %4225 = vmatpush3.xpose.msk.msra.mxu1 %vm361_vm2, %v527_v61  ;;  %4226 = vmatprep.mubr.msk.f32.mxu1 %vm4948_vm1, %v4947_v15 }
 0x515   :  { %4234 = vmatprep.subr.mxu1 %v4947_v15 }
 0x516   :  { %v1543_v9 = vpop.permute.xlu1 %1542 }
 0x517   :  { %4227 = vmatmul.mubr.msk.f32.vlgmr.msra.gmra.mxu1 %vm361_vm2, %v525_v59 }
 0x518   :  { %4235 = vmatpush3.xpose.msk.msra.mxu1 %vm361_vm2, %v693_v63  ;;  %4236 = vmatprep.mubr.msk.f32.mxu1 %vm4948_vm1, %v4947_v15 }
 0x519   :  { %4244 = vmatprep.subr.mxu1 %v4947_v15 }
 0x51b   :  { %4237 = vmatmul.mubr.msk.f32.vlgmr.msra.gmra.mxu1 %vm361_vm2, %v691_v1 }
 0x51c   :  { %4245 = vmatpush3.xpose.msk.msra.mxu1 %vm361_vm2, %v859_v2  ;;  %4246 = vmatprep.mubr.msk.f32.mxu1 %vm4948_vm1, %v4947_v15 }
 0x51d   :  { %4254 = vmatprep.subr.mxu1 %v4947_v15 }
 0x51f   :  { %4247 = vmatmul.mubr.msk.f32.vlgmr.msra.gmra.mxu1 %vm361_vm2, %v857_v3 }
 0x520   :  { %4255 = vmatpush3.xpose.msk.msra.mxu1 %vm361_vm2, %v1045_v4  ;;  %4256 = vmatprep.mubr.msk.f32.mxu1 %vm4948_vm1, %v4947_v15 }
 0x521   :  { %4264 = vmatprep.subr.mxu1 %v4947_v15 }
 0x523   :  { %4257 = vmatmul.mubr.msk.f32.vlgmr.msra.gmra.mxu1 %vm361_vm2, %v5168_v40 }
 0x524   :  { %4265 = vmatpush3.xpose.msk.msra.mxu1 %vm361_vm2, %v1211_v5  ;;  %4266 = vmatprep.mubr.msk.f32.mxu1 %vm4948_vm1, %v4947_v15 }
 0x525   :  { %4274 = vmatprep.subr.mxu1 %v4947_v15 }
 0x527   :  { %4267 = vmatmul.mubr.msk.f32.vlgmr.msra.gmra.mxu1 %vm361_vm2, %v1209_v6 }
 0x528   :  { %4275 = vmatpush3.xpose.msk.msra.mxu1 %vm361_vm2, %v1377_v7  ;;  %4276 = vmatprep.mubr.msk.f32.mxu1 %vm4948_vm1, %v4947_v15 }
 0x529   :  { %4284 = vmatprep.subr.mxu1 %v4947_v15 }
 0x52b   :  { %4277 = vmatmul.mubr.msk.f32.vlgmr.msra.gmra.mxu1 %vm361_vm2, %v1375_v8 }
 0x52c   :  { %4285 = vmatpush3.xpose.msk.msra.mxu1 %vm361_vm2, %v1543_v9  ;;  %4286 = vmatprep.mubr.msk.f32.mxu1 %vm4948_vm1, %v4947_v15 }
 0x52d   :  { %4294 = vmatprep.subr.bf16.mxu1 %v4947_v15 }
 0x52f   :  { %4287 = vmatmul.mubr.msk.f32.vlgmr.msra.gmra.mxu1 %vm361_vm2, %v1541_v10 }
 0x530   :  { %4298 = vmatprep.mubr.msk.bf16.mxu1 %vm4948_vm1, %v4947_v15 }
 0x5d3   :  { %v5249_v11 = vpop.f32.mrf.mxu1 }
 0x5d5   :  { %v4223_v12 = vpop.f32.mrf.mxu1 }
 0x5d7   :  { %v598_v13 = vpop.f32.mrf.mxu1 }
 0x5d8   :  { %v599_v14 = vadd.f32 %v598_v13, %v5190_v48 }
 0x5d9   :  { %v4228_v16 = vpop.f32.mrf.mxu1 }
 0x5da   :  { %v602_v17 = vsel %vm361_vm2, %v599_v14, -inf }
 0x5db   :  { %v764_v18 = vpop.f32.mrf.mxu1  ;;  %603 = vmax.xlane.f32.xlu1 %v602_v17 }
 0x5dc   :  { %v765_v19 = vadd.f32 %v764_v18, %v5190_v48 }
 0x5dd   :  { %v4238_v21 = vpop.f32.mrf.mxu1 }
 0x5de   :  { %v768_v22 = vsel %vm361_vm2, %v765_v19, -inf }
 0x5df   :  { %v930_v23 = vpop.f32.mrf.mxu1  ;;  %769 = vmax.xlane.f32.xlu0 %v768_v22 }
 0x5e0   :  { %v931_v24 = vadd.f32 %v930_v23, %v5190_v48 }
 0x5e1   :  { %v4248_v26 = vpop.f32.mrf.mxu1 }
 0x5e2   :  { %v934_v27 = vsel %vm361_vm2, %v931_v24, -inf }
 0x5e3   :  { %935 = vmax.xlane.f32.xlu0 %v934_v27  ;;  %v1116_v28 = vpop.f32.mrf.mxu1 }
 0x5e4   :  { %v1117_v29 = vadd.f32 %v1116_v28, %v5258_v25 }
 0x5e5   :  { %v4258_v30 = vpop.f32.mrf.mxu1 }
 0x5e6   :  { %v1120_v33 = vsel %vm361_vm2, %v1117_v29, -inf }
 0x5e7   :  { %1121 = vmax.xlane.f32.xlu0 %v1120_v33  ;;  %v1282_v34 = vpop.f32.mrf.mxu1 }
 0x5e8   :  { %v1283_v35 = vadd.f32 %v1282_v34, %v5258_v25 }
 0x5e9   :  { %v4268_v37 = vpop.f32.mrf.mxu1 }
 0x5ea   :  { %v1286_v38 = vsel %vm361_vm2, %v1283_v35, -inf }
 0x5eb   :  { %1287 = vmax.xlane.f32.xlu1 %v1286_v38  ;;  %v1448_v39 = vpop.f32.mrf.mxu1 }
 0x5ec   :  { %v1449_v41 = vadd.f32 %v1448_v39, %v5258_v25 }
 0x5ed   :  { %v4278_v42 = vpop.f32.mrf.mxu1 }
 0x5ee   :  { %v1452_v43 = vsel %vm361_vm2, %v1449_v41, -inf }
 0x5ef   :  { %1453 = vmax.xlane.f32.xlu0 %v1452_v43  ;;  %v1614_v44 = vpop.f32.mrf.mxu1 }
 0x5f0   :  { %v1615_v46 = vadd.f32 %v1614_v44, %v5258_v25 }
 0x5f1   :  { %v4288_v45 = vpop.f32.mrf.mxu1 }
 0x5f2   :  { %v1618_v47 = vsel %vm361_vm2, %v1615_v46, -inf }
 0x5fc   :  { %614 = vrot.lane.b32.xlu1 %v5158_v36, %s4957_s23 }
 0x620   :  { %1619 = vmax.xlane.f32.xlu1 %v1618_v47 }
 0x631   :  { %946 = vrot.lane.b32.xlu1 %v5158_v36, %s4958_s8 }
 0x635   :  { %1132 = vrot.lane.b32.xlu1 %v5168_v40, %s4956_s9 }
 0x664   :  { %v604_v49 = vpop.xlane.xlu1 %603 }
 0x665   :  { %v605_v50 = vsub.f32 %v599_v14, %v604_v49 }
 0x667   :  { %v606_v51 = vmul.f32 1.442695, %v605_v50 }
 0x668   :  { %v770_v52 = vpop.xlane.xlu0 %769 }
 0x669   :  { %4548 = vpow2.f32 %v606_v51  ;;  %v771_v53 = vsub.f32 %v765_v19, %v770_v52 }
 0x66b   :  { %v772_v54 = vmul.f32 1.442695, %v771_v53 }
 0x66c   :  { %v936_v61 = vpop.xlane.xlu0 %935 }
 0x66d   :  { %4550 = vpow2.f32 %v772_v54  ;;  %v937_v62 = vsub.f32 %v931_v24, %v936_v61 }
 0x66f   :  { %v938_v1 = vmul.f32 1.442695, %v937_v62 }
 0x670   :  { %v1122_v63 = vpop.xlane.xlu0 %1121 }
 0x671   :  { %v1123_v0 = vsub.f32 %v1117_v29, %v1122_v63  ;;  %4552 = vpow2.f32 %v938_v1  ;;  %v4519_v63 = vld [vmem:[%s5650_s6] sm:$0xff]  }
 0x673   :  { %v1124_v4 = vmul.f32 1.442695, %v1123_v0 }
 0x674   :  { %v1288_v55 = vpop.xlane.xlu1 %1287 }
 0x675   :  { %v1289_v2 = vsub.f32 %v1283_v35, %v1288_v55  ;;  %4554 = vpow2.f32 %v1124_v4 }
 0x676   :  { %v4549_v56 = vpop.eup %4548 }
 0x677   :  { %v608_v57 = vsel %vm361_vm2, %v4549_v56, 0.0  ;;  %v1290_v5 = vmul.f32 1.442695, %v1289_v2 }
 0x678   :  { %v615_v58 = vpop.permute.xlu1 %614  ;;  %609 = vadd.xlane.f32.xlu0 %v608_v57  ;;  %v1454_v3 = vpop.xlane.xlu0 %1453 }
 0x679   :  { %4230 = vmatpush3.msra.mxu0 %v615_v58  ;;  %v1455_v6 = vsub.f32 %v1449_v41, %v1454_v3  ;;  %4556 = vpow2.f32 %v1290_v5 }
 0x67a   :  { %v4551_v59 = vpop.eup %4550  ;;  %4239 = vmatprep.subr.mxu0 %v4947_v15 }
 0x67b   :  { %v774_v60 = vsel %vm361_vm2, %v4551_v59, 0.0  ;;  %v1456_v7 = vmul.f32 1.442695, %v1455_v6 }
 0x67c   :  { %775 = vadd.xlane.f32.xlu1 %v774_v60  ;;  %v4518_v60 = vld [vmem:[%s5650_s6 + $0x8] sm:$0xff]  }
 0x67d   :  { %4558 = vpow2.f32 %v1456_v7  ;;  %4295 = vmatpush3.bf16.msra.mxu1 %v4518_v60 }
 0x67e   :  { %v4553_v8 = vpop.eup %4552  ;;  %4296 = vmatprep.subr.bf16.mxu1 %v4947_v15 }
 0x681   :  { %4297 = vmatpush3.bf16.msra.mxu1 %v4519_v63  ;;  %v4021_v63 = vld [vmem:[#allocation14] ss:$0 sm:$0xff] }
 0x682   :  { %v4555_v12 = vpop.eup %4554  ;;  %4310 = vmatprep.subr.bf16.mxu1 %v4947_v15 }
 0x683   :  { %v1126_v17 = vsel %vm361_vm2, %v4555_v12, 0.0 }
 0x686   :  { %v4557_v14 = vpop.eup %4556 }
 0x687   :  { %v1292_v16 = vsel %vm361_vm2, %v4557_v14, 0.0 }
 0x68a   :  { %v4559_v18 = vpop.eup %4558 }
 0x68b   :  { %v1458_v19 = vsel %vm361_vm2, %v4559_v18, 0.0 }
 0x68d   :  { %1298 = vrot.lane.b32.xlu1 %v5168_v40, %s4957_s23 }
 0x68e   :  { %780 = vrot.lane.b32.xlu0 %v5158_v36, %s4959_s2  ;;  %v940_v36 = vsel %vm361_vm2, %v4553_v8, 0.0 }
 0x6a9   :  { %v1620_v9 = vpop.xlane.xlu1 %1619 }
 0x6aa   :  { %v1621_v10 = vsub.f32 %v1615_v46, %v1620_v9 }
 0x6ac   :  { %v1622_v13 = vmul.f32 1.442695, %v1621_v10 }
 0x6ad   :  { %941 = vadd.xlane.f32.xlu0 %v940_v36  ;;  %v947_v22 = vpop.permute.xlu1 %946 }
 0x6ae   :  { %4560 = vpow2.f32 %v1622_v13 }
 0x6b1   :  { %1293 = vadd.xlane.f32.xlu0 %v1292_v16  ;;  %1127 = vadd.xlane.f32.xlu1 %v1126_v17  ;;  %v1133_v23 = vpop.permute.xlu1 %1132 }
 0x6b5   :  { %1459 = vadd.xlane.f32.xlu1 %v1458_v19 }
 0x6bb   :  { %v4561_v20 = vpop.eup %4560 }
 0x6bc   :  { %v1624_v21 = vsel %vm361_vm2, %v4561_v20, 0.0 }
 0x6bd   :  { %1625 = vadd.xlane.f32.xlu0 %v1624_v21 }
 0x6c6   :  { %1630 = vrot.lane.b32.xlu1 %v5168_v40, %s4958_s8 }
 0x6d3   :  { %1464 = vrot.lane.b32.xlu0 %v5168_v40, %s4959_s2 }
 0x701   :  { %v610_v24 = vpop.xlane.xlu0 %609 }
 0x702   :  { %4562 = vrcp.f32 %v610_v24 }
 0x705   :  { %v776_v26 = vpop.xlane.xlu1 %775  ;;  %v781_v29 = vpop.permute.xlu0 %780 }
 0x706   :  { %4564 = vrcp.f32 %v776_v26 }
 0x709   :  { %v1299_v40 = vpop.permute.xlu1 %1298 }
 0x70f   :  { %v4563_v27 = vpop.eup %4562 }
 0x710   :  { %v613_v28 = vmul.f32 %v4563_v27, %v4549_v56  ;;  %v4016_v27 = vld [vmem:[#allocation11] ss:$0 sm:$0xff] }
 0x712   :  { %4232 = vmatmul.mubr.msk.f32.vlgmr.msra.gmra.mxu0 %vm361_vm2, %v613_v28 }
 0x713   :  { %v4565_v30 = vpop.eup %4564  ;;  %4240 = vmatpush3.msra.mxu0 %v781_v29  ;;  %4241 = vmatprep.mubr.msk.f32.mxu0 %vm4948_vm1, %v4947_v15 }
 0x714   :  { %4249 = vmatprep.subr.mxu0 %v4947_v15  ;;  %v779_v33 = vmul.f32 %v4565_v30, %v4551_v59 }
 0x716   :  { %4242 = vmatmul.mubr.msk.f32.vlgmr.msra.gmra.mxu0 %vm361_vm2, %v779_v33 }
 0x717   :  { %4250 = vmatpush3.msra.mxu0 %v947_v22  ;;  %4251 = vmatprep.mubr.msk.f32.mxu0 %vm4948_vm1, %v4947_v15 }
 0x718   :  { %4259 = vmatprep.subr.mxu0 %v4947_v15 }
 0x736   :  { %v942_v34 = vpop.xlane.xlu0 %941 }
 0x737   :  { %4566 = vrcp.f32 %v942_v34 }
 0x73a   :  { %v1128_v35 = vpop.xlane.xlu1 %1127  ;;  %v1294_v37 = vpop.xlane.xlu0 %1293 }
 0x73b   :  { %4568 = vrcp.f32 %v1128_v35 }
 0x73c   :  { %4570 = vrcp.f32 %v1294_v37 }
 0x73e   :  { %v1460_v38 = vpop.xlane.xlu1 %1459 }
 0x73f   :  { %4572 = vrcp.f32 %v1460_v38 }
 0x742   :  { %v1631_v51 = vpop.permute.xlu1 %1630 }
 0x744   :  { %v4567_v39 = vpop.eup %4566 }
 0x745   :  { %v945_v41 = vmul.f32 %v4567_v39, %v4553_v8 }
 0x746   :  { %v1626_v42 = vpop.xlane.xlu0 %1625 }
 0x747   :  { %4574 = vrcp.f32 %v1626_v42  ;;  %4252 = vmatmul.mubr.msk.f32.vlgmr.msra.gmra.mxu0 %vm361_vm2, %v945_v41 }
 0x748   :  { %v4569_v43 = vpop.eup %4568  ;;  %4260 = vmatpush3.msra.mxu0 %v1133_v23  ;;  %4261 = vmatprep.mubr.msk.f32.mxu0 %vm4948_vm1, %v4947_v15 }
 0x749   :  { %4269 = vmatprep.subr.mxu0 %v4947_v15  ;;  %v1131_v44 = vmul.f32 %v4569_v43, %v4555_v12  ;;  %v4571_v45 = vpop.eup %4570 }
 0x74a   :  { %v1297_v46 = vmul.f32 %v4571_v45, %v4557_v14  ;;  %v1465_v49 = vpop.permute.xlu0 %1464 }
 0x74b   :  { %4262 = vmatmul.mubr.msk.f32.vlgmr.msra.gmra.mxu0 %vm361_vm2, %v1131_v44 }
 0x74c   :  { %4270 = vmatpush3.msra.mxu0 %v1299_v40  ;;  %4271 = vmatprep.mubr.msk.f32.mxu0 %vm4948_vm1, %v4947_v15  ;;  %v4573_v47 = vpop.eup %4572 }
 0x74d   :  { %4279 = vmatprep.subr.mxu0 %v4947_v15  ;;  %v1463_v50 = vmul.f32 %v4573_v47, %v4559_v18 }
 0x74f   :  { %4272 = vmatmul.mubr.msk.f32.vlgmr.msra.gmra.mxu0 %vm361_vm2, %v1297_v46 }
 0x750   :  { %4280 = vmatpush3.msra.mxu0 %v1465_v49  ;;  %4281 = vmatprep.mubr.msk.f32.mxu0 %vm4948_vm1, %v4947_v15 }
 0x751   :  { %4289 = vmatprep.subr.mxu0 %v4947_v15 }
 0x753   :  { %4282 = vmatmul.mubr.msk.f32.vlgmr.msra.gmra.mxu0 %vm361_vm2, %v1463_v50  ;;  %v4521_v50 = vld [vmem:[%s5654_s10] sm:$0xff]  }
 0x754   :  { %v4575_v52 = vpop.eup %4574  ;;  %4290 = vmatpush3.msra.mxu0 %v1631_v51  ;;  %4291 = vmatprep.mubr.msk.f32.mxu0 %vm4948_vm1, %v4947_v15 }
 0x755   :  { %v1629_v53 = vmul.f32 %v4575_v52, %v4561_v20  ;;  %4302 = vmatprep.subr.bf16.mxu0 %v4947_v15 }
 0x757   :  { %4292 = vmatmul.mubr.msk.f32.vlgmr.msra.gmra.mxu0 %vm361_vm2, %v1629_v53 }
 0x758   :  { %4306 = vmatprep.mubr.msk.bf16.mxu0 %vm4948_vm1, %v4947_v15 }
 0x7d2   :  { %v686_v54 = vpop.f32.mrf.mxu0 }
 0x7d4   :  { %v4233_v55 = vpop.f32.mrf.mxu0 }
 0x7d6   :  { %v852_v56 = vpop.f32.mrf.mxu0 }
 0x7d8   :  { %v4243_v57 = vpop.f32.mrf.mxu0 }
 0x807   :  { %v1018_v58 = vpop.f32.mrf.mxu0 }
 0x809   :  { %v4253_v59 = vpop.f32.mrf.mxu0 }
 0x80a   :  { %v4020_v59 = vld [vmem:[#allocation13] ss:$0 sm:$0xff] }
 0x80b   :  { %v1204_v61 = vpop.f32.mrf.mxu0 }
 0x80d   :  { %v4263_v62 = vpop.f32.mrf.mxu0 }
 0x80f   :  { %v1370_v0 = vpop.f32.mrf.mxu0 }
 0x810   :  { %v4486_v1 = vpack.i.bf16 %v1370_v0, %v686_v54 }
 0x811   :  { %v4273_v2 = vpop.f32.mrf.mxu0 }
 0x812   :  { %4487 = vrot.lane.b32.xlu0 %v4486_v1, %s4940_s27 }
 0x813   :  { %v1536_v3 = vpop.f32.mrf.mxu0 }
 0x814   :  { %v4491_v4 = vpack.i.bf16 %v1536_v3, %v852_v56 }
 0x815   :  { %v4283_v5 = vpop.f32.mrf.mxu0 }
 0x816   :  { %4492 = vrot.lane.b32.xlu1 %v4491_v4, %s4934_s22  ;;  %v4522_v4 = vld [vmem:[%s5656_s12 + $0x18] sm:$0xff]   ;;  %v4523_v5 = vld [vmem:[%s5656_s12 + $0x10] sm:$0xff]  }
 0x817   :  { %v1702_v6 = vpop.f32.mrf.mxu0 }
 0x818   :  { %v4496_v7 = vpack.i.bf16 %v1702_v6, %v1018_v58  ;;  %v4524_v6 = vld [vmem:[%s5656_s12 + $0x8] sm:$0xff]  }
 0x819   :  { %v4293_v8 = vpop.f32.mrf.mxu0 }
 0x81a   :  { %4497 = vrot.lane.b32.xlu0 %v4496_v7, %s4960_s13  ;;  %v4525_v7 = vld [vmem:[%s5656_s12] sm:$0xff]   ;;  %v4022_v8 = vld [vmem:[#allocation16] ss:$0 sm:$0xff] }
 0x884   :  { %v4488_v9 = vpop.permute.xlu0 %4487 }
 0x885   :  { %v4490_v12 = vunpack.i.h.bf16 %v4488_v9  ;;  %v4489_v13 = vunpack.i.l.bf16 %v4488_v9 }
 0x887   :  { %v1718_v17 = vsel %vm361_vm2, %v1204_v61, %v4490_v12  ;;  %v1034_v18 = vsel %vm361_vm2, %v5249_v11, %v4489_v13 }
 0x888   :  { %v4493_v10 = vpop.permute.xlu1 %4492 }
 0x889   :  { %v4495_v36 = vunpack.i.h.bf16 %v4493_v10  ;;  %v4494_v14 = vunpack.i.l.bf16 %v4493_v10 }
 0x88b   :  { %v1719_v21 = vsel %vm1035_vm3, %v1718_v17, %v4495_v36  ;;  %v1036_v22 = vsel %vm1035_vm3, %v1034_v18, %v4494_v14 }
 0x88c   :  { %v4498_v16 = vpop.permute.xlu0 %4497 }
 0x88d   :  { %v4500_v19 = vunpack.i.h.bf16 %v4498_v16  ;;  %v4499_v20 = vunpack.i.l.bf16 %v4498_v16 }
 0x88f   :  { %v1720_v23 = vsel %vm1037_vm4, %v1719_v21, %v4500_v19  ;;  %v1038_v24 = vsel %vm1037_vm4, %v1036_v22, %v4499_v20 }
 0x890   :  { %v1721_v26 = vpack.c.bf16 %v1720_v23, %v1038_v24 }
 0x892   :  { %4299 = vmatmul.mubr.msk.bf16.vlgmr.msra.gmra.mxu1 %vm242_vm0, %v1721_v26 }
 0x893   :  { %4318 = vmatprep.mubr.msk.bf16.mxu1 %vm4948_vm1, %v4947_v15  ;;  %4311 = vmatpush3.bf16.msra.mxu1 %v4522_v4  ;;  %v4032_v4 = vld [vmem:[#allocation19] ss:$0 sm:$0xff] }
 0x894   :  { %4312 = vmatprep.subr.bf16.mxu1 %v4947_v15 }
 0x897   :  { %4313 = vmatpush3.bf16.msra.mxu1 %v4523_v5 }
 0x898   :  { %4314 = vmatprep.subr.bf16.mxu1 %v4947_v15 }
 0x89b   :  { %4315 = vmatpush3.bf16.msra.mxu1 %v4524_v6 }
 0x89c   :  { %4316 = vmatprep.subr.bf16.mxu1 %v4947_v15 }
 0x89f   :  { %4317 = vmatpush3.bf16.msra.mxu1 %v4525_v7 }
 0x8a0   :  { %4340 = vmatprep.subr.mxu1 %v4947_v15 }
 0x952   :  { %v1782_v28 = vpop.f32.mrf.mxu1 }
 0x953   :  { %v1783_v29 = vadd.f32 %v4016_v27, %v1782_v28 }
 0x954   :  { %v4300_v11 = vpop.f32.mrf.mxu1 }
 0x955   :  { %v1789_v30 = vadd.f32 %v1783_v29, %v5149_v31 }
 0x956   :  { %v1785_v33 = vpop.f32.mrf.mxu1 }
 0x957   :  { %v1786_v40 = vadd.f32 %v4016_v27, %v1785_v33  ;;  %v1793_v34 = vsel %vm242_vm0, %v1789_v30, 0.0 }
 0x958   :  { %1794 = vadd.xlane.f32.xlu1 %v1793_v34  ;;  %v4301_v35 = vpop.f32.mrf.mxu1 }
 0x959   :  { %v1790_v37 = vadd.f32 %v1786_v40, %v5151_v32  ;;  %v4520_v32 = vld [vmem:[%s5654_s10 + $0x8] sm:$0xff]  }
 0x95a   :  { %4303 = vmatpush3.bf16.msra.mxu0 %v4520_v32 }
 0x95b   :  { %v1796_v38 = vsel %vm242_vm0, %v1790_v37, 0.0  ;;  %4304 = vmatprep.subr.bf16.mxu0 %v4947_v15 }
 0x95c   :  { %1797 = vadd.xlane.f32.xlu0 %v1796_v38 }
 0x95e   :  { %4305 = vmatpush3.bf16.msra.mxu0 %v4521_v50 }
 0x95f   :  { %4322 = vmatprep.subr.bf16.mxu0 %v4947_v15 }
 0x9e1   :  { %v1795_v39 = vpop.xlane.xlu1 %1794 }
 0x9e2   :  { %v1799_v41 = vmul.f32 0.03125, %v1795_v39 }
 0x9e4   :  { %v1801_v42 = vsub.f32 %v1789_v30, %v1799_v41 }
 0x9e5   :  { %v1798_v43 = vpop.xlane.xlu0 %1797 }
 0x9e6   :  { %v1800_v44 = vmul.f32 0.03125, %v1798_v43  ;;  %v1803_v45 = vmul.f32 %v1801_v42, %v1801_v42 }
 0x9e8   :  { %v1802_v46 = vsub.f32 %v1790_v37, %v1800_v44  ;;  %v1805_v31 = vsel %vm242_vm0, %v1803_v45, 0.0  ;;  %v4026_v37 = vld [vmem:[#allocation17] ss:$0 sm:$0xff] }
 0x9e9   :  { %1806 = vadd.xlane.f32.xlu0 %v1805_v31 }
 0x9ea   :  { %v1804_v47 = vmul.f32 %v1802_v46, %v1802_v46 }
 0x9ec   :  { %v1808_v49 = vsel %vm242_vm0, %v1804_v47, 0.0 }
 0x9ed   :  { %1809 = vadd.xlane.f32.xlu0 %v1808_v49 }
 0xa72   :  { %v1807_v51 = vpop.xlane.xlu0 %1806 }
 0xa73   :  { %v1811_v52 = vmul.f32 0.03125, %v1807_v51 }
 0xa75   :  { %v1813_v53 = vadd.f32 1e-12, %v1811_v52 }
 0xa76   :  { %v1810_v54 = vpop.xlane.xlu0 %1809 }
 0xa77   :  { %4576 = vrsqrt.f32 %v1813_v53  ;;  %v1812_v55 = vmul.f32 0.03125, %v1810_v54 }
 0xa79   :  { %v1814_v56 = vadd.f32 1e-12, %v1812_v55 }
 0xa7b   :  { %4578 = vrsqrt.f32 %v1814_v56 }
 0xa84   :  { %v4577_v57 = vpop.eup %4576 }
 0xa85   :  { %v1817_v58 = vmul.f32 %v4577_v57, %v1801_v42 }
 0xa87   :  { %v1825_v62 = vmul.f32 %v4020_v59, %v1817_v58  ;;  %v4526_v58 = vld [vmem:[%s5675_s25 + $0x18] sm:$0xff]  }
 0xa88   :  { %v4579_v60 = vpop.eup %4578 }
 0xa89   :  { %v1818_v61 = vmul.f32 %v4579_v60, %v1802_v46  ;;  %v1833_v1 = vadd.f32 %v4021_v63, %v1825_v62 }
 0xa8b   :  { %v1826_v0 = vmul.f32 %v4020_v59, %v1818_v61  ;;  %v4527_v59 = vld [vmem:[%s5675_s25 + $0x10] sm:$0xff]  }
 0xa8d   :  { %v1834_v2 = vadd.f32 %v4021_v63, %v1826_v0 }
 0xa8f   :  { %v1835_v3 = vpack.c.bf16 %v1834_v2, %v1833_v1 }
 0xa91   :  { %4307 = vmatmul.mubr.msk.bf16.vlgmr.msra.gmra.mxu0 %vm242_vm0, %v1835_v3 }
 0xa92   :  { %4326 = vmatprep.mubr.msk.bf16.mxu0 %vm4948_vm1, %v4947_v15  ;;  %4323 = vmatpush3.bf16.msra.mxu0 %v4526_v58 }
 0xa93   :  { %4324 = vmatprep.subr.bf16.mxu0 %v4947_v15 }
 0xa96   :  { %4325 = vmatpush3.bf16.msra.mxu0 %v4527_v59 }
 0xa97   :  { %4330 = vmatprep.subr.mxu0 %v4947_v15 }
 0xb51   :  { %v1896_v9 = vpop.f32.mrf.mxu0 }
 0xb52   :  { %v1897_v10 = vadd.f32 %v4022_v8, %v1896_v9 }
 0xb53   :  { %v4308_v12 = vpop.f32.mrf.mxu0 }
 0xb54   :  { %v1903_v13 = vmul.f32 %v1897_v10, %v1897_v10 }
 0xb55   :  { %v1899_v36 = vpop.f32.mrf.mxu0 }
 0xb56   :  { %v1905_v14 = vmul.f32 %v1903_v13, %v1897_v10  ;;  %v1900_v16 = vadd.f32 %v4022_v8, %v1899_v36  ;;  %v4033_v8 = vld [vmem:[#allocation20] ss:$0 sm:$0xff]  ;;  %v4038_v36 = vld [vmem:[#allocation10 + $0x1] ss:$0 sm:$0xff] }
 0xb57   :  { %v4309_v17 = vpop.f32.mrf.mxu0 }
 0xb58   :  { %v1907_v18 = vmul.f32 0.044715, %v1905_v14  ;;  %v1904_v19 = vmul.f32 %v1900_v16, %v1900_v16 }
 0xb5a   :  { %v1909_v20 = vadd.f32 %v1907_v18, %v1897_v10  ;;  %v1906_v21 = vmul.f32 %v1904_v19, %v1900_v16 }
 0xb5c   :  { %v1911_v22 = vmul.f32 0.7978846, %v1909_v20  ;;  %v1908_v23 = vmul.f32 0.044715, %v1906_v21 }
 0xb5e   :  { %4580 = vtanh.f32 %v1911_v22  ;;  %v1910_v24 = vadd.f32 %v1908_v23, %v1900_v16 }
 0xb60   :  { %v1912_v26 = vmul.f32 0.7978846, %v1910_v24 }
 0xb62   :  { %4582 = vtanh.f32 %v1912_v26 }
 0xb6b   :  { %v4581_v27 = vpop.eup %4580 }
 0xb6c   :  { %v1915_v28 = vadd.f32 1.0, %v4581_v27 }
 0xb6e   :  { %v1917_v11 = vmul.f32 0.5, %v1915_v28 }
 0xb6f   :  { %v4583_v29 = vpop.eup %4582 }
 0xb70   :  { %v1916_v30 = vadd.f32 1.0, %v4583_v29  ;;  %v1919_v40 = vmul.f32 %v1917_v11, %v1897_v10 }
 0xb72   :  { %v1918_v33 = vmul.f32 0.5, %v1916_v30 }
 0xb74   :  { %v1920_v34 = vmul.f32 %v1918_v33, %v1900_v16 }
 0xb76   :  { %v1921_v35 = vpack.c.bf16 %v1920_v34, %v1919_v40 }
 0xb78   :  { %4319 = vmatmul.mubr.msk.bf16.vlgmr.msra.gmra.mxu1 %vm1961_vm5, %v1921_v35 }
 0xb79   :  { %4342 = vmatprep.mubr.msk.f32.mxu1 %vm4948_vm1, %v4947_v15 }
 0xc38   :  { %v1999_v38 = vpop.f32.mrf.mxu1 }
 0xc39   :  { %v2000_v39 = vadd.f32 %v4026_v37, %v1999_v38 }
 0xc3a   :  { %v4320_v41 = vpop.f32.mrf.mxu1 }
 0xc3b   :  { %v2006_v42 = vadd.f32 %v2000_v39, %v1833_v1 }
 0xc3c   :  { %v2002_v43 = vpop.f32.mrf.mxu1 }
 0xc3d   :  { %v2003_v44 = vadd.f32 %v4026_v37, %v2002_v43  ;;  %v2010_v45 = vsel %vm242_vm0, %v2006_v42, 0.0 }
 0xc3e   :  { %2011 = vadd.xlane.f32.xlu1 %v2010_v45  ;;  %v4321_v46 = vpop.f32.mrf.mxu1 }
 0xc3f   :  { %v2007_v31 = vadd.f32 %v2003_v44, %v1834_v2 }
 0xc41   :  { %v2013_v47 = vsel %vm242_vm0, %v2007_v31, 0.0 }
 0xc42   :  { %2014 = vadd.xlane.f32.xlu0 %v2013_v47 }
 0xcc7   :  { %v2012_v49 = vpop.xlane.xlu1 %2011 }
 0xcc8   :  { %v2016_v32 = vmul.f32 0.03125, %v2012_v49 }
 0xcca   :  { %v2018_v50 = vsub.f32 %v2006_v42, %v2016_v32 }
 0xccb   :  { %v2015_v51 = vpop.xlane.xlu0 %2014 }
 0xccc   :  { %v2017_v52 = vmul.f32 0.03125, %v2015_v51  ;;  %v2020_v53 = vmul.f32 %v2018_v50, %v2018_v50 }
 0xcce   :  { %v2019_v54 = vsub.f32 %v2007_v31, %v2017_v52  ;;  %v2022_v55 = vsel %vm242_vm0, %v2020_v53, 0.0 }
 0xccf   :  { %2023 = vadd.xlane.f32.xlu1 %v2022_v55 }
 0xcd0   :  { %v2021_v56 = vmul.f32 %v2019_v54, %v2019_v54 }
 0xcd2   :  { %v2025_v57 = vsel %vm242_vm0, %v2021_v56, 0.0 }
 0xcd3   :  { %2026 = vadd.xlane.f32.xlu0 %v2025_v57 }
 0xd58   :  { %v2024_v60 = vpop.xlane.xlu1 %2023 }
 0xd59   :  { %v2028_v61 = vmul.f32 0.03125, %v2024_v60 }
 0xd5b   :  { %v2030_v62 = vadd.f32 1e-12, %v2028_v61 }
 0xd5c   :  { %v2027_v63 = vpop.xlane.xlu0 %2026 }
 0xd5d   :  { %4584 = vrsqrt.f32 %v2030_v62  ;;  %v2029_v0 = vmul.f32 0.03125, %v2027_v63 }
 0xd5f   :  { %v2031_v1 = vadd.f32 1e-12, %v2029_v0 }
 0xd61   :  { %4586 = vrsqrt.f32 %v2031_v1 }
 0xd6a   :  { %v4585_v2 = vpop.eup %4584 }
 0xd6b   :  { %v2034_v3 = vmul.f32 %v4585_v2, %v2018_v50 }
 0xd6d   :  { %v2042_v7 = vmul.f32 %v4032_v4, %v2034_v3 }
 0xd6e   :  { %v4587_v5 = vpop.eup %4586 }
 0xd6f   :  { %v2035_v6 = vmul.f32 %v4587_v5, %v2019_v54  ;;  %v5387_v10 = vadd.f32 %v4033_v8, %v2042_v7 }
 0xd71   :  { %v2043_v9 = vmul.f32 %v4032_v4, %v2035_v6 }
 0xd73   :  { %v5389_v12 = vadd.f32 %v4033_v8, %v2043_v9 }
 0xd75   :  { %v2052_v13 = vpack.c.bf16 %v5389_v12, %v5387_v10 }
 0xd77   :  { %4327 = vmatmul.mubr.msk.bf16.vlgmr.msra.gmra.mxu0 %vm242_vm0, %v2052_v13 }
 0xd78   :  { %4332 = vmatprep.mubr.msk.f32.mxu0 %vm4948_vm1, %v4947_v15 }
 0xe37   :  { %v2115_v14 = vpop.f32.mrf.mxu0 }
 0xe38   :  { %v5396_v16 = vadd.f32 %v4038_v36, %v2115_v14 }
 0xe39   :  { %v4328_v17 = vpop.f32.mrf.mxu0 }
 0xe3a   :  { %2289 = vrot.lane.b32.xlu0 %v5396_v16, %s4950_s7  ;;  %2123 = vrot.lane.b32.xlu1 %v5396_v16, %s4949_s30 }
 0xe3b   :  { %v2118_v18 = vpop.f32.mrf.mxu0 }
 0xe3c   :  { %v5406_v20 = vadd.f32 %v4038_v36, %v2118_v18 }
 0xe3d   :  { %v4329_v19 = vpop.f32.mrf.mxu0 }
 0xe3e   :  { %2621 = vrot.lane.b32.xlu0 %v5396_v16, %s4952_s5  ;;  %2287 = vrot.lane.b32.xlu1 %v5396_v16, %s4953_s0 }
 0xe42   :  { %2455 = vrot.lane.b32.xlu1 %v5396_v16, %s4951_s15  ;;  %2801 = vrot.lane.b32.xlu0 %v5406_v20, %s4949_s30 }
 0xe46   :  { %2453 = vrot.lane.b32.xlu1 %v5396_v16, %s4954_s21  ;;  %2965 = vrot.lane.b32.xlu0 %v5406_v20, %s4953_s0 }
 0xe4a   :  { %2619 = vrot.lane.b32.xlu1 %v5396_v16, %s4955_s1  ;;  %3131 = vrot.lane.b32.xlu0 %v5406_v20, %s4954_s21 }
 0xe4e   :  { %2967 = vrot.lane.b32.xlu1 %v5406_v20, %s4950_s7  ;;  %3297 = vrot.lane.b32.xlu0 %v5406_v20, %s4955_s1 }
 0xe52   :  { %3133 = vrot.lane.b32.xlu1 %v5406_v20, %s4951_s15 }
 0xe56   :  { %3299 = vrot.lane.b32.xlu1 %v5406_v20, %s4952_s5 }
 0xeac   :  { %v2290_v21 = vpop.permute.xlu0 %2289  ;;  %v2124_v22 = vpop.permute.xlu1 %2123 }
 0xead   :  { %4331 = vmatpush3.xpose.msk.msra.mxu0 %vm361_vm2, %v2124_v22  ;;  %4341 = vmatpush3.xpose.msk.msra.mxu1 %vm361_vm2, %v2290_v21 }
 0xeae   :  { %4350 = vmatprep.subr.mxu1 %v4947_v15  ;;  %4335 = vmatprep.subr.mxu0 %v4947_v15 }
 0xeb0   :  { %4333 = vmatmul.mubr.msk.f32.vlgmr.msra.gmra.mxu0 %vm361_vm2, %v5396_v16  ;;  %v2288_v23 = vpop.permute.xlu1 %2287  ;;  %v2622_v24 = vpop.permute.xlu0 %2621 }
 0xeb1   :  { %4343 = vmatmul.mubr.msk.f32.vlgmr.msra.gmra.mxu1 %vm361_vm2, %v2288_v23  ;;  %4337 = vmatprep.mubr.msk.f32.mxu0 %vm4948_vm1, %v4947_v15 }
 0xeb2   :  { %4352 = vmatprep.mubr.msk.f32.mxu1 %vm4948_vm1, %v4947_v15 }
 0xeb4   :  { %v2456_v26 = vpop.permute.xlu1 %2455  ;;  %v2802_v28 = vpop.permute.xlu0 %2801 }
 0xeb5   :  { %4351 = vmatpush3.xpose.msk.msra.mxu1 %vm361_vm2, %v2456_v26 }
 0xeb6   :  { %4360 = vmatprep.subr.mxu1 %v4947_v15 }
 0xeb8   :  { %v2454_v27 = vpop.permute.xlu1 %2453  ;;  %v2966_v11 = vpop.permute.xlu0 %2965 }
 0xeb9   :  { %4353 = vmatmul.mubr.msk.f32.vlgmr.msra.gmra.mxu1 %vm361_vm2, %v2454_v27 }
 0xeba   :  { %4361 = vmatpush3.xpose.msk.msra.mxu1 %vm361_vm2, %v2622_v24  ;;  %4362 = vmatprep.mubr.msk.f32.mxu1 %vm4948_vm1, %v4947_v15 }
 0xebb   :  { %4370 = vmatprep.subr.mxu1 %v4947_v15 }
 0xebc   :  { %v2620_v29 = vpop.permute.xlu1 %2619  ;;  %v3132_v40 = vpop.permute.xlu0 %3131 }
 0xebd   :  { %4363 = vmatmul.mubr.msk.f32.vlgmr.msra.gmra.mxu1 %vm361_vm2, %v2620_v29 }
 0xebe   :  { %4371 = vmatpush3.xpose.msk.msra.mxu1 %vm361_vm2, %v2802_v28  ;;  %4372 = vmatprep.mubr.msk.f32.mxu1 %vm4948_vm1, %v4947_v15 }
 0xebf   :  { %4380 = vmatprep.subr.mxu1 %v4947_v15 }
 0xec0   :  { %v2968_v30 = vpop.permute.xlu1 %2967  ;;  %v3298_v35 = vpop.permute.xlu0 %3297 }
 0xec1   :  { %4373 = vmatmul.mubr.msk.f32.vlgmr.msra.gmra.mxu1 %vm361_vm2, %v5406_v20 }
 0xec2   :  { %4381 = vmatpush3.xpose.msk.msra.mxu1 %vm361_vm2, %v2968_v30  ;;  %4382 = vmatprep.mubr.msk.f32.mxu1 %vm4948_vm1, %v4947_v15 }
 0xec3   :  { %4390 = vmatprep.subr.mxu1 %v4947_v15 }
 0xec4   :  { %v3134_v33 = vpop.permute.xlu1 %3133 }
 0xec5   :  { %4383 = vmatmul.mubr.msk.f32.vlgmr.msra.gmra.mxu1 %vm361_vm2, %v2966_v11 }
 0xec6   :  { %4391 = vmatpush3.xpose.msk.msra.mxu1 %vm361_vm2, %v3134_v33  ;;  %4392 = vmatprep.mubr.msk.f32.mxu1 %vm4948_vm1, %v4947_v15 }
 0xec7   :  { %4400 = vmatprep.subr.mxu1 %v4947_v15 }
 0xec8   :  { %v3300_v34 = vpop.permute.xlu1 %3299 }
 0xec9   :  { %4393 = vmatmul.mubr.msk.f32.vlgmr.msra.gmra.mxu1 %vm361_vm2, %v3132_v40 }
 0xeca   :  { %4401 = vmatpush3.xpose.msk.msra.mxu1 %vm361_vm2, %v3300_v34  ;;  %4402 = vmatprep.mubr.msk.f32.mxu1 %vm4948_vm1, %v4947_v15 }
 0xecb   :  { %4410 = vmatprep.subr.bf16.mxu1 %v4947_v15 }
 0xecd   :  { %4403 = vmatmul.mubr.msk.f32.vlgmr.msra.gmra.mxu1 %vm361_vm2, %v3298_v35 }
 0xece   :  { %4414 = vmatprep.mubr.msk.bf16.mxu1 %vm4948_vm1, %v4947_v15 }
 0xf70   :  { %v2195_v37 = vpop.f32.mrf.mxu0 }
 0xf71   :  { %v2196_v38 = vadd.f32 %v2195_v37, %v5190_v48  ;;  %v2361_v39 = vpop.f32.mrf.mxu1 }
 0xf72   :  { %v2362_v41 = vadd.f32 %v2361_v39, %v5190_v48  ;;  %v4334_v42 = vpop.f32.mrf.mxu0 }
 0xf73   :  { %v4344_v43 = vpop.f32.mrf.mxu1  ;;  %v2199_v44 = vsel %vm361_vm2, %v2196_v38, -inf }
 0xf74   :  { %2200 = vmax.xlane.f32.xlu1 %v2199_v44  ;;  %v2365_v45 = vsel %vm361_vm2, %v2362_v41, -inf }
 0xf75   :  { %2366 = vmax.xlane.f32.xlu0 %v2365_v45 }
 0xf79   :  { %v2527_v46 = vpop.f32.mrf.mxu1 }
 0xf7a   :  { %v2528_v31 = vadd.f32 %v2527_v46, %v5190_v48 }
 0xf7b   :  { %v4354_v47 = vpop.f32.mrf.mxu1 }
 0xf7c   :  { %v2531_v49 = vsel %vm361_vm2, %v2528_v31, -inf }
 0xf7d   :  { %v2693_v32 = vpop.f32.mrf.mxu1  ;;  %2532 = vmax.xlane.f32.xlu0 %v2531_v49 }
 0xf7e   :  { %v2694_v50 = vadd.f32 %v2693_v32, %v5190_v48 }
 0xf7f   :  { %v4364_v51 = vpop.f32.mrf.mxu1 }
 0xf80   :  { %v2697_v52 = vsel %vm361_vm2, %v2694_v50, -inf }
 0xf81   :  { %2698 = vmax.xlane.f32.xlu0 %v2697_v52  ;;  %v2873_v53 = vpop.f32.mrf.mxu1 }
 0xf82   :  { %v2874_v54 = vadd.f32 %v2873_v53, %v5258_v25 }
 0xf83   :  { %v4374_v55 = vpop.f32.mrf.mxu1 }
 0xf84   :  { %v2877_v56 = vsel %vm361_vm2, %v2874_v54, -inf }
 0xf85   :  { %v3039_v57 = vpop.f32.mrf.mxu1  ;;  %2878 = vmax.xlane.f32.xlu1 %v2877_v56 }
 0xf86   :  { %v3040_v58 = vadd.f32 %v3039_v57, %v5258_v25 }
 0xf87   :  { %v4384_v59 = vpop.f32.mrf.mxu1 }
 0xf88   :  { %v3043_v60 = vsel %vm361_vm2, %v3040_v58, -inf }
 0xf89   :  { %3044 = vmax.xlane.f32.xlu0 %v3043_v60  ;;  %v3205_v61 = vpop.f32.mrf.mxu1 }
 0xf8a   :  { %v3206_v48 = vadd.f32 %v3205_v61, %v5258_v25 }
 0xf8b   :  { %v4394_v62 = vpop.f32.mrf.mxu1 }
 0xf8c   :  { %v3209_v63 = vsel %vm361_vm2, %v3206_v48, -inf }
 0xf8d   :  { %v3371_v0 = vpop.f32.mrf.mxu1  ;;  %3210 = vmax.xlane.f32.xlu1 %v3209_v63 }
 0xf8e   :  { %v3372_v1 = vadd.f32 %v3371_v0, %v5258_v25 }
 0xf8f   :  { %v4404_v2 = vpop.f32.mrf.mxu1 }
 0xf90   :  { %v3375_v3 = vsel %vm361_vm2, %v3372_v1, -inf }
 0xf91   :  { %3376 = vmax.xlane.f32.xlu0 %v3375_v3 }
 0xf9e   :  { %2377 = vrot.lane.b32.xlu1 %v5396_v16, %s4957_s23 }
 0xfa2   :  { %2543 = vrot.lane.b32.xlu1 %v5396_v16, %s4959_s2 }
 0xfa7   :  { %2211 = vrot.lane.b32.xlu0 %v5396_v16, %s4956_s9 }
 0xffd   :  { %v2201_v4 = vpop.xlane.xlu1 %2200 }
 0xffe   :  { %v2202_v5 = vsub.f32 %v2196_v38, %v2201_v4  ;;  %v2367_v6 = vpop.xlane.xlu0 %2366 }
 0xfff   :  { %v2368_v7 = vsub.f32 %v2362_v41, %v2367_v6 }
0x1000   :  { %v2203_v8 = vmul.f32 1.442695, %v2202_v5 }
0x1001   :  { %v2369_v9 = vmul.f32 1.442695, %v2368_v7 }
0x1002   :  { %4588 = vpow2.f32 %v2203_v8 }
0x1003   :  { %4590 = vpow2.f32 %v2369_v9 }
0x1006   :  { %v2533_v25 = vpop.xlane.xlu0 %2532 }
0x1007   :  { %v2534_v23 = vsub.f32 %v2528_v31, %v2533_v25 }
0x1009   :  { %v2535_v27 = vmul.f32 1.442695, %v2534_v23 }
0x100a   :  { %v2699_v18 = vpop.xlane.xlu0 %2698 }
0x100b   :  { %v2700_v24 = vsub.f32 %v2694_v50, %v2699_v18  ;;  %4592 = vpow2.f32 %v2535_v27 }
0x100d   :  { %v2701_v29 = vmul.f32 1.442695, %v2700_v24 }
0x100e   :  { %v2879_v26 = vpop.xlane.xlu1 %2878 }
0x100f   :  { %v4589_v13 = vpop.eup %4588  ;;  %v2880_v28 = vsub.f32 %v2874_v54, %v2879_v26  ;;  %4594 = vpow2.f32 %v2701_v29 }
0x1010   :  { %v5492_v36 = vpop.eup %4590  ;;  %v2205_v14 = vsel %vm361_vm2, %v4589_v13, 0.0 }
0x1011   :  { %2206 = vadd.xlane.f32.xlu1 %v2205_v14  ;;  %v2371_v17 = vsel %vm361_vm2, %v5492_v36, 0.0  ;;  %v2881_v33 = vmul.f32 1.442695, %v2880_v28  ;;  %v4528_v28 = vld [vmem:[%s5650_s6 + $0x18] sm:$0xff]  }
0x1012   :  { %2372 = vadd.xlane.f32.xlu0 %v2371_v17  ;;  %v3045_v19 = vpop.xlane.xlu0 %3044  ;;  %4411 = vmatpush3.bf16.msra.mxu1 %v4528_v28 }
0x1013   :  { %v3046_v11 = vsub.f32 %v3040_v58, %v3045_v19  ;;  %4596 = vpow2.f32 %v2881_v33  ;;  %4412 = vmatprep.subr.bf16.mxu1 %v4947_v15 }
0x1015   :  { %v3047_v34 = vmul.f32 1.442695, %v3046_v11 }
0x1016   :  { %v3211_v30 = vpop.xlane.xlu1 %3210 }
0x1017   :  { %v3212_v40 = vsub.f32 %v3206_v48, %v3211_v30  ;;  %4598 = vpow2.f32 %v3047_v34  ;;  %v4529_v30 = vld [vmem:[%s5650_s6 + $0x10] sm:$0xff]  }
0x1018   :  { %4413 = vmatpush3.bf16.msra.mxu1 %v4529_v30 }
0x1019   :  { %v3213_v35 = vmul.f32 1.442695, %v3212_v40  ;;  %4426 = vmatprep.subr.bf16.mxu1 %v4947_v15 }
0x101a   :  { %v3377_v21 = vpop.xlane.xlu0 %3376  ;;  %v2378_v50 = vpop.permute.xlu1 %2377 }
0x101b   :  { %v3378_v37 = vsub.f32 %v3372_v1, %v3377_v21  ;;  %4600 = vpow2.f32 %v3213_v35 }
0x101d   :  { %v3379_v38 = vmul.f32 1.442695, %v3378_v37 }
0x101e   :  { %v2212_v22 = vpop.permute.xlu0 %2211  ;;  %v2544_v51 = vpop.permute.xlu1 %2543 }
0x101f   :  { %4336 = vmatpush3.msra.mxu0 %v2212_v22  ;;  %4602 = vpow2.f32 %v3379_v38 }
0x1020   :  { %4345 = vmatprep.subr.mxu0 %v4947_v15 }
0x1022   :  { %2889 = vrot.lane.b32.xlu1 %v5406_v20, %s4956_s9 }
0x1028   :  { %2709 = vrot.lane.b32.xlu0 %v5396_v16, %s4958_s8  ;;  %v4593_v16 = vpop.eup %4592 }
0x1029   :  { %v4595_v39 = vpop.eup %4594  ;;  %v2537_v41 = vsel %vm361_vm2, %v4593_v16, 0.0 }
0x102a   :  { %v5503_v42 = vpop.eup %4596  ;;  %v2703_v43 = vsel %vm361_vm2, %v4595_v39, 0.0 }
0x102b   :  { %v5506_v44 = vpop.eup %4598  ;;  %v2883_v45 = vsel %vm361_vm2, %v5503_v42, 0.0 }
0x102c   :  { %v5510_v46 = vpop.eup %4600  ;;  %v3049_v31 = vsel %vm361_vm2, %v5506_v44, 0.0 }
0x102d   :  { %v3215_v47 = vsel %vm361_vm2, %v5510_v46, 0.0  ;;  %v5516_v49 = vpop.eup %4602 }
0x102e   :  { %v3381_v32 = vsel %vm361_vm2, %v5516_v49, 0.0 }
0x1046   :  { %2538 = vadd.xlane.f32.xlu1 %v2537_v41 }
0x1047   :  { %2704 = vadd.xlane.f32.xlu0 %v2703_v43 }
0x104a   :  { %2884 = vadd.xlane.f32.xlu1 %v2883_v45 }
0x104b   :  { %3050 = vadd.xlane.f32.xlu0 %v3049_v31 }
0x104e   :  { %3216 = vadd.xlane.f32.xlu1 %v3215_v47 }
0x1052   :  { %3382 = vadd.xlane.f32.xlu1 %v3381_v32 }
0x1061   :  { %3055 = vrot.lane.b32.xlu0 %v5406_v20, %s4957_s23 }
0x1063   :  { %3221 = vrot.lane.b32.xlu1 %v5406_v20, %s4959_s2 }
0x1065   :  { %3387 = vrot.lane.b32.xlu0 %v5406_v20, %s4958_s8 }
0x109a   :  { %v2207_v52 = vpop.xlane.xlu1 %2206 }
0x109b   :  { %4604 = vrcp.f32 %v2207_v52  ;;  %v2373_v53 = vpop.xlane.xlu0 %2372 }
0x109c   :  { %4606 = vrcp.f32 %v2373_v53 }
0x109e   :  { %v2890_v20 = vpop.permute.xlu1 %2889 }
0x109f   :  { %v2710_v58 = vpop.permute.xlu0 %2709 }
0x10a8   :  { %v4605_v54 = vpop.eup %4604 }
0x10a9   :  { %v2210_v55 = vmul.f32 %v4605_v54, %v4589_v13  ;;  %v4607_v56 = vpop.eup %4606 }
0x10aa   :  { %v2376_v57 = vmul.f32 %v4607_v56, %v5492_v36 }
0x10ab   :  { %4338 = vmatmul.mubr.msk.f32.vlgmr.msra.gmra.mxu0 %vm361_vm2, %v2210_v55 }
0x10ac   :  { %4346 = vmatpush3.msra.mxu0 %v2378_v50  ;;  %4347 = vmatprep.mubr.msk.f32.mxu0 %vm4948_vm1, %v4947_v15 }
0x10ad   :  { %4355 = vmatprep.subr.mxu0 %v4947_v15 }
0x10af   :  { %4348 = vmatmul.mubr.msk.f32.vlgmr.msra.gmra.mxu0 %vm361_vm2, %v2376_v57  ;;  %v4070_v57 = vld [vmem:[#allocation11 + $0x1] ss:$0 sm:$0xff] }
0x10b0   :  { %4356 = vmatpush3.msra.mxu0 %v2544_v51  ;;  %4357 = vmatprep.mubr.msk.f32.mxu0 %vm4948_vm1, %v4947_v15 }
0x10b1   :  { %4365 = vmatprep.subr.mxu0 %v4947_v15 }
0x10cf   :  { %v2539_v59 = vpop.xlane.xlu1 %2538 }
0x10d0   :  { %4608 = vrcp.f32 %v2539_v59  ;;  %v2705_v60 = vpop.xlane.xlu0 %2704 }
0x10d1   :  { %4610 = vrcp.f32 %v2705_v60 }
0x10d3   :  { %v2885_v61 = vpop.xlane.xlu1 %2884 }
0x10d4   :  { %4612 = vrcp.f32 %v2885_v61  ;;  %v3051_v48 = vpop.xlane.xlu0 %3050 }
0x10d5   :  { %4614 = vrcp.f32 %v3051_v48 }
0x10d7   :  { %v3217_v62 = vpop.xlane.xlu1 %3216 }
0x10d8   :  { %4616 = vrcp.f32 %v3217_v62  ;;  %v3056_v7 = vpop.permute.xlu0 %3055 }
0x10db   :  { %v3383_v2 = vpop.xlane.xlu1 %3382 }
0x10dc   :  { %4618 = vrcp.f32 %v3383_v2  ;;  %v3388_v14 = vpop.permute.xlu0 %3387 }
0x10dd   :  { %v4609_v63 = vpop.eup %4608 }
0x10de   :  { %v2542_v0 = vmul.f32 %v4609_v63, %v4593_v16  ;;  %v4611_v1 = vpop.eup %4610 }
0x10df   :  { %v2708_v3 = vmul.f32 %v4611_v1, %v4595_v39  ;;  %v3222_v25 = vpop.permute.xlu1 %3221 }
0x10e0   :  { %4358 = vmatmul.mubr.msk.f32.vlgmr.msra.gmra.mxu0 %vm361_vm2, %v2542_v0 }
0x10e1   :  { %4366 = vmatpush3.msra.mxu0 %v2710_v58  ;;  %4367 = vmatprep.mubr.msk.f32.mxu0 %vm4948_vm1, %v4947_v15  ;;  %v4613_v4 = vpop.eup %4612 }
0x10e2   :  { %4375 = vmatprep.subr.mxu0 %v4947_v15  ;;  %v2888_v5 = vmul.f32 %v4613_v4, %v5503_v42  ;;  %v4615_v6 = vpop.eup %4614 }
0x10e3   :  { %v3054_v8 = vmul.f32 %v4615_v6, %v5506_v44 }
0x10e4   :  { %4368 = vmatmul.mubr.msk.f32.vlgmr.msra.gmra.mxu0 %vm361_vm2, %v2708_v3 }
0x10e5   :  { %4376 = vmatpush3.msra.mxu0 %v2890_v20  ;;  %4377 = vmatprep.mubr.msk.f32.mxu0 %vm4948_vm1, %v4947_v15  ;;  %v4617_v9 = vpop.eup %4616 }
0x10e6   :  { %4385 = vmatprep.subr.mxu0 %v4947_v15  ;;  %v3220_v13 = vmul.f32 %v4617_v9, %v5510_v46 }
0x10e8   :  { %4378 = vmatmul.mubr.msk.f32.vlgmr.msra.gmra.mxu0 %vm361_vm2, %v2888_v5 }
0x10e9   :  { %4386 = vmatpush3.msra.mxu0 %v3056_v7  ;;  %4387 = vmatprep.mubr.msk.f32.mxu0 %vm4948_vm1, %v4947_v15  ;;  %v4619_v36 = vpop.eup %4618 }
0x10ea   :  { %4395 = vmatprep.subr.mxu0 %v4947_v15  ;;  %v3386_v17 = vmul.f32 %v4619_v36, %v5516_v49 }
0x10ec   :  { %4388 = vmatmul.mubr.msk.f32.vlgmr.msra.gmra.mxu0 %vm361_vm2, %v3054_v8 }
0x10ed   :  { %4396 = vmatpush3.msra.mxu0 %v3222_v25  ;;  %4397 = vmatprep.mubr.msk.f32.mxu0 %vm4948_vm1, %v4947_v15 }
0x10ee   :  { %4405 = vmatprep.subr.mxu0 %v4947_v15 }
0x10f0   :  { %4398 = vmatmul.mubr.msk.f32.vlgmr.msra.gmra.mxu0 %vm361_vm2, %v3220_v13  ;;  %v4531_v13 = vld [vmem:[%s5654_s10 + $0x10] sm:$0xff]  }
0x10f1   :  { %4406 = vmatpush3.msra.mxu0 %v3388_v14  ;;  %4407 = vmatprep.mubr.msk.f32.mxu0 %vm4948_vm1, %v4947_v15 }
0x10f2   :  { %4418 = vmatprep.subr.bf16.mxu0 %v4947_v15 }
0x10f4   :  { %4408 = vmatmul.mubr.msk.f32.vlgmr.msra.gmra.mxu0 %vm361_vm2, %v3386_v17 }
0x10f5   :  { %4422 = vmatprep.mubr.msk.bf16.mxu0 %vm4948_vm1, %v4947_v15 }
0x116b   :  { %v2283_v18 = vpop.f32.mrf.mxu0 }
0x116d   :  { %v4339_v19 = vpop.f32.mrf.mxu0 }
0x116f   :  { %v2449_v21 = vpop.f32.mrf.mxu0 }
0x1171   :  { %v4349_v22 = vpop.f32.mrf.mxu0 }
0x11a0   :  { %v2615_v23 = vpop.f32.mrf.mxu0 }
0x11a2   :  { %v4359_v24 = vpop.f32.mrf.mxu0 }
0x11a3   :  { %v4074_v24 = vld [vmem:[#allocation13 + $0x1] ss:$0 sm:$0xff] }
0x11a4   :  { %v2781_v26 = vpop.f32.mrf.mxu0 }
0x11a6   :  { %v4369_v27 = vpop.f32.mrf.mxu0 }
0x11a8   :  { %v2961_v29 = vpop.f32.mrf.mxu0 }
0x11aa   :  { %v4379_v11 = vpop.f32.mrf.mxu0 }
0x11ac   :  { %v3127_v33 = vpop.f32.mrf.mxu0 }
0x11ad   :  { %v4501_v40 = vpack.i.bf16 %v3127_v33, %v2449_v21 }
0x11ae   :  { %v4389_v34 = vpop.f32.mrf.mxu0 }
0x11af   :  { %4502 = vrot.lane.b32.xlu1 %v4501_v40, %s4940_s27  ;;  %v4532_v34 = vld [vmem:[%s5656_s12 + $0x38] sm:$0xff]  }
0x11b0   :  { %v3293_v35 = vpop.f32.mrf.mxu0 }
0x11b1   :  { %v4506_v37 = vpack.i.bf16 %v3293_v35, %v2615_v23  ;;  %v4533_v35 = vld [vmem:[%s5656_s12 + $0x30] sm:$0xff]  }
0x11b2   :  { %v4399_v38 = vpop.f32.mrf.mxu0 }
0x11b3   :  { %4507 = vrot.lane.b32.xlu0 %v4506_v37, %s4934_s22  ;;  %v4534_v37 = vld [vmem:[%s5656_s12 + $0x28] sm:$0xff]   ;;  %v4535_v38 = vld [vmem:[%s5656_s12 + $0x20] sm:$0xff]  }
0x11b4   :  { %v3459_v16 = vpop.f32.mrf.mxu0 }
0x11b5   :  { %v4511_v39 = vpack.i.bf16 %v3459_v16, %v2781_v26  ;;  %v4080_v16 = vld [vmem:[#allocation16 + $0x1] ss:$0 sm:$0xff] }
0x11b6   :  { %v4409_v41 = vpop.f32.mrf.mxu0 }
0x11b7   :  { %4512 = vrot.lane.b32.xlu1 %v4511_v39, %s4960_s13 }
0x1221   :  { %v4503_v42 = vpop.permute.xlu1 %4502 }
0x1222   :  { %v4505_v44 = vunpack.i.h.bf16 %v4503_v42  ;;  %v4504_v45 = vunpack.i.l.bf16 %v4503_v42 }
0x1224   :  { %v3475_v49 = vsel %vm361_vm2, %v2961_v29, %v4505_v44  ;;  %v2797_v32 = vsel %vm361_vm2, %v2283_v18, %v4504_v45  ;;  %v4075_v29 = vld [vmem:[#allocation14 + $0x1] ss:$0 sm:$0xff] }
0x1225   :  { %v4508_v43 = vpop.permute.xlu0 %4507 }
0x1226   :  { %v4510_v46 = vunpack.i.h.bf16 %v4508_v43  ;;  %v4509_v31 = vunpack.i.l.bf16 %v4508_v43 }
0x1228   :  { %v3476_v52 = vsel %vm1035_vm3, %v3475_v49, %v4510_v46  ;;  %v2798_v53 = vsel %vm1035_vm3, %v2797_v32, %v4509_v31 }
0x1229   :  { %v4513_v47 = vpop.permute.xlu1 %4512 }
0x122a   :  { %v4515_v50 = vunpack.i.h.bf16 %v4513_v47  ;;  %v4514_v51 = vunpack.i.l.bf16 %v4513_v47 }
0x122c   :  { %v3477_v54 = vsel %vm1037_vm4, %v3476_v52, %v4515_v50  ;;  %v2799_v55 = vsel %vm1037_vm4, %v2798_v53, %v4514_v51 }
0x122d   :  { %v3478_v56 = vpack.c.bf16 %v3477_v54, %v2799_v55 }
0x122f   :  { %4415 = vmatmul.mubr.msk.bf16.vlgmr.msra.gmra.mxu1 %vm242_vm0, %v3478_v56 }
0x1230   :  { %4434 = vmatprep.mubr.msk.bf16.mxu1 %vm4948_vm1, %v4947_v15  ;;  %4427 = vmatpush3.bf16.msra.mxu1 %v4532_v34 }
0x1231   :  { %4428 = vmatprep.subr.bf16.mxu1 %v4947_v15 }
0x1234   :  { %4429 = vmatpush3.bf16.msra.mxu1 %v4533_v35  ;;  %v4099_v35 = vld [vmem:[#allocation20 + $0x1] ss:$0 sm:$0xff] }
0x1235   :  { %4430 = vmatprep.subr.bf16.mxu1 %v4947_v15 }
0x1238   :  { %4431 = vmatpush3.bf16.msra.mxu1 %v4534_v37 }
0x1239   :  { %4432 = vmatprep.subr.bf16.mxu1 %v4947_v15 }
0x123c   :  { %4433 = vmatpush3.bf16.msra.mxu1 %v4535_v38 }
0x12ef   :  { %v3541_v20 = vpop.f32.mrf.mxu1 }
0x12f0   :  { %v3542_v58 = vadd.f32 %v4070_v57, %v3541_v20 }
0x12f1   :  { %v4416_v59 = vpop.f32.mrf.mxu1 }
0x12f2   :  { %v3548_v60 = vadd.f32 %v3542_v58, %v5387_v10 }
0x12f3   :  { %v3544_v61 = vpop.f32.mrf.mxu1 }
0x12f4   :  { %v3545_v48 = vadd.f32 %v4070_v57, %v3544_v61  ;;  %v3554_v62 = vsel %vm242_vm0, %v3548_v60, 0.0 }
0x12f5   :  { %3555 = vadd.xlane.f32.xlu0 %v3554_v62  ;;  %v4417_v63 = vpop.f32.mrf.mxu1  ;;  %v4092_v62 = vld [vmem:[#allocation17 + $0x1] ss:$0 sm:$0xff] }
0x12f6   :  { %v3549_v0 = vadd.f32 %v3545_v48, %v5389_v12  ;;  %v4530_v12 = vld [vmem:[%s5654_s10 + $0x18] sm:$0xff]  }
0x12f7   :  { %4419 = vmatpush3.bf16.msra.mxu0 %v4530_v12 }
0x12f8   :  { %v3557_v1 = vsel %vm242_vm0, %v3549_v0, 0.0  ;;  %4420 = vmatprep.subr.bf16.mxu0 %v4947_v15 }
0x12f9   :  { %3558 = vadd.xlane.f32.xlu1 %v3557_v1 }
0x12fb   :  { %4421 = vmatpush3.bf16.msra.mxu0 %v4531_v13 }
0x12fc   :  { %4438 = vmatprep.subr.bf16.mxu0 %v4947_v15 }
0x137e   :  { %v3556_v2 = vpop.xlane.xlu0 %3555 }
0x137f   :  { %v3560_v3 = vmul.f32 0.03125, %v3556_v2 }
0x1381   :  { %v3562_v4 = vsub.f32 %v3548_v60, %v3560_v3 }
0x1382   :  { %v3559_v5 = vpop.xlane.xlu1 %3558 }
0x1383   :  { %v3561_v6 = vmul.f32 0.03125, %v3559_v5  ;;  %v3564_v7 = vmul.f32 %v3562_v4, %v3562_v4 }
0x1385   :  { %v3563_v8 = vsub.f32 %v3549_v0, %v3561_v6  ;;  %v3566_v10 = vsel %vm242_vm0, %v3564_v7, 0.0 }
0x1386   :  { %3567 = vadd.xlane.f32.xlu0 %v3566_v10 }
0x1387   :  { %v3565_v9 = vmul.f32 %v3563_v8, %v3563_v8 }
0x1389   :  { %v3569_v25 = vsel %vm242_vm0, %v3565_v9, 0.0 }
0x138a   :  { %3570 = vadd.xlane.f32.xlu0 %v3569_v25 }
0x140f   :  { %v3568_v36 = vpop.xlane.xlu0 %3567 }
0x1410   :  { %v3572_v14 = vmul.f32 0.03125, %v3568_v36 }
0x1412   :  { %v3574_v17 = vadd.f32 1e-12, %v3572_v14 }
0x1413   :  { %v3571_v18 = vpop.xlane.xlu0 %3570 }
0x1414   :  { %4620 = vrsqrt.f32 %v3574_v17  ;;  %v3573_v19 = vmul.f32 0.03125, %v3571_v18 }
0x1416   :  { %v3575_v21 = vadd.f32 1e-12, %v3573_v19 }
0x1418   :  { %4622 = vrsqrt.f32 %v3575_v21  ;;  %v4536_v21 = vld [vmem:[%s5660_s16 + $0x8] sm:$0xff]  }
0x1421   :  { %v4621_v22 = vpop.eup %4620 }
0x1422   :  { %v3578_v23 = vmul.f32 %v4621_v22, %v3562_v4  ;;  %v4537_v22 = vld [vmem:[%s5660_s16] sm:$0xff]  }
0x1424   :  { %v3586_v28 = vmul.f32 %v4074_v24, %v3578_v23 }
0x1425   :  { %v4623_v26 = vpop.eup %4622 }
0x1426   :  { %v3579_v27 = vmul.f32 %v4623_v26, %v3563_v8  ;;  %v3594_v30 = vadd.f32 %v4075_v29, %v3586_v28 }
0x1428   :  { %v3587_v11 = vmul.f32 %v4074_v24, %v3579_v27 }
0x142a   :  { %v3595_v33 = vadd.f32 %v4075_v29, %v3587_v11 }
0x142c   :  { %v3596_v40 = vpack.c.bf16 %v3595_v33, %v3594_v30 }
0x142e   :  { %4423 = vmatmul.mubr.msk.bf16.vlgmr.msra.gmra.mxu0 %vm242_vm0, %v3596_v40 }
0x142f   :  { %4442 = vmatprep.mubr.msk.bf16.mxu0 %vm4948_vm1, %v4947_v15  ;;  %4439 = vmatpush3.bf16.msra.mxu0 %v4536_v21 }
0x1430   :  { %4440 = vmatprep.subr.bf16.mxu0 %v4947_v15 }
0x1433   :  { %4441 = vmatpush3.bf16.msra.mxu0 %v4537_v22 }
0x1434   :  { %4446 = vmatprep.subr.bf16.mxu0 %v4947_v15 }
0x14ee   :  { %v3659_v39 = vpop.f32.mrf.mxu0 }
0x14ef   :  { %v3660_v41 = vadd.f32 %v4080_v16, %v3659_v39 }
0x14f0   :  { %v4424_v42 = vpop.f32.mrf.mxu0 }
0x14f1   :  { %v3666_v43 = vmul.f32 %v3660_v41, %v3660_v41 }
0x14f2   :  { %v3662_v44 = vpop.f32.mrf.mxu0 }
0x14f3   :  { %v3668_v45 = vmul.f32 %v3666_v43, %v3660_v41  ;;  %v3663_v46 = vadd.f32 %v4080_v16, %v3662_v44 }
0x14f4   :  { %v4425_v31 = vpop.f32.mrf.mxu0 }
0x14f5   :  { %v3670_v47 = vmul.f32 0.044715, %v3668_v45  ;;  %v3667_v49 = vmul.f32 %v3663_v46, %v3663_v46 }
0x14f7   :  { %v3672_v32 = vadd.f32 %v3670_v47, %v3660_v41  ;;  %v3669_v50 = vmul.f32 %v3667_v49, %v3663_v46  ;;  %v4538_v47 = vld [vmem:[%s5662_s18 + $0x8] sm:$0xff]   ;;  %v4539_v49 = vld [vmem:[%s5662_s18] sm:$0xff]   ;;  %s4894_s18 = scalar_lea.vmem %s3971_s24, 32 }
0x14f8   :  { %p4895_p9 = scmp.ne.s32.totalorder %s3971_s24, %s4894_s18  ;;  %p4900_p11 = scmp.lt.s32.totalorder %s4894_s18, %s4894_s18 }
0x14f9   :  { %v3674_v51 = vmul.f32 0.7978846, %v3672_v32  ;;  %v3671_v52 = vmul.f32 0.044715, %v3669_v50  ;;  %v4100_v32 = vld [vmem:[#allocation22] ss:$0 sm:$0xff] }
0x14fa   :  { %p4901_p12 = por %p4900_p11, %p4899_p10 }
0x14fb   :  { %4624 = vtanh.f32 %v3674_v51  ;;  %v3673_v53 = vadd.f32 %v3671_v52, %v3663_v46 }
0x14fc   :  { %p4902_p13 = pnand %p4901_p12, %p4895_p9 }
0x14fd   :  { %v3675_v54 = vmul.f32 0.7978846, %v3673_v53 }
0x14ff   :  { %4626 = vtanh.f32 %v3675_v54 }
0x1508   :  { %v4625_v55 = vpop.eup %4624 }
0x1509   :  { %v3678_v56 = vadd.f32 1.0, %v4625_v55 }
0x150b   :  { %v3680_v20 = vmul.f32 0.5, %v3678_v56 }
0x150c   :  { %v4627_v57 = vpop.eup %4626 }
0x150d   :  { %v3679_v58 = vadd.f32 1.0, %v4627_v57  ;;  %v3682_v60 = vmul.f32 %v3680_v20, %v3660_v41 }
0x150f   :  { %v3681_v59 = vmul.f32 0.5, %v3679_v58 }
0x1511   :  { %v3683_v61 = vmul.f32 %v3681_v59, %v3663_v46 }
0x1513   :  { %v3684_v48 = vpack.c.bf16 %v3683_v61, %v3682_v60 }
0x1515   :  { %4435 = vmatmul.mubr.msk.bf16.vlgmr.msra.gmra.mxu1 %vm1961_vm5, %v3684_v48 }
0x15d5   :  { %v3763_v63 = vpop.f32.mrf.mxu1 }
0x15d6   :  { %v3764_v0 = vadd.f32 %v4092_v62, %v3763_v63 }
0x15d7   :  { %v4436_v1 = vpop.f32.mrf.mxu1 }
0x15d8   :  { %v3770_v2 = vadd.f32 %v3764_v0, %v3594_v30  ;;  %v4098_v30 = vld [vmem:[#allocation19 + $0x1] ss:$0 sm:$0xff] }
0x15d9   :  { %v3766_v3 = vpop.f32.mrf.mxu1 }
0x15da   :  { %v3767_v4 = vadd.f32 %v4092_v62, %v3766_v3  ;;  %v3776_v5 = vsel %vm242_vm0, %v3770_v2, 0.0 }
0x15db   :  { %3777 = vadd.xlane.f32.xlu1 %v3776_v5  ;;  %v4437_v6 = vpop.f32.mrf.mxu1 }
0x15dc   :  { %v3771_v7 = vadd.f32 %v3767_v4, %v3595_v33 }
0x15de   :  { %v3779_v8 = vsel %vm242_vm0, %v3771_v7, 0.0 }
0x15df   :  { %3780 = vadd.xlane.f32.xlu0 %v3779_v8 }
0x1664   :  { %v3778_v10 = vpop.xlane.xlu1 %3777 }
0x1665   :  { %v3782_v9 = vmul.f32 0.03125, %v3778_v10 }
0x1667   :  { %v3784_v25 = vsub.f32 %v3770_v2, %v3782_v9 }
0x1668   :  { %v3781_v12 = vpop.xlane.xlu0 %3780 }
0x1669   :  { %v3783_v13 = vmul.f32 0.03125, %v3781_v12  ;;  %v3786_v36 = vmul.f32 %v3784_v25, %v3784_v25 }
0x166b   :  { %v3785_v14 = vsub.f32 %v3771_v7, %v3783_v13  ;;  %v3788_v17 = vsel %vm242_vm0, %v3786_v36, 0.0 }
0x166c   :  { %3789 = vadd.xlane.f32.xlu1 %v3788_v17 }
0x166d   :  { %v3787_v18 = vmul.f32 %v3785_v14, %v3785_v14 }
0x166f   :  { %v3791_v19 = vsel %vm242_vm0, %v3787_v18, 0.0 }
0x1670   :  { %3792 = vadd.xlane.f32.xlu0 %v3791_v19 }
0x16f5   :  { %v3790_v23 = vpop.xlane.xlu1 %3789 }
0x16f6   :  { %v3794_v24 = vmul.f32 0.03125, %v3790_v23 }
0x16f8   :  { %v3796_v26 = vadd.f32 1e-12, %v3794_v24 }
0x16f9   :  { %v3793_v27 = vpop.xlane.xlu0 %3792 }
0x16fa   :  { %4628 = vrsqrt.f32 %v3796_v26  ;;  %v3795_v28 = vmul.f32 0.03125, %v3793_v27 }
0x16fc   :  { %v3797_v29 = vadd.f32 1e-12, %v3795_v28 }
0x16fe   :  { %4630 = vrsqrt.f32 %v3797_v29 }
0x1707   :  { %v4629_v11 = vpop.eup %4628 }
0x1708   :  { %v3800_v33 = vmul.f32 %v4629_v11, %v3784_v25 }
0x170a   :  { %v3808_v40 = vmul.f32 %v4098_v30, %v3800_v33 }
0x170b   :  { %v4631_v34 = vpop.eup %4630 }
0x170c   :  { %v3801_v37 = vmul.f32 %v4631_v34, %v3785_v14  ;;  %v3816_v16 = vadd.f32 %v4099_v35, %v3808_v40 }
0x170e   :  { %v3809_v38 = vmul.f32 %v4098_v30, %v3801_v37  ;;  %v3818_v41 = vpack.c.bf16 %v3816_v16, %v3816_v16 }
0x1710   :  { %v3817_v39 = vadd.f32 %v4099_v35, %v3809_v38  ;;  %v3833_v44 = vunpack.c.l.b16 %v3818_v41 }
0x1712   :  { %v3819_v42 = vpack.c.bf16 %v3817_v39, %v3817_v39 }
0x1714   :  { %v3834_v43 = vunpack.c.l.b16 %v3819_v42 }
0x1716   :  { %v3835_v45 = vrot.slane %v3834_v43, 7 }
0x1718   :  { %v3837_v46 = vsel %vm3836_vm6, %v3835_v45, %v3833_v44 }
0x1719   :  { %v3838_v31 = vpack.c.b16 %v3837_v46, %v3837_v46 }
0x171b   :  { %4443 = vmatmul.mubr.msk.bf16.vlgmr.msra.gmra.mxu0 %vm242_vm0, %v3838_v31 }
0x171c   :  { %4450 = vmatprep.mubr.msk.bf16.mxu0 %vm4948_vm1, %v4947_v15  ;;  %4447 = vmatpush3.bf16.msra.mxu0 %v4538_v47 }
0x171d   :  { %4448 = vmatprep.subr.bf16.mxu0 %v4947_v15  ;;  %v4104_v15 = vld [vmem:[%s5663_s19] ss:$0 sm:$0xff] }
0x1720   :  { %4449 = vmatpush3.bf16.msra.mxu0 %v4539_v49 }
0x17db   :  { %v3888_v50 = vpop.f32.mrf.mxu0 }
0x17dc   :  { %v3889_v51 = vadd.f32 %v4100_v32, %v3888_v50 }
0x17dd   :  { %v4444_v52 = vpop.f32.mrf.mxu0 }
0x17de   :  { %4632 = vtanh.f32 %v3889_v51 }
0x17df   :  { %v3891_v53 = vpop.f32.mrf.mxu0 }
0x17e1   :  { %v4445_v54 = vpop.f32.mrf.mxu0 }
0x17eb   :  { %v4633_v55 = vpop.eup %4632 }
0x17ec   :  { %v3895_v56 = vpack.c.bf16 %v4633_v55, %v4633_v55 }
0x17ee   :  { %4451 = vmatmul.mubr.msk.bf16.vlgmr.msra.gmra.mxu0 %vm242_vm0, %v3895_v56 }
0x18ae   :  { %v3956_v57 = vpop.f32.mrf.mxu0 }
0x18af   :  { %v3957_v20 = vadd.f32 %v4104_v15, %v3956_v57 }
0x18b0   :  { %v4452_v58 = vpop.f32.mrf.mxu0 }
0x18b1   :  { %v3962_v59 = vmax.f32 %v3957_v20, 0.0 }
0x18b2   :  { %v3959_v60 = vpop.f32.mrf.mxu0 }
0x18b3   :  { %3963 = vst [vmem:[#allocation23] sm:$0x3] %v3962_v59 }
0x18b4   :  { %v4453_v61 = vpop.f32.mrf.mxu0 }
0x18b5   :  { %4905 = shalt.err (!%p4902_p13)
}
0x18b6   :  { %3973 = dma.vmem_to_hbm [thread:$0]  %s3971_s24, 32, %s5664_s20, [#allocation4]  }
0x18b7   :  { %4928 = dma.done.wait [#allocation4], 32  }
0x18b8   :  { %4929 = vsyncadd [#allocation4], 4294967264 }
0x18b9   :  { %3977 = vsyncpa [#allocation3], 1 }
0x18ba   :  { %3978 = vsyncpa [#allocation6], 1 }
0x18bb   :  { %3979 = vsyncpa [#allocation9], 1 }
0x18bc   :  { %3980 = vsyncpa [#allocation12], 1 }
0x18bd   :  { %3981 = vsyncpa [#allocation15], 1 }
0x18be   :  { %3982 = vsyncpa [#allocation18], 1 }
0x18bf   :  { %3983 = vsyncpa [#allocation21], 1 }
0x18c0   :  { %3984 = vsyncpa [#allocation4], 1 }

</bundles_post_ra>
